<compile_context>
chip_gen: v6e
topology: v6e:2x2x1
jax: 0.10.0
libtpu: 0.0.40
codegen_flags: <defaults>
</compile_context>

<pallas_src>
import jax
import jax.numpy as jnp
from jax.experimental import pallas as pl
from jax.experimental.pallas import tpu as pltpu


def _linear_kernel(x_ref, w_ref, b_ref, o_ref):
    # dropout34 / dropout35 (p=0.0) are identities -> nothing to do here.
    # x_ref: (M, K) f32   w_ref: (K, N) bf16/f32   b_ref: (1, N) f32
    # o_ref: (M, N) f32
    x = x_ref[...].astype(w_ref.dtype)  # in-kernel cast (free; hidden under DMA)
    acc = jnp.dot(x, w_ref[...], preferred_element_type=jnp.float32)
    o_ref[...] = (acc + b_ref[...]).astype(o_ref.dtype)


def prepare_linear_params(weight_nk, bias_n, *, weight_dtype=jnp.bfloat16):
    """One-time parameter prep (NOT in the per-call hot path).

    Converts the PyTorch-layout weight [N_out, K] into (K, N_out) in the
    requested storage dtype (bf16 by default -> halves the dominant HBM load);
    bias is kept in f32 as a (1, N_out) row.
    """
    w_kn = jnp.asarray(weight_nk).T.astype(weight_dtype)   # (K, N_out)
    b2d = jnp.asarray(bias_n, dtype=jnp.float32).reshape(1, -1)
    return w_kn, b2d


def linear_pallas(x, w_kn, bias2d):
    """y = x @ w_kn + bias2d applied over the last dim of x (single VMEM block)."""
    *lead, k = x.shape
    n_out = w_kn.shape[1]
    m = 1
    for d in lead:
        m *= d

    # Natural shape: no padding, no wrapper-side cast (kernel casts x itself).
    x2d = x.reshape(m, k)

    out_dtype = jnp.float32
    bytes_accessed = (
        x2d.size * x2d.dtype.itemsize
        + w_kn.size * w_kn.dtype.itemsize
        + bias2d.size * bias2d.dtype.itemsize
        + m * n_out * jnp.dtype(out_dtype).itemsize
    )
    cost = pl.CostEstimate(
        flops=2 * m * k * n_out,
        transcendentals=0,
        bytes_accessed=bytes_accessed,
    )

    out2d = pl.pallas_call(
        _linear_kernel,
        out_shape=jax.ShapeDtypeStruct((m, n_out), out_dtype),
        in_specs=[
            pl.BlockSpec(memory_space=pltpu.MemorySpace.VMEM),
            pl.BlockSpec(memory_space=pltpu.MemorySpace.VMEM),
            pl.BlockSpec(memory_space=pltpu.MemorySpace.VMEM),
        ],
        out_specs=pl.BlockSpec(memory_space=pltpu.MemorySpace.VMEM),
        cost_estimate=cost,
    )(x2d, w_kn, bias2d)

    return out2d.reshape(*lead, n_out)


@jax.jit
def model_forward(x, w_kn, bias2d):
    # dropout34 (p=0.0) -> identity
    y = linear_pallas(x, w_kn, bias2d)
    # dropout35 (p=0.0) -> identity
    return y


if __name__ == "__main__":
    key = jax.random.PRNGKey(0)
    kx, kw, kb = jax.random.split(key, 3)

    IN_F, OUT_F = 1536, 384
    # Input consistent with the module's forward: [1, 14, 14, 1536]
    x = jax.random.normal(kx, (1, 14, 14, IN_F), dtype=jnp.float32)

    # Deterministic parameter init (Kaiming-uniform-like bound, like nn.Linear)
    bound = 1.0 / (IN_F ** 0.5)
    weight = jax.random.uniform(
        kw, (OUT_F, IN_F), minval=-bound, maxval=bound, dtype=jnp.float32
    )
    bias = jax.random.uniform(
        kb, (OUT_F,), minval=-bound, maxval=bound, dtype=jnp.float32
    )

    # Plain-JAX reference
    ref = (x.reshape(-1, IN_F) @ weight.T + bias).reshape(1, 14, 14, OUT_F)

    # --- default path: bf16 weight storage / MXU, f32 accumulation + output ---
    w_kn_bf16, b2d = prepare_linear_params(weight, bias, weight_dtype=jnp.bfloat16)
    out = model_forward(x, w_kn_bf16, b2d)
    out = jax.block_until_ready(out)
    assert out.shape == (1, 14, 14, OUT_F), out.shape
    assert jnp.allclose(out, ref, atol=5e-2, rtol=5e-2)

    # --- f32-weight path (tighter tolerance; same kernel, dtype-driven) ---
    w_kn_f32, _ = prepare_linear_params(weight, bias, weight_dtype=jnp.float32)
    out_f32 = model_forward(x, w_kn_f32, b2d)
    out_f32 = jax.block_until_ready(out_f32)
    assert out_f32.shape == (1, 14, 14, OUT_F), out_f32.shape
    assert jnp.allclose(out_f32, ref, atol=1e-4, rtol=1e-4)

    print("KERNEL_OK")
</pallas_src>

<mosaic_0001>
module attributes {stable_mosaic.version = 11 : i64} {
  func.func @_linear_kernel(%arg0: memref<196x1536xf32, #tpu.memory_space<vmem>>, %arg1: memref<1536x384xbf16, #tpu.memory_space<vmem>>, %arg2: memref<1x384xf32, #tpu.memory_space<vmem>>, %arg3: memref<196x384xf32, #tpu.memory_space<vmem>>) attributes {dimension_semantics = [], scalar_prefetch = 0 : i64, scratch_operands = 0 : i64, tpu.core_type = #tpu.core_type<tc>} {
    %c0 = arith.constant 0 : index
    %c0_0 = arith.constant 0 : index
    %0 = vector.load %arg0[%c0, %c0_0] : memref<196x1536xf32, #tpu.memory_space<vmem>>, vector<196x1536xf32>
    %1 = arith.truncf %0 : vector<196x1536xf32> to vector<196x1536xbf16>
    %c0_1 = arith.constant 0 : index
    %c0_2 = arith.constant 0 : index
    %2 = vector.load %arg1[%c0_1, %c0_2] : memref<1536x384xbf16, #tpu.memory_space<vmem>>, vector<1536x384xbf16>
    %cst = arith.constant dense<0.000000e+00> : vector<196x384xf32>
    %3 = tpu.matmul %1, %2, %cst {dimension_numbers = #tpu.dot_dimension_numbers<[1], [0], [0], [1], [0, 0, 1, 1], [], []>} : vector<196x1536xbf16>, vector<1536x384xbf16>, vector<196x384xf32> -> vector<196x384xf32>
    %c0_3 = arith.constant 0 : index
    %c0_4 = arith.constant 0 : index
    %4 = vector.load %arg2[%c0_3, %c0_4] : memref<1x384xf32, #tpu.memory_space<vmem>>, vector<1x384xf32>
    %5 = vector.broadcast %4 : vector<1x384xf32> to vector<196x384xf32>
    %6 = arith.addf %3, %5 : vector<196x384xf32>
    %c0_5 = arith.constant 0 : index
    %c0_6 = arith.constant 0 : index
    %7 = vector.load %arg3[%c0_5, %c0_6] : memref<196x384xf32, #tpu.memory_space<vmem>>, vector<196x384xf32>
    tpu.vector_store %arg3[%c0_5, %c0_6], %6 {strides = array<i32>} : memref<196x384xf32, #tpu.memory_space<vmem>>, vector<196x384xf32>,
    return
  }
}

</mosaic_0001>

<bundles_post_ra>
// kernel: model_forward.1
= control target key start
LH: loop header
LB: loop body
LE: loop exit
PB: predicated region body
PF: predicated region fallthrough
CT: control target
= control target key end

     0   :  { %s8681_s1 = inlined_call_operand.vmem [shape: bf16[1536,384], index: 1, kind: input, shape index: {}]   ;;  %s8682_s0 = inlined_call_operand.vmem [shape: f32[196,1536], index: 0, kind: input, shape index: {}]   ;;  %s8683_s2 = inlined_call_operand.vmem [shape: f32[1,384], index: 2, kind: input, shape index: {}]   ;;  %s8684_s3 = inlined_call_operand.vmem [shape: f32[196,384], index: 3, kind: output, shape index: {}]  }
   0x1   :  { %v5121_v0 = vld [vmem:[%s8681_s1 + $0xac] ss:$12 sps:$4 sm:$0xff]   ;;  %v5125_v2 = vld [vmem:[%s8681_s1 + $0xa8] ss:$12 sps:$4 sm:$0xff]   ;;  %v5131_v6 = vld [vmem:[%s8681_s1 + $0x90] ss:$12 sps:$4 sm:$0xff]  }
   0x2   :  { %v5123_v1 = vld [vmem:[%s8681_s1 + $0x22c] ss:$12 sps:$4 sm:$0xff]   ;;  %2408 = vmatprep.subr.bf16.mxu0 %v5121_v0  ;;  %v5126_v3 = vld [vmem:[%s8681_s1 + $0x228] ss:$12 sps:$4 sm:$0xff]   ;;  %v5132_v7 = vld [vmem:[%s8681_s1 + $0x210] ss:$12 sps:$4 sm:$0xff]  }
   0x3   :  { %2569 = vmatprep.subr.bf16.mxu1 %v5123_v1  ;;  %v5127_v4 = vld [vmem:[%s8681_s1 + $0x94] ss:$12 sps:$4 sm:$0xff]   ;;  %2409 = vmatpush1.bf16.msra.mxu0 %v5125_v2  ;;  %v5133_v8 = vld [vmem:[%s8681_s1 + $0x7c] ss:$12 sps:$4 sm:$0xff]   ;;  %v5137_v10 = vld [vmem:[%s8681_s1 + $0x78] ss:$12 sps:$4 sm:$0xff]  }
   0x4   :  { %2570 = vmatpush1.bf16.msra.mxu1 %v5126_v3  ;;  %v5129_v5 = vld [vmem:[%s8681_s1 + $0x214] ss:$12 sps:$4 sm:$0xff]   ;;  %2410 = vmatprep.subr.bf16.mxu0 %v5127_v4  ;;  %v5135_v9 = vld [vmem:[%s8681_s1 + $0x1fc] ss:$12 sps:$4 sm:$0xff]   ;;  %v5138_v11 = vld [vmem:[%s8681_s1 + $0x1f8] ss:$12 sps:$4 sm:$0xff]  }
   0x5   :  { %2571 = vmatprep.subr.bf16.mxu1 %v5129_v5  ;;  %v5139_v12 = vld [vmem:[%s8681_s1 + $0x64] ss:$12 sps:$4 sm:$0xff]   ;;  %v5143_v14 = vld [vmem:[%s8681_s1 + $0x60] ss:$12 sps:$4 sm:$0xff]   ;;  %v5149_v18 = vld [vmem:[%s8681_s1 + $0x48] ss:$12 sps:$4 sm:$0xff]  }
   0x6   :  { %v5141_v13 = vld [vmem:[%s8681_s1 + $0x1e4] ss:$12 sps:$4 sm:$0xff]   ;;  %v5144_v15 = vld [vmem:[%s8681_s1 + $0x1e0] ss:$12 sps:$4 sm:$0xff]   ;;  %v5150_v19 = vld [vmem:[%s8681_s1 + $0x1c8] ss:$12 sps:$4 sm:$0xff]  }
   0x7   :  { %2411 = vmatpush1.bf16.msra.mxu0 %v5131_v6  ;;  %v5145_v16 = vld [vmem:[%s8681_s1 + $0x4c] ss:$12 sps:$4 sm:$0xff]   ;;  %v5151_v20 = vld [vmem:[%s8681_s1 + $0x34] ss:$12 sps:$4 sm:$0xff]   ;;  %v5155_v22 = vld [vmem:[%s8681_s1 + $0x30] ss:$12 sps:$4 sm:$0xff]  }
   0x8   :  { %2572 = vmatpush1.bf16.msra.mxu1 %v5132_v7  ;;  %2412 = vmatprep.subr.bf16.mxu0 %v5133_v8  ;;  %v5147_v17 = vld [vmem:[%s8681_s1 + $0x1cc] ss:$12 sps:$4 sm:$0xff]   ;;  %v5153_v21 = vld [vmem:[%s8681_s1 + $0x1b4] ss:$12 sps:$4 sm:$0xff]   ;;  %v5156_v23 = vld [vmem:[%s8681_s1 + $0x1b0] ss:$12 sps:$4 sm:$0xff]  }
   0x9   :  { %2573 = vmatprep.subr.bf16.mxu1 %v5135_v9  ;;  %v5157_v24 = vld [vmem:[%s8681_s1 + $0x1c] ss:$12 sps:$4 sm:$0xff]   ;;  %v5161_v26 = vld [vmem:[%s8681_s1 + $0x18] ss:$12 sps:$4 sm:$0xff]   ;;  %v5167_v30 = vld [vmem:[%s8681_s1] ss:$12 sps:$4 sm:$0xff]  }
   0xa   :  { %v5159_v25 = vld [vmem:[%s8681_s1 + $0x19c] ss:$12 sps:$4 sm:$0xff]   ;;  %v5162_v27 = vld [vmem:[%s8681_s1 + $0x198] ss:$12 sps:$4 sm:$0xff]   ;;  %v5168_v31 = vld [vmem:[%s8681_s1 + $0x180] ss:$12 sps:$4 sm:$0xff]  }
   0xb   :  { %2413 = vmatpush1.bf16.msra.mxu0 %v5137_v10  ;;  %v5163_v28 = vld [vmem:[%s8681_s1 + $0x4] ss:$12 sps:$4 sm:$0xff]   ;;  %v5169_v32 = vld [vmem:[%s8681_s1 + $0x16c] ss:$12 sps:$4 sm:$0xff]   ;;  %v5173_v34 = vld [vmem:[%s8681_s1 + $0x168] ss:$12 sps:$4 sm:$0xff]  }
   0xc   :  { %2574 = vmatpush1.bf16.msra.mxu1 %v5138_v11  ;;  %2414 = vmatprep.subr.bf16.mxu0 %v5139_v12  ;;  %v5165_v29 = vld [vmem:[%s8681_s1 + $0x184] ss:$12 sps:$4 sm:$0xff]   ;;  %v5171_v33 = vld [vmem:[%s8681_s1 + $0x2ec] ss:$12 sps:$4 sm:$0xff]   ;;  %v5174_v35 = vld [vmem:[%s8681_s1 + $0x2e8] ss:$12 sps:$4 sm:$0xff]  }
   0xd   :  { %2575 = vmatprep.subr.bf16.mxu1 %v5141_v13  ;;  %v5175_v36 = vld [vmem:[%s8681_s1 + $0x154] ss:$12 sps:$4 sm:$0xff]   ;;  %v5179_v38 = vld [vmem:[%s8681_s1 + $0x150] ss:$12 sps:$4 sm:$0xff]   ;;  %v5185_v42 = vld [vmem:[%s8681_s1 + $0x138] ss:$12 sps:$4 sm:$0xff]  }
   0xe   :  { %v5177_v37 = vld [vmem:[%s8681_s1 + $0x2d4] ss:$12 sps:$4 sm:$0xff]   ;;  %v5180_v39 = vld [vmem:[%s8681_s1 + $0x2d0] ss:$12 sps:$4 sm:$0xff]   ;;  %v5186_v43 = vld [vmem:[%s8681_s1 + $0x2b8] ss:$12 sps:$4 sm:$0xff]  }
   0xf   :  { %2415 = vmatpush1.bf16.msra.mxu0 %v5143_v14  ;;  %v5181_v40 = vld [vmem:[%s8681_s1 + $0x13c] ss:$12 sps:$4 sm:$0xff]   ;;  %v5187_v44 = vld [vmem:[%s8681_s1 + $0x124] ss:$12 sps:$4 sm:$0xff]   ;;  %v5191_v50 = vld [vmem:[%s8681_s1 + $0x120] ss:$12 sps:$4 sm:$0xff]  }
  0x10   :  { %2576 = vmatpush1.bf16.msra.mxu1 %v5144_v15  ;;  %2416 = vmatprep.subr.bf16.mxu0 %v5145_v16  ;;  %v5183_v41 = vld [vmem:[%s8681_s1 + $0x2bc] ss:$12 sps:$4 sm:$0xff]   ;;  %v5189_v45 = vld [vmem:[%s8681_s1 + $0x2a4] ss:$12 sps:$4 sm:$0xff]   ;;  %v5192_v51 = vld [vmem:[%s8681_s1 + $0x2a0] ss:$12 sps:$4 sm:$0xff]  }
  0x11   :  { %2577 = vmatprep.subr.bf16.mxu1 %v5147_v17  ;;  %v16_v46 = vld [vmem:[%s8682_s0 + $0x8] sm:$0xff]  ;;  %v18_v48 = vld [vmem:[%s8682_s0 + $0x18] sm:$0xff]  ;;  %v5199_v58 = vld [vmem:[%s8681_s1 + $0xf4] ss:$12 sps:$4 sm:$0xff]  }
  0x12   :  { %v28_v47 = vld [vmem:[%s8682_s0 + $0x68] sm:$0xff]  ;;  %v30_v49 = vld [vmem:[%s8682_s0 + $0x78] sm:$0xff]  ;;  %v5201_v59 = vld [vmem:[%s8681_s1 + $0x274] ss:$12 sps:$4 sm:$0xff]  }
  0x13   :  { %2417 = vmatpush1.bf16.msra.mxu0 %v5149_v18  ;;  %v5193_v52 = vld [vmem:[%s8681_s1 + $0x10c] ss:$12 sps:$4 sm:$0xff]   ;;  %v5685_v53 = vpack.c.bf16 %v28_v47, %v16_v46  ;;  %v5687_v54 = vpack.c.bf16 %v30_v49, %v18_v48  ;;  %v5197_v56 = vld [vmem:[%s8681_s1 + $0x108] ss:$12 sps:$4 sm:$0xff]   ;;  %v5203_v60 = vld [vmem:[%s8681_s1 + $0xf0] ss:$12 sps:$4 sm:$0xff]  }
  0x14   :  { %2578 = vmatpush1.bf16.msra.mxu1 %v5150_v19  ;;  %2418 = vmatprep.subr.bf16.mxu0 %v5151_v20  ;;  %v5195_v55 = vld [vmem:[%s8681_s1 + $0x28c] ss:$12 sps:$4 sm:$0xff]   ;;  %v5198_v57 = vld [vmem:[%s8681_s1 + $0x288] ss:$12 sps:$4 sm:$0xff]   ;;  %v5204_v61 = vld [vmem:[%s8681_s1 + $0x270] ss:$12 sps:$4 sm:$0xff]  }
  0x15   :  { %2579 = vmatprep.subr.bf16.mxu1 %v5153_v21  ;;  %2440 = vmatprep.mubr.bf16.mxu0 %v5685_v53  ;;  %v5205_v62 = vld [vmem:[%s8681_s1 + $0xdc] ss:$12 sps:$4 sm:$0xff]   ;;  %v5209_v0 = vld [vmem:[%s8681_s1 + $0xd8] ss:$12 sps:$4 sm:$0xff]   ;;  %v5215_v4 = vld [vmem:[%s8681_s1 + $0xc0] ss:$12 sps:$4 sm:$0xff]  }
  0x16   :  { %2601 = vmatprep.mubr.bf16.mxu1 %v5687_v54  ;;  %v5207_v63 = vld [vmem:[%s8681_s1 + $0x25c] ss:$12 sps:$4 sm:$0xff]   ;;  %v5210_v1 = vld [vmem:[%s8681_s1 + $0x258] ss:$12 sps:$4 sm:$0xff]   ;;  %v5216_v5 = vld [vmem:[%s8681_s1 + $0x240] ss:$12 sps:$4 sm:$0xff]  }
  0x17   :  { %2419 = vmatpush1.bf16.msra.mxu0 %v5155_v22  ;;  %v5211_v2 = vld [vmem:[%s8681_s1 + $0xc4] ss:$12 sps:$4 sm:$0xff]   ;;  %v5219_v10 = vld [vmem:[%s8681_s1 + $0x3ac] ss:$12 sps:$4 sm:$0xff]   ;;  %v5217_v18 = vld [vmem:[%s8681_s1 + $0x3a8] ss:$12 sps:$4 sm:$0xff]  }
  0x18   :  { %2580 = vmatpush1.bf16.msra.mxu1 %v5156_v23  ;;  %2420 = vmatprep.subr.bf16.mxu0 %v5157_v24  ;;  %v5213_v3 = vld [vmem:[%s8681_s1 + $0x244] ss:$12 sps:$4 sm:$0xff]   ;;  %v5222_v11 = vld [vmem:[%s8681_s1 + $0x52c] ss:$12 sps:$4 sm:$0xff]   ;;  %v5220_v19 = vld [vmem:[%s8681_s1 + $0x528] ss:$12 sps:$4 sm:$0xff]  }
  0x19   :  { %2581 = vmatprep.subr.bf16.mxu1 %v5159_v25  ;;  %v15_v6 = vld [vmem:[%s8682_s0] sm:$0xff]  ;;  %v17_v8 = vld [vmem:[%s8682_s0 + $0x10] sm:$0xff]  ;;  %v40_v12 = vld [vmem:[%s8682_s0 + $0xc8] sm:$0xff] }
  0x1a   :  { %v27_v7 = vld [vmem:[%s8682_s0 + $0x60] sm:$0xff]  ;;  %v29_v9 = vld [vmem:[%s8682_s0 + $0x70] sm:$0xff]  ;;  %v52_v13 = vld [vmem:[%s8682_s0 + $0x128] sm:$0xff] }
  0x1b   :  { %2421 = vmatpush1.bf16.msra.mxu0 %v5161_v26  ;;  %v42_v14 = vld [vmem:[%s8682_s0 + $0xd8] sm:$0xff]  ;;  %v5766_v16 = vpack.c.bf16 %v27_v7, %v15_v6  ;;  %v5768_v17 = vpack.c.bf16 %v29_v9, %v17_v8  ;;  %v5776_v20 = vpack.c.bf16 %v52_v13, %v40_v12  ;;  %v5225_v22 = vld [vmem:[%s8681_s1 + $0x394] ss:$12 sps:$4 sm:$0xff]   ;;  %v5237_v47 = vld [vmem:[%s8681_s1 + $0x364] ss:$12 sps:$4 sm:$0xff]  }
  0x1c   :  { %2582 = vmatpush1.bf16.msra.mxu1 %v5162_v27  ;;  %2422 = vmatprep.subr.bf16.mxu0 %v5163_v28  ;;  %v54_v15 = vld [vmem:[%s8682_s0 + $0x138] sm:$0xff]  ;;  %v39_v24 = vld [vmem:[%s8682_s0 + $0xc0] sm:$0xff]  ;;  %v41_v27 = vld [vmem:[%s8682_s0 + $0xd0] sm:$0xff] }
  0x1d   :  { %2583 = vmatprep.subr.bf16.mxu1 %v5165_v29  ;;  %v5778_v21 = vpack.c.bf16 %v54_v15, %v42_v14  ;;  %v5223_v23 = vld [vmem:[%s8681_s1 + $0x390] ss:$12 sps:$4 sm:$0xff]   ;;  %v51_v25 = vld [vmem:[%s8682_s0 + $0x120] sm:$0xff]  ;;  %v112_v6 = vld [vmem:[%s8682_s0 + $0x308] sm:$0xff] }
  0x1e   :  { %v5228_v26 = vld [vmem:[%s8681_s1 + $0x514] ss:$12 sps:$4 sm:$0xff]   ;;  %v5226_v29 = vld [vmem:[%s8681_s1 + $0x510] ss:$12 sps:$4 sm:$0xff]   ;;  %v124_v7 = vld [vmem:[%s8682_s0 + $0x368] sm:$0xff] }
  0x1f   :  { %2423 = vmatpush1.bf16.msra.mxu0 %v5167_v30  ;;  %v53_v28 = vld [vmem:[%s8682_s0 + $0x130] sm:$0xff]  ;;  %v5231_v30 = vld [vmem:[%s8681_s1 + $0x37c] ss:$12 sps:$4 sm:$0xff]   ;;  %v5235_v46 = vld [vmem:[%s8681_s1 + $0x360] ss:$12 sps:$4 sm:$0xff]  }
  0x20   :  { %2584 = vmatpush1.bf16.msra.mxu1 %v5168_v31  ;;  %2424 = vmatprep.subr.bf16.mxu0 %v5169_v32  ;;  %v64_v31 = vld [vmem:[%s8682_s0 + $0x188] sm:$0xff]  ;;  %v5240_v48 = vld [vmem:[%s8681_s1 + $0x4e4] ss:$12 sps:$4 sm:$0xff]   ;;  %v114_v8 = vld [vmem:[%s8682_s0 + $0x318] sm:$0xff] }
  0x21   :  { %2585 = vmatprep.subr.bf16.mxu1 %v5171_v33  ;;  %v76_v32 = vld [vmem:[%s8682_s0 + $0x1e8] sm:$0xff]  ;;  %v126_v9 = vld [vmem:[%s8682_s0 + $0x378] sm:$0xff] }
  0x22   :  { %v5234_v33 = vld [vmem:[%s8681_s1 + $0x4fc] ss:$12 sps:$4 sm:$0xff]   ;;  %v5238_v49 = vld [vmem:[%s8681_s1 + $0x4e0] ss:$12 sps:$4 sm:$0xff]  }
  0x23   :  { %2425 = vmatpush2.bf16.msra.mxu0 %v5173_v34  ;;  %v66_v34 = vld [vmem:[%s8682_s0 + $0x198] sm:$0xff] }
  0x24   :  { %2586 = vmatpush2.bf16.msra.mxu1 %v5174_v35  ;;  %2426 = vmatprep.subr.bf16.mxu0 %v5175_v36  ;;  %v78_v35 = vld [vmem:[%s8682_s0 + $0x1f8] sm:$0xff]  ;;  %v5826_v36 = vpack.c.bf16 %v51_v25, %v39_v24  ;;  %v111_v24 = vld [vmem:[%s8682_s0 + $0x300] sm:$0xff] }
  0x25   :  { %2587 = vmatprep.subr.bf16.mxu1 %v5177_v37  ;;  %v5828_v37 = vpack.c.bf16 %v53_v28, %v41_v27  ;;  %v5255_v12 = vld [vmem:[%s8681_s1 + $0x31c] ss:$12 sps:$4 sm:$0xff]   ;;  %v123_v25 = vld [vmem:[%s8682_s0 + $0x360] sm:$0xff] }
  0x26   :  { %v5258_v13 = vld [vmem:[%s8681_s1 + $0x49c] ss:$12 sps:$4 sm:$0xff]   ;;  %v5261_v27 = vld [vmem:[%s8681_s1 + $0x304] ss:$12 sps:$4 sm:$0xff]  }
  0x27   :  { %2427 = vmatpush2.bf16.msra.mxu0 %v5179_v38  ;;  %v5229_v38 = vld [vmem:[%s8681_s1 + $0x378] ss:$12 sps:$4 sm:$0xff]  }
  0x28   :  { %2588 = vmatpush2.bf16.msra.mxu1 %v5180_v39  ;;  %2428 = vmatprep.subr.bf16.mxu0 %v5181_v40  ;;  %v5833_v39 = vpack.c.bf16 %v76_v32, %v64_v31  ;;  %v5835_v40 = vpack.c.bf16 %v78_v35, %v66_v34  ;;  %v5264_v28 = vld [vmem:[%s8681_s1 + $0x484] ss:$12 sps:$4 sm:$0xff]   ;;  %v148_v31 = vld [vmem:[%s8682_s0 + $0x428] sm:$0xff]  ;;  %v138_v32 = vld [vmem:[%s8682_s0 + $0x3d8] sm:$0xff] }
  0x29   :  { %2589 = vmatprep.subr.bf16.mxu1 %v5183_v41  ;;  %v5232_v41 = vld [vmem:[%s8681_s1 + $0x4f8] ss:$12 sps:$4 sm:$0xff]   ;;  %v5259_v34 = vld [vmem:[%s8681_s1 + $0x300] ss:$12 sps:$4 sm:$0xff]  }
  0x2a   :  { %v5262_v35 = vld [vmem:[%s8681_s1 + $0x480] ss:$12 sps:$4 sm:$0xff]  }
  0x2b   :  { %2429 = vmatpush2.bf16.msra.mxu0 %v5185_v42  ;;  %v63_v42 = vld [vmem:[%s8682_s0 + $0x180] sm:$0xff] }
  0x2c   :  { %2590 = vmatpush2.bf16.msra.mxu1 %v5186_v43  ;;  %2430 = vmatprep.subr.bf16.mxu0 %v5187_v44  ;;  %v75_v43 = vld [vmem:[%s8682_s0 + $0x1e0] sm:$0xff]  ;;  %v65_v44 = vld [vmem:[%s8682_s0 + $0x190] sm:$0xff] }
  0x2d   :  { %2591 = vmatprep.subr.bf16.mxu1 %v5189_v45  ;;  %v77_v45 = vld [vmem:[%s8682_s0 + $0x1f0] sm:$0xff] }
  0x2f   :  { %2431 = vmatpush2.bf16.msra.mxu0 %v5191_v50  ;;  %v88_v50 = vld [vmem:[%s8682_s0 + $0x248] sm:$0xff] }
  0x30   :  { %2592 = vmatpush2.bf16.msra.mxu1 %v5192_v51  ;;  %2432 = vmatprep.subr.bf16.mxu0 %v5193_v52  ;;  %v100_v51 = vld [vmem:[%s8682_s0 + $0x2a8] sm:$0xff]  ;;  %v90_v52 = vld [vmem:[%s8682_s0 + $0x258] sm:$0xff] }
  0x31   :  { %2593 = vmatprep.subr.bf16.mxu1 %v5195_v55  ;;  %v102_v55 = vld [vmem:[%s8682_s0 + $0x2b8] sm:$0xff] }
  0x33   :  { %2433 = vmatpush2.bf16.msra.mxu0 %v5197_v56  ;;  %v5243_v56 = vld [vmem:[%s8681_s1 + $0x34c] ss:$12 sps:$4 sm:$0xff]  }
  0x34   :  { %2594 = vmatpush2.bf16.msra.mxu1 %v5198_v57  ;;  %2434 = vmatprep.subr.bf16.mxu0 %v5199_v58  ;;  %v5246_v57 = vld [vmem:[%s8681_s1 + $0x4cc] ss:$12 sps:$4 sm:$0xff]   ;;  %v5886_v58 = vpack.c.bf16 %v75_v43, %v63_v42  ;;  %v6006_v42 = vpack.c.bf16 %v123_v25, %v111_v24 }
  0x35   :  { %2595 = vmatprep.subr.bf16.mxu1 %v5201_v59  ;;  %v5888_v59 = vpack.c.bf16 %v77_v45, %v65_v44  ;;  %v184_v24 = vld [vmem:[%s8682_s0 + $0x548] sm:$0xff] }
  0x36   :  { %8832 = vst [vmem:[#allocation6_spill] sm:$0xff] %v6006_v42  ;;  %v196_v25 = vld [vmem:[%s8682_s0 + $0x5a8] sm:$0xff] }
  0x37   :  { %2435 = vmatpush2.bf16.msra.mxu0 %v5203_v60  ;;  %v5890_v60 = vpack.c.bf16 %v100_v51, %v88_v50  ;;  %v137_v50 = vld [vmem:[%s8682_s0 + $0x3d0] sm:$0xff] }
  0x38   :  { %2596 = vmatpush2.bf16.msra.mxu1 %v5204_v61  ;;  %2436 = vmatprep.subr.bf16.mxu0 %v5205_v62  ;;  %v5892_v61 = vpack.c.bf16 %v102_v55, %v90_v52  ;;  %v5241_v62 = vld [vmem:[%s8681_s1 + $0x348] ss:$12 sps:$4 sm:$0xff]  }
  0x39   :  { %2597 = vmatprep.subr.bf16.mxu1 %v5207_v63  ;;  %v5244_v63 = vld [vmem:[%s8681_s1 + $0x4c8] ss:$12 sps:$4 sm:$0xff]  }
  0x3a   :  { %v149_v51 = vld [vmem:[%s8682_s0 + $0x430] sm:$0xff] }
  0x3b   :  { %2437 = vmatpush2.bf16.msra.mxu0 %v5209_v0  ;;  %v87_v0 = vld [vmem:[%s8682_s0 + $0x240] sm:$0xff] }
  0x3c   :  { %2598 = vmatpush2.bf16.msra.mxu1 %v5210_v1  ;;  %2438 = vmatprep.subr.bf16.mxu0 %v5211_v2  ;;  %v99_v1 = vld [vmem:[%s8682_s0 + $0x2a0] sm:$0xff]  ;;  %v89_v2 = vld [vmem:[%s8682_s0 + $0x250] sm:$0xff] }
  0x3d   :  { %2599 = vmatprep.subr.bf16.mxu1 %v5213_v3  ;;  %v101_v3 = vld [vmem:[%s8682_s0 + $0x2b0] sm:$0xff]  ;;  %v5946_v14 = vpack.c.bf16 %v99_v1, %v87_v0 }
  0x3e   :  { %v5948_v15 = vpack.c.bf16 %v101_v3, %v89_v2  ;;  %v5273_v52 = vld [vmem:[%s8681_s1 + $0x454] ss:$12 sps:$4 sm:$0xff]   ;;  %v5271_v0 = vld [vmem:[%s8681_s1 + $0x450] ss:$12 sps:$4 sm:$0xff]  }
  0x3f   :  { %2439 = vmatpush2.bf16.msra.mxu0 %v5215_v4  ;;  %v5249_v4 = vld [vmem:[%s8681_s1 + $0x334] ss:$12 sps:$4 sm:$0xff]   ;;  %8828 = vst [vmem:[#allocation2_spill] sm:$0xff] %v5946_v14  ;;  %v5274_v1 = vld [vmem:[%s8681_s1 + $0x5d0] ss:$12 sps:$4 sm:$0xff]  }
  0x40   :  { %2600 = vmatpush2.bf16.msra.mxu1 %v5216_v5  ;;  %2730 = vmatprep.subr.bf16.mxu0 %v5219_v10  ;;  %v5252_v5 = vld [vmem:[%s8681_s1 + $0x4b4] ss:$12 sps:$4 sm:$0xff]   ;;  %v5247_v10 = vld [vmem:[%s8681_s1 + $0x330] ss:$12 sps:$4 sm:$0xff]   ;;  %8829 = vst [vmem:[#allocation3_spill] sm:$0xff] %v5948_v15 }
  0x41   :  { %2891 = vmatprep.subr.bf16.mxu1 %v5222_v11  ;;  %v5250_v11 = vld [vmem:[%s8681_s1 + $0x4b0] ss:$12 sps:$4 sm:$0xff]   ;;  %v5276_v55 = vld [vmem:[%s8681_s1 + $0x5d4] ss:$12 sps:$4 sm:$0xff]  }
  0x42   :  { %2441 = vmatmul.mubr.bf16.vlgmr.msra.gmra.mxu0 %v5766_v16  ;;  %v5279_v2 = vld [vmem:[%s8681_s1 + $0x43c] ss:$12 sps:$4 sm:$0xff]  }
  0x43   :  { %2602 = vmatmul.mubr.bf16.vlgmr.msra.gmra.mxu1 %v5768_v17  ;;  %2731 = vmatpush1.bf16.msra.mxu0 %v5217_v18  ;;  %v5950_v18 = vpack.c.bf16 %v124_v7, %v112_v6  ;;  %v5282_v3 = vld [vmem:[%s8681_s1 + $0x5bc] ss:$12 sps:$4 sm:$0xff]  }
  0x44   :  { %2892 = vmatpush1.bf16.msra.mxu1 %v5220_v19  ;;  %2450 = vmatprep.mubr.bf16.mxu0 %v5776_v20  ;;  %v5952_v19 = vpack.c.bf16 %v126_v9, %v114_v8  ;;  %v5277_v8 = vld [vmem:[%s8681_s1 + $0x438] ss:$12 sps:$4 sm:$0xff]  }
  0x45   :  { %2611 = vmatprep.mubr.bf16.mxu1 %v5778_v21  ;;  %2732 = vmatprep.subr.bf16.mxu0 %v5225_v22  ;;  %8830 = vst [vmem:[#allocation4_spill] sm:$0xff] %v5950_v18  ;;  %v5253_v22 = vld [vmem:[%s8681_s1 + $0x318] ss:$12 sps:$4 sm:$0xff]  }
  0x46   :  { %2893 = vmatprep.subr.bf16.mxu1 %v5228_v26  ;;  %8831 = vst [vmem:[#allocation5_spill] sm:$0xff] %v5952_v19  ;;  %v113_v26 = vld [vmem:[%s8682_s0 + $0x310] sm:$0xff]  ;;  %v5280_v9 = vld [vmem:[%s8681_s1 + $0x5b8] ss:$12 sps:$4 sm:$0xff]  }
  0x47   :  { %2733 = vmatpush1.bf16.msra.mxu0 %v5223_v23  ;;  %v5256_v23 = vld [vmem:[%s8681_s1 + $0x498] ss:$12 sps:$4 sm:$0xff]  }
  0x48   :  { %2894 = vmatpush1.bf16.msra.mxu1 %v5226_v29  ;;  %2734 = vmatprep.subr.bf16.mxu0 %v5231_v30  ;;  %v125_v29 = vld [vmem:[%s8682_s0 + $0x370] sm:$0xff]  ;;  %v136_v30 = vld [vmem:[%s8682_s0 + $0x3c8] sm:$0xff] }
  0x49   :  { %2895 = vmatprep.subr.bf16.mxu1 %v5234_v33  ;;  %v150_v33 = vld [vmem:[%s8682_s0 + $0x438] sm:$0xff]  ;;  %v6008_v43 = vpack.c.bf16 %v125_v29, %v113_v26  ;;  %v6010_v44 = vpack.c.bf16 %v148_v31, %v136_v30  ;;  %v5286_v29 = vld [vmem:[%s8681_s1 + $0x5a0] ss:$12 sps:$4 sm:$0xff]  }
  0x4a   :  { %2451 = vmatmul.mubr.bf16.gmra.mxu0 %v5826_v36  ;;  %v6012_v45 = vpack.c.bf16 %v150_v33, %v138_v32  ;;  %v186_v26 = vld [vmem:[%s8682_s0 + $0x558] sm:$0xff] }
  0x4b   :  { %2612 = vmatmul.mubr.bf16.gmra.mxu1 %v5828_v37  ;;  %2735 = vmatpush1.bf16.msra.mxu0 %v5229_v38  ;;  %v5267_v38 = vld [vmem:[%s8681_s1 + $0x46c] ss:$12 sps:$4 sm:$0xff]   ;;  %8833 = vst [vmem:[#allocation7_spill] sm:$0xff] %v6008_v43  ;;  %8834 = vst [vmem:[#allocation8_spill] sm:$0xff] %v6010_v44 }
  0x4c   :  { %2460 = vmatprep.mubr.bf16.mxu0 %v5833_v39  ;;  %2621 = vmatprep.mubr.bf16.mxu1 %v5835_v40  ;;  %8835 = vst [vmem:[#allocation9_spill] sm:$0xff] %v6012_v45  ;;  %v5291_v30 = vld [vmem:[%s8681_s1 + $0x40c] ss:$12 sps:$4 sm:$0xff]  }
  0x4d   :  { %2896 = vmatpush1.bf16.msra.mxu1 %v5232_v41  ;;  %2736 = vmatprep.subr.bf16.mxu0 %v5237_v47  ;;  %v5270_v41 = vld [vmem:[%s8681_s1 + $0x5ec] ss:$12 sps:$4 sm:$0xff]   ;;  %v5268_v47 = vld [vmem:[%s8681_s1 + $0x5e8] ss:$12 sps:$4 sm:$0xff]  }
  0x4e   :  { %2897 = vmatprep.subr.bf16.mxu1 %v5240_v48  ;;  %v135_v48 = vld [vmem:[%s8682_s0 + $0x3c0] sm:$0xff]  ;;  %v5294_v31 = vld [vmem:[%s8681_s1 + $0x58c] ss:$12 sps:$4 sm:$0xff]  }
  0x4f   :  { %2737 = vmatpush1.bf16.msra.mxu0 %v5235_v46  ;;  %v5265_v46 = vld [vmem:[%s8681_s1 + $0x468] ss:$12 sps:$4 sm:$0xff]  }
  0x50   :  { %2738 = vmatprep.subr.bf16.mxu0 %v5243_v56  ;;  %v160_v56 = vld [vmem:[%s8682_s0 + $0x488] sm:$0xff] }
  0x51   :  { %2898 = vmatpush1.bf16.msra.mxu1 %v5238_v49  ;;  %v147_v49 = vld [vmem:[%s8682_s0 + $0x420] sm:$0xff] }
  0x52   :  { %2899 = vmatprep.subr.bf16.mxu1 %v5246_v57  ;;  %2461 = vmatmul.mubr.bf16.gmra.mxu0 %v5886_v58  ;;  %v172_v57 = vld [vmem:[%s8682_s0 + $0x4e8] sm:$0xff] }
  0x53   :  { %2622 = vmatmul.mubr.bf16.gmra.mxu1 %v5888_v59  ;;  %2470 = vmatprep.mubr.bf16.mxu0 %v5890_v60  ;;  %v6070_v6 = vpack.c.bf16 %v172_v57, %v160_v56  ;;  %v210_v56 = vld [vmem:[%s8682_s0 + $0x618] sm:$0xff] }
  0x54   :  { %2631 = vmatprep.mubr.bf16.mxu1 %v5892_v61  ;;  %2739 = vmatpush1.bf16.msra.mxu0 %v5241_v62  ;;  %v162_v62 = vld [vmem:[%s8682_s0 + $0x498] sm:$0xff] }
  0x55   :  { %2900 = vmatpush1.bf16.msra.mxu1 %v5244_v63  ;;  %2740 = vmatprep.subr.bf16.mxu0 %v5249_v4  ;;  %v174_v63 = vld [vmem:[%s8682_s0 + $0x4f8] sm:$0xff]  ;;  %v6066_v4 = vpack.c.bf16 %v147_v49, %v135_v48  ;;  %8838 = vst [vmem:[#allocation12_spill] sm:$0xff] %v6070_v6  ;;  %v185_v48 = vld [vmem:[%s8682_s0 + $0x550] sm:$0xff] }
  0x56   :  { %2901 = vmatprep.subr.bf16.mxu1 %v5252_v5  ;;  %v6068_v5 = vpack.c.bf16 %v149_v51, %v137_v50  ;;  %v6072_v7 = vpack.c.bf16 %v174_v63, %v162_v62  ;;  %v197_v49 = vld [vmem:[%s8682_s0 + $0x5b0] sm:$0xff]  ;;  %v222_v57 = vld [vmem:[%s8682_s0 + $0x678] sm:$0xff] }
  0x57   :  { %8836 = vst [vmem:[#allocation10_spill] sm:$0xff] %v6066_v4  ;;  %v5297_v50 = vld [vmem:[%s8681_s1 + $0x3f4] ss:$12 sps:$4 sm:$0xff]   ;;  %v5295_v62 = vld [vmem:[%s8681_s1 + $0x3f0] ss:$12 sps:$4 sm:$0xff]  }
  0x58   :  { %2741 = vmatpush1.bf16.msra.mxu0 %v5247_v10  ;;  %8837 = vst [vmem:[#allocation11_spill] sm:$0xff] %v6068_v5  ;;  %8839 = vst [vmem:[#allocation13_spill] sm:$0xff] %v6072_v7  ;;  %v159_v10 = vld [vmem:[%s8682_s0 + $0x480] sm:$0xff]  ;;  %v5298_v63 = vld [vmem:[%s8681_s1 + $0x570] ss:$12 sps:$4 sm:$0xff]  }
  0x59   :  { %2902 = vmatpush1.bf16.msra.mxu1 %v5250_v11  ;;  %2742 = vmatprep.subr.bf16.mxu0 %v5255_v12  ;;  %v171_v11 = vld [vmem:[%s8682_s0 + $0x4e0] sm:$0xff]  ;;  %v161_v12 = vld [vmem:[%s8682_s0 + $0x490] sm:$0xff] }
  0x5a   :  { %2903 = vmatprep.subr.bf16.mxu1 %v5258_v13  ;;  %2471 = vmatmul.mubr.bf16.gmra.mxu0 %v5946_v14  ;;  %v173_v13 = vld [vmem:[%s8682_s0 + $0x4f0] sm:$0xff]  ;;  %v6126_v32 = vpack.c.bf16 %v171_v11, %v159_v10  ;;  %v5301_v10 = vld [vmem:[%s8681_s1 + $0x3d8] ss:$12 sps:$4 sm:$0xff]  }
  0x5b   :  { %2632 = vmatmul.mubr.bf16.gmra.mxu1 %v5948_v15  ;;  %2480 = vmatprep.mubr.bf16.mxu0 %v5950_v18  ;;  %v6128_v33 = vpack.c.bf16 %v173_v13, %v161_v12  ;;  %v5300_v51 = vld [vmem:[%s8681_s1 + $0x574] ss:$12 sps:$4 sm:$0xff]   ;;  %v5304_v11 = vld [vmem:[%s8681_s1 + $0x558] ss:$12 sps:$4 sm:$0xff]  }
  0x5c   :  { %2641 = vmatprep.mubr.bf16.mxu1 %v5952_v19  ;;  %2743 = vmatpush1.bf16.msra.mxu0 %v5253_v22  ;;  %v5285_v22 = vld [vmem:[%s8681_s1 + $0x424] ss:$12 sps:$4 sm:$0xff]   ;;  %8840 = vst [vmem:[#allocation14_spill] sm:$0xff] %v6126_v32 }
  0x5d   :  { %2904 = vmatpush1.bf16.msra.mxu1 %v5256_v23  ;;  %2744 = vmatprep.subr.bf16.mxu0 %v5261_v27  ;;  %v5288_v23 = vld [vmem:[%s8681_s1 + $0x5a4] ss:$12 sps:$4 sm:$0xff]   ;;  %v198_v27 = vld [vmem:[%s8682_s0 + $0x5b8] sm:$0xff]  ;;  %8841 = vst [vmem:[#allocation15_spill] sm:$0xff] %v6128_v33 }
  0x5e   :  { %2905 = vmatprep.subr.bf16.mxu1 %v5264_v28  ;;  %v5283_v28 = vld [vmem:[%s8681_s1 + $0x420] ss:$12 sps:$4 sm:$0xff]  }
  0x5f   :  { %v207_v12 = vld [vmem:[%s8682_s0 + $0x600] sm:$0xff] }
  0x60   :  { %2745 = vmatpush1.bf16.msra.mxu0 %v5259_v34  ;;  %v6130_v34 = vpack.c.bf16 %v196_v25, %v184_v24  ;;  %v219_v13 = vld [vmem:[%s8682_s0 + $0x660] sm:$0xff] }
  0x61   :  { %2906 = vmatpush1.bf16.msra.mxu1 %v5262_v35  ;;  %2746 = vmatprep.subr.bf16.mxu0 %v5267_v38  ;;  %v6132_v35 = vpack.c.bf16 %v198_v27, %v186_v26  ;;  %v5289_v38 = vld [vmem:[%s8681_s1 + $0x408] ss:$12 sps:$4 sm:$0xff]   ;;  %v5309_v24 = vld [vmem:[%s8681_s1 + $0x3c4] ss:$12 sps:$4 sm:$0xff]  }
  0x62   :  { %2907 = vmatprep.subr.bf16.mxu1 %v5270_v41  ;;  %2481 = vmatmul.mubr.bf16.gmra.mxu0 %v6006_v42  ;;  %8842 = vst [vmem:[#allocation16_spill] sm:$0xff] %v6130_v34  ;;  %v5292_v41 = vld [vmem:[%s8681_s1 + $0x588] ss:$12 sps:$4 sm:$0xff]   ;;  %v5312_v25 = vld [vmem:[%s8681_s1 + $0x544] ss:$12 sps:$4 sm:$0xff]  }
  0x63   :  { %2642 = vmatmul.mubr.bf16.gmra.mxu1 %v6008_v43  ;;  %2490 = vmatprep.mubr.bf16.mxu0 %v6010_v44  ;;  %8843 = vst [vmem:[#allocation17_spill] sm:$0xff] %v6132_v35  ;;  %v232_v26 = vld [vmem:[%s8682_s0 + $0x6c8] sm:$0xff]  ;;  %v5441_v44 = vld [vmem:[%s8681_s1 + $0x470] ss:$12 sps:$4 sm:$0xff]  }
  0x64   :  { %2651 = vmatprep.mubr.bf16.mxu1 %v6012_v45  ;;  %2747 = vmatpush2.bf16.msra.mxu0 %v5265_v46  ;;  %v183_v46 = vld [vmem:[%s8682_s0 + $0x540] sm:$0xff]  ;;  %v244_v27 = vld [vmem:[%s8682_s0 + $0x728] sm:$0xff]  ;;  %v5443_v43 = vld [vmem:[%s8681_s1 + $0x5f0] ss:$12 sps:$4 sm:$0xff]  }
  0x65   :  { %2908 = vmatpush2.bf16.msra.mxu1 %v5268_v47  ;;  %2748 = vmatprep.subr.bf16.mxu0 %v5273_v52  ;;  %v195_v47 = vld [vmem:[%s8682_s0 + $0x5a0] sm:$0xff]  ;;  %v208_v52 = vld [vmem:[%s8682_s0 + $0x608] sm:$0xff] }
  0x66   :  { %2909 = vmatprep.subr.bf16.mxu1 %v5276_v55  ;;  %v220_v55 = vld [vmem:[%s8682_s0 + $0x668] sm:$0xff] }
  0x68   :  { %2749 = vmatpush2.bf16.msra.mxu0 %v5271_v0  ;;  %v5303_v0 = vld [vmem:[%s8681_s1 + $0x3dc] ss:$12 sps:$4 sm:$0xff]  }
  0x69   :  { %2910 = vmatpush2.bf16.msra.mxu1 %v5274_v1  ;;  %2750 = vmatprep.subr.bf16.mxu0 %v5279_v2  ;;  %v5306_v1 = vld [vmem:[%s8681_s1 + $0x55c] ss:$12 sps:$4 sm:$0xff]   ;;  %v6186_v2 = vpack.c.bf16 %v195_v47, %v183_v46  ;;  %v6246_v46 = vpack.c.bf16 %v219_v13, %v207_v12  ;;  %v255_v12 = vld [vmem:[%s8682_s0 + $0x780] sm:$0xff] }
  0x6a   :  { %2911 = vmatprep.subr.bf16.mxu1 %v5282_v3  ;;  %2491 = vmatmul.mubr.bf16.gmra.mxu0 %v6066_v4  ;;  %v6188_v3 = vpack.c.bf16 %v197_v49, %v185_v48  ;;  %v6250_v48 = vpack.c.bf16 %v244_v27, %v232_v26  ;;  %v267_v13 = vld [vmem:[%s8682_s0 + $0x7e0] sm:$0xff]  ;;  %v282_v26 = vld [vmem:[%s8682_s0 + $0x858] sm:$0xff] }
  0x6b   :  { %2652 = vmatmul.mubr.bf16.gmra.mxu1 %v6068_v5  ;;  %2500 = vmatprep.mubr.bf16.mxu0 %v6070_v6  ;;  %8844 = vst [vmem:[#allocation18_spill] sm:$0xff] %v6186_v2  ;;  %8848 = vst [vmem:[#allocation22_spill] sm:$0xff] %v6246_v46  ;;  %v294_v27 = vld [vmem:[%s8682_s0 + $0x8b8] sm:$0xff] }
  0x6c   :  { %2661 = vmatprep.mubr.bf16.mxu1 %v6072_v7  ;;  %2751 = vmatpush2.bf16.msra.mxu0 %v5277_v8  ;;  %8845 = vst [vmem:[#allocation19_spill] sm:$0xff] %v6188_v3  ;;  %v6190_v8 = vpack.c.bf16 %v220_v55, %v208_v52  ;;  %8850 = vst [vmem:[#allocation24_spill] sm:$0xff] %v6250_v48  ;;  %v233_v52 = vld [vmem:[%s8682_s0 + $0x6d0] sm:$0xff] }
  0x6d   :  { %2912 = vmatpush2.bf16.msra.mxu1 %v5280_v9  ;;  %2752 = vmatprep.subr.bf16.mxu0 %v5285_v22  ;;  %v6192_v9 = vpack.c.bf16 %v222_v57, %v210_v56  ;;  %v209_v22 = vld [vmem:[%s8682_s0 + $0x610] sm:$0xff]  ;;  %v256_v56 = vld [vmem:[%s8682_s0 + $0x788] sm:$0xff] }
  0x6e   :  { %2913 = vmatprep.subr.bf16.mxu1 %v5288_v23  ;;  %8846 = vst [vmem:[#allocation20_spill] sm:$0xff] %v6190_v8  ;;  %v221_v23 = vld [vmem:[%s8682_s0 + $0x670] sm:$0xff]  ;;  %v268_v57 = vld [vmem:[%s8682_s0 + $0x7e8] sm:$0xff] }
  0x6f   :  { %8847 = vst [vmem:[#allocation21_spill] sm:$0xff] %v6192_v9  ;;  %v6248_v47 = vpack.c.bf16 %v221_v23, %v209_v22  ;;  %v245_v55 = vld [vmem:[%s8682_s0 + $0x730] sm:$0xff] }
  0x70   :  { %2753 = vmatpush2.bf16.msra.mxu0 %v5283_v28  ;;  %v234_v28 = vld [vmem:[%s8682_s0 + $0x6d8] sm:$0xff]  ;;  %v257_v22 = vld [vmem:[%s8682_s0 + $0x790] sm:$0xff] }
  0x71   :  { %2914 = vmatpush2.bf16.msra.mxu1 %v5286_v29  ;;  %2754 = vmatprep.subr.bf16.mxu0 %v5291_v30  ;;  %v246_v29 = vld [vmem:[%s8682_s0 + $0x738] sm:$0xff]  ;;  %v5307_v30 = vld [vmem:[%s8681_s1 + $0x3c0] ss:$12 sps:$4 sm:$0xff]   ;;  %8849 = vst [vmem:[#allocation23_spill] sm:$0xff] %v6248_v47  ;;  %v269_v23 = vld [vmem:[%s8682_s0 + $0x7f0] sm:$0xff] }
  0x72   :  { %2915 = vmatprep.subr.bf16.mxu1 %v5294_v31  ;;  %2501 = vmatmul.mubr.bf16.gmra.mxu0 %v6126_v32  ;;  %v5310_v31 = vld [vmem:[%s8681_s1 + $0x540] ss:$12 sps:$4 sm:$0xff]   ;;  %v6252_v49 = vpack.c.bf16 %v246_v29, %v234_v28  ;;  %v6318_v28 = vpack.c.bf16 %v267_v13, %v255_v12  ;;  %v6320_v29 = vpack.c.bf16 %v269_v23, %v257_v22  ;;  %v305_v13 = vld [vmem:[%s8682_s0 + $0x910] sm:$0xf] }
  0x73   :  { %2662 = vmatmul.mubr.bf16.gmra.mxu1 %v6128_v33  ;;  %2510 = vmatprep.mubr.bf16.mxu0 %v6130_v34  ;;  %v303_v12 = vld [vmem:[%s8682_s0 + $0x900] sm:$0xf]  ;;  %v20_v22 = vld [vmem:[%s8682_s0 + $0x28] sm:$0xff]  ;;  %v5426_v5 = vld [vmem:[%s8681_s1 + $0x50] ss:$12 sps:$4 sm:$0xff]  }
  0x74   :  { %2671 = vmatprep.mubr.bf16.mxu1 %v6132_v35  ;;  %2755 = vmatpush2.bf16.msra.mxu0 %v5289_v38  ;;  %v5315_v38 = vld [vmem:[%s8681_s1 + $0x6ac] ss:$12 sps:$4 sm:$0xff]   ;;  %8851 = vst [vmem:[#allocation25_spill] sm:$0xff] %v6252_v49  ;;  %8856 = vst [vmem:[#allocation30_spill] sm:$0xff] %v6318_v28 }
  0x75   :  { %2916 = vmatpush2.bf16.msra.mxu1 %v5292_v41  ;;  %2756 = vmatprep.subr.bf16.mxu0 %v5297_v50  ;;  %v5318_v41 = vld [vmem:[%s8681_s1 + $0x82c] ss:$12 sps:$4 sm:$0xff]   ;;  %v231_v50 = vld [vmem:[%s8682_s0 + $0x6c0] sm:$0xff]  ;;  %8857 = vst [vmem:[#allocation31_spill] sm:$0xff] %v6320_v29 }
  0x76   :  { %2917 = vmatprep.subr.bf16.mxu1 %v5300_v51  ;;  %v243_v51 = vld [vmem:[%s8682_s0 + $0x720] sm:$0xff]  ;;  %v32_v23 = vld [vmem:[%s8682_s0 + $0x88] sm:$0xff] }
  0x78   :  { %2757 = vmatpush2.bf16.msra.mxu0 %v5295_v62  ;;  %v258_v62 = vld [vmem:[%s8682_s0 + $0x798] sm:$0xff] }
  0x79   :  { %2918 = vmatpush2.bf16.msra.mxu1 %v5298_v63  ;;  %2758 = vmatprep.subr.bf16.mxu0 %v5303_v0  ;;  %v270_v63 = vld [vmem:[%s8682_s0 + $0x7f8] sm:$0xff]  ;;  %v6282_v0 = vpack.c.bf16 %v243_v51, %v231_v50  ;;  %v281_v50 = vld [vmem:[%s8682_s0 + $0x850] sm:$0xff] }
  0x7a   :  { %2919 = vmatprep.subr.bf16.mxu1 %v5306_v1  ;;  %2511 = vmatmul.mubr.bf16.gmra.mxu0 %v6186_v2  ;;  %v6284_v1 = vpack.c.bf16 %v245_v55, %v233_v52  ;;  %v293_v51 = vld [vmem:[%s8682_s0 + $0x8b0] sm:$0xff]  ;;  %v304_v52 = vld [vmem:[%s8682_s0 + $0x908] sm:$0xf]  ;;  %v306_v55 = vld [vmem:[%s8682_s0 + $0x918] sm:$0xf] }
  0x7b   :  { %2672 = vmatmul.mubr.bf16.gmra.mxu1 %v6188_v3  ;;  %2520 = vmatprep.mubr.bf16.mxu0 %v6190_v8  ;;  %8852 = vst [vmem:[#allocation26_spill] sm:$0xff] %v6282_v0  ;;  %v5417_v8 = vld [vmem:[%s8681_s1 + $0x140] ss:$12 sps:$4 sm:$0xff]  }
  0x7c   :  { %2681 = vmatprep.mubr.bf16.mxu1 %v6192_v9  ;;  %2759 = vmatpush2.bf16.msra.mxu0 %v5301_v10  ;;  %8853 = vst [vmem:[#allocation27_spill] sm:$0xff] %v6284_v1  ;;  %v6286_v10 = vpack.c.bf16 %v268_v57, %v256_v56  ;;  %v6350_v57 = vpack.c.bf16 %v293_v51, %v281_v50  ;;  %v19_v50 = vld [vmem:[%s8682_s0 + $0x20] sm:$0xff]  ;;  %v86_v9 = vld [vmem:[%s8682_s0 + $0x238] sm:$0xff] }
  0x7d   :  { %2920 = vmatpush2.bf16.msra.mxu1 %v5304_v11  ;;  %2760 = vmatprep.subr.bf16.mxu0 %v5309_v24  ;;  %v6288_v11 = vpack.c.bf16 %v270_v63, %v258_v62  ;;  %v280_v24 = vld [vmem:[%s8682_s0 + $0x848] sm:$0xff]  ;;  %v6352_v62 = vpack.c.bf16 %v304_v52, %v304_v52  ;;  %v6354_v63 = vpack.c.bf16 %v306_v55, %v306_v55  ;;  %v31_v51 = vld [vmem:[%s8682_s0 + $0x80] sm:$0xff]  ;;  %v21_v52 = vld [vmem:[%s8682_s0 + $0x30] sm:$0xff] }
  0x7e   :  { %2921 = vmatprep.subr.bf16.mxu1 %v5312_v25  ;;  %8854 = vst [vmem:[#allocation28_spill] sm:$0xff] %v6286_v10  ;;  %v292_v25 = vld [vmem:[%s8682_s0 + $0x8a8] sm:$0xff]  ;;  %8861 = vst [vmem:[#allocation35_spill] sm:$0xff] %v6350_v57  ;;  %v33_v55 = vld [vmem:[%s8682_s0 + $0x90] sm:$0xff] }
  0x7f   :  { %8855 = vst [vmem:[#allocation29_spill] sm:$0xff] %v6288_v11  ;;  %8862 = vst [vmem:[#allocation36_spill] sm:$0xff] %v6352_v62  ;;  %v5419_v3 = vld [vmem:[%s8681_s1 + $0x2c0] ss:$12 sps:$4 sm:$0xff]  }
  0x80   :  { %2761 = vmatpush2.bf16.msra.mxu0 %v5307_v30  ;;  %v6322_v30 = vpack.c.bf16 %v292_v25, %v280_v24  ;;  %8863 = vst [vmem:[#allocation37_spill] sm:$0xff] %v6354_v63  ;;  %v22_v24 = vld [vmem:[%s8682_s0 + $0x38] sm:$0xff] }
  0x81   :  { %2922 = vmatpush2.bf16.msra.mxu1 %v5310_v31  ;;  %3052 = vmatprep.subr.bf16.mxu0 %v5315_v38  ;;  %v6324_v31 = vpack.c.bf16 %v294_v27, %v282_v26  ;;  %v279_v38 = vld [vmem:[%s8682_s0 + $0x840] sm:$0xff]  ;;  %v34_v25 = vld [vmem:[%s8682_s0 + $0x98] sm:$0xff]  ;;  %v6378_v26 = vpack.c.bf16 %v303_v12, %v303_v12  ;;  %v6380_v27 = vpack.c.bf16 %v305_v13, %v305_v13  ;;  %v44_v12 = vld [vmem:[%s8682_s0 + $0xe8] sm:$0xff] }
  0x82   :  { %3213 = vmatprep.subr.bf16.mxu1 %v5318_v41  ;;  %2521 = vmatmul.mubr.bf16.gmra.mxu0 %v6246_v46  ;;  %8858 = vst [vmem:[#allocation32_spill] sm:$0xff] %v6322_v30  ;;  %v291_v41 = vld [vmem:[%s8682_s0 + $0x8a0] sm:$0xff]  ;;  %v56_v13 = vld [vmem:[%s8682_s0 + $0x148] sm:$0xff] }
  0x83   :  { %2682 = vmatmul.mubr.bf16.gmra.mxu1 %v6248_v47  ;;  %2530 = vmatprep.mubr.bf16.mxu0 %v6250_v48  ;;  %8859 = vst [vmem:[#allocation33_spill] sm:$0xff] %v6324_v31  ;;  %v6348_v56 = vpack.c.bf16 %v291_v41, %v279_v38  ;;  %8864 = vst [vmem:[#allocation38_spill] sm:$0xff] %v6378_v26  ;;  %v6382_v38 = vpack.c.bf16 %v32_v23, %v20_v22  ;;  %v46_v22 = vld [vmem:[%s8682_s0 + $0xf8] sm:$0xff] }
  0x84   :  { %2691 = vmatprep.mubr.bf16.mxu1 %v6252_v49  ;;  %8865 = vst [vmem:[#allocation39_spill] sm:$0xff] %v6380_v27  ;;  %v6384_v41 = vpack.c.bf16 %v34_v25, %v22_v24  ;;  %v58_v23 = vld [vmem:[%s8682_s0 + $0x158] sm:$0xff]  ;;  %v6414_v24 = vpack.c.bf16 %v31_v51, %v19_v50  ;;  %v6416_v25 = vpack.c.bf16 %v33_v55, %v21_v52  ;;  %v43_v51 = vld [vmem:[%s8682_s0 + $0xe0] sm:$0xff] }
  0x85   :  { %8860 = vst [vmem:[#allocation34_spill] sm:$0xff] %v6348_v56  ;;  %8866 = vst [vmem:[#allocation40_spill] sm:$0xff] %v6382_v38  ;;  %v5319_v50 = vld [vmem:[%s8681_s1 + $0x690] ss:$12 sps:$4 sm:$0xff]   ;;  %v5324_v52 = vld [vmem:[%s8681_s1 + $0x814] ss:$12 sps:$4 sm:$0xff]  }
  0x86   :  { %8867 = vst [vmem:[#allocation41_spill] sm:$0xff] %v6384_v41  ;;  %8868 = vst [vmem:[#allocation42_spill] sm:$0xff] %v6414_v24  ;;  %v55_v55 = vld [vmem:[%s8682_s0 + $0x140] sm:$0xff] }
  0x87   :  { %8869 = vst [vmem:[#allocation43_spill] sm:$0xff] %v6416_v25  ;;  %v5415_v49 = vld [vmem:[%s8681_s1 + $0x2d8] ss:$12 sps:$4 sm:$0xff]  }
  0x8a   :  { %2531 = vmatmul.mubr.bf16.gmra.mxu0 %v6282_v0  ;;  %v5413_v0 = vld [vmem:[%s8681_s1 + $0x158] ss:$12 sps:$4 sm:$0xff]  }
  0x8b   :  { %2692 = vmatmul.mubr.bf16.gmra.mxu1 %v6284_v1  ;;  %2540 = vmatprep.mubr.bf16.mxu0 %v6286_v10 }
  0x8c   :  { %2701 = vmatprep.mubr.bf16.mxu1 %v6288_v11 }
  0x92   :  { %2541 = vmatmul.mubr.bf16.gmra.mxu0 %v6318_v28 }
  0x93   :  { %2702 = vmatmul.mubr.bf16.gmra.mxu1 %v6320_v29  ;;  %2550 = vmatprep.mubr.bf16.mxu0 %v6322_v30 }
  0x94   :  { %2711 = vmatprep.mubr.bf16.mxu1 %v6324_v31 }
  0x9a   :  { %2551 = vmatmul.mubr.bf16.gmra.mxu0 %v6348_v56  ;;  %v5328_v56 = vld [vmem:[%s8681_s1 + $0x7f8] ss:$12 sps:$4 sm:$0xff]  }
  0x9b   :  { %2712 = vmatmul.mubr.bf16.gmra.mxu1 %v6350_v57  ;;  %2560 = vmatprep.mubr.bf16.mxu0 %v6352_v62  ;;  %v5325_v57 = vld [vmem:[%s8681_s1 + $0x678] ss:$12 sps:$4 sm:$0xff]  }
  0x9c   :  { %2721 = vmatprep.mubr.bf16.mxu1 %v6354_v63  ;;  %v5321_v63 = vld [vmem:[%s8681_s1 + $0x694] ss:$12 sps:$4 sm:$0xff]  }
  0xa2   :  { %2561 = vmatmul.mubr.bf16.gmra.mxu0 %v6378_v26  ;;  %v6426_v26 = vpack.c.bf16 %v58_v23, %v46_v22  ;;  %v5322_v22 = vld [vmem:[%s8681_s1 + $0x810] ss:$12 sps:$4 sm:$0xff]  }
  0xa3   :  { %2722 = vmatmul.mubr.bf16.gmra.mxu1 %v6380_v27  ;;  %2762 = vmatprep.mubr.bf16.mxu0 %v6382_v38  ;;  %v5316_v38 = vld [vmem:[%s8681_s1 + $0x828] ss:$12 sps:$4 sm:$0xff]   ;;  %v6424_v27 = vpack.c.bf16 %v56_v13, %v44_v12 }
  0xa4   :  { %2923 = vmatprep.mubr.bf16.mxu1 %v6384_v41  ;;  %v5313_v41 = vld [vmem:[%s8681_s1 + $0x6a8] ss:$12 sps:$4 sm:$0xff]   ;;  %8871 = vst [vmem:[#allocation45_spill] sm:$0xff] %v6426_v26 }
  0xa5   :  { %8870 = vst [vmem:[#allocation44_spill] sm:$0xff] %v6424_v27  ;;  %v45_v12 = vld [vmem:[%s8682_s0 + $0xf0] sm:$0xff]  ;;  %v5327_v23 = vld [vmem:[%s8681_s1 + $0x67c] ss:$12 sps:$4 sm:$0xff]  }
  0xa6   :  { %v57_v13 = vld [vmem:[%s8682_s0 + $0x150] sm:$0xff] }
  0xa7   :  { %v6476_v62 = vpack.c.bf16 %v57_v13, %v45_v12  ;;  %v5331_v12 = vld [vmem:[%s8681_s1 + $0x660] ss:$12 sps:$4 sm:$0xff]  }
  0xa8   :  { %v5334_v13 = vld [vmem:[%s8681_s1 + $0x7e0] ss:$12 sps:$4 sm:$0xff]  }
  0xa9   :  { %8873 = vst [vmem:[#allocation47_spill] sm:$0xff] %v6476_v62 }
  0xaa   :  { %2763 = vmatmul.mubr.bf16.vlgmr.msra.gmra.mxu0 %v6414_v24  ;;  %v6474_v24 = vpack.c.bf16 %v55_v55, %v43_v51  ;;  %v67_v51 = vld [vmem:[%s8682_s0 + $0x1a0] sm:$0xff]  ;;  %v69_v55 = vld [vmem:[%s8682_s0 + $0x1b0] sm:$0xff] }
  0xab   :  { %2924 = vmatmul.mubr.bf16.vlgmr.msra.gmra.mxu1 %v6416_v25  ;;  %3053 = vmatpush1.bf16.msra.mxu0 %v5313_v41  ;;  %v80_v41 = vld [vmem:[%s8682_s0 + $0x208] sm:$0xff] }
  0xac   :  { %3214 = vmatpush1.bf16.msra.mxu1 %v5316_v38  ;;  %2772 = vmatprep.mubr.bf16.mxu0 %v6424_v27  ;;  %v68_v38 = vld [vmem:[%s8682_s0 + $0x1a8] sm:$0xff]  ;;  %v70_v27 = vld [vmem:[%s8682_s0 + $0x1b8] sm:$0xff]  ;;  %8872 = vst [vmem:[#allocation46_spill] sm:$0xff] %v6474_v24 }
  0xad   :  { %2933 = vmatprep.mubr.bf16.mxu1 %v6426_v26  ;;  %v5330_v25 = vld [vmem:[%s8681_s1 + $0x7fc] ss:$12 sps:$4 sm:$0xff]   ;;  %3054 = vmatprep.subr.bf16.mxu0 %v5321_v63  ;;  %v6481_v63 = vpack.c.bf16 %v80_v41, %v68_v38 }
  0xae   :  { %3215 = vmatprep.subr.bf16.mxu1 %v5324_v52  ;;  %v82_v26 = vld [vmem:[%s8682_s0 + $0x218] sm:$0xff] }
  0xaf   :  { %3055 = vmatpush1.bf16.msra.mxu0 %v5319_v50  ;;  %8874 = vst [vmem:[#allocation48_spill] sm:$0xff] %v6481_v63  ;;  %v6483_v52 = vpack.c.bf16 %v82_v26, %v70_v27  ;;  %v79_v50 = vld [vmem:[%s8682_s0 + $0x200] sm:$0xff]  ;;  %v81_v26 = vld [vmem:[%s8682_s0 + $0x210] sm:$0xff]  ;;  %v94_v38 = vld [vmem:[%s8682_s0 + $0x278] sm:$0xff] }
  0xb0   :  { %3216 = vmatpush1.bf16.msra.mxu1 %v5322_v22  ;;  %3056 = vmatprep.subr.bf16.mxu0 %v5327_v23  ;;  %v5333_v27 = vld [vmem:[%s8681_s1 + $0x664] ss:$12 sps:$4 sm:$0xff]   ;;  %v92_v22 = vld [vmem:[%s8682_s0 + $0x268] sm:$0xff]  ;;  %v106_v41 = vld [vmem:[%s8682_s0 + $0x2d8] sm:$0xff] }
  0xb1   :  { %8875 = vst [vmem:[#allocation49_spill] sm:$0xff] %v6483_v52  ;;  %3217 = vmatprep.subr.bf16.mxu1 %v5330_v25  ;;  %v5336_v25 = vld [vmem:[%s8681_s1 + $0x7e4] ss:$12 sps:$4 sm:$0xff]   ;;  %v104_v23 = vld [vmem:[%s8682_s0 + $0x2c8] sm:$0xff]  ;;  %v6540_v30 = vpack.c.bf16 %v106_v41, %v94_v38 }
  0xb2   :  { %2773 = vmatmul.mubr.bf16.gmra.mxu0 %v6474_v24  ;;  %v6536_v24 = vpack.c.bf16 %v81_v26, %v69_v55  ;;  %v6538_v31 = vpack.c.bf16 %v104_v23, %v92_v22  ;;  %v93_v55 = vld [vmem:[%s8682_s0 + $0x270] sm:$0xff]  ;;  %v118_v22 = vld [vmem:[%s8682_s0 + $0x338] sm:$0xff] }
  0xb3   :  { %2934 = vmatmul.mubr.bf16.gmra.mxu1 %v6476_v62  ;;  %3057 = vmatpush1.bf16.msra.mxu0 %v5325_v57  ;;  %v5339_v57 = vld [vmem:[%s8681_s1 + $0x64c] ss:$12 sps:$4 sm:$0xff]   ;;  %v6534_v62 = vpack.c.bf16 %v79_v50, %v67_v51  ;;  %8879 = vst [vmem:[#allocation53_spill] sm:$0xff] %v6540_v30  ;;  %v91_v51 = vld [vmem:[%s8682_s0 + $0x260] sm:$0xff]  ;;  %v105_v26 = vld [vmem:[%s8682_s0 + $0x2d0] sm:$0xff] }
  0xb4   :  { %2782 = vmatprep.mubr.bf16.mxu0 %v6481_v63  ;;  %2943 = vmatprep.mubr.bf16.mxu1 %v6483_v52  ;;  %v5342_v63 = vld [vmem:[%s8681_s1 + $0x7cc] ss:$12 sps:$4 sm:$0xff]   ;;  %8877 = vst [vmem:[#allocation51_spill] sm:$0xff] %v6536_v24  ;;  %8878 = vst [vmem:[#allocation52_spill] sm:$0xff] %v6538_v31  ;;  %v103_v50 = vld [vmem:[%s8682_s0 + $0x2c0] sm:$0xff] }
  0xb5   :  { %3218 = vmatpush1.bf16.msra.mxu1 %v5328_v56  ;;  %3058 = vmatprep.subr.bf16.mxu0 %v5333_v27  ;;  %8876 = vst [vmem:[#allocation50_spill] sm:$0xff] %v6534_v62  ;;  %v5337_v56 = vld [vmem:[%s8681_s1 + $0x648] ss:$12 sps:$4 sm:$0xff]   ;;  %v130_v23 = vld [vmem:[%s8682_s0 + $0x398] sm:$0xff] }
  0xb6   :  { %3219 = vmatprep.subr.bf16.mxu1 %v5336_v25  ;;  %v5340_v27 = vld [vmem:[%s8681_s1 + $0x7c8] ss:$12 sps:$4 sm:$0xff]   ;;  %v5343_v38 = vld [vmem:[%s8681_s1 + $0x630] ss:$12 sps:$4 sm:$0xff]  }
  0xb7   :  { %3059 = vmatpush1.bf16.msra.mxu0 %v5331_v12  ;;  %v5345_v25 = vld [vmem:[%s8681_s1 + $0x634] ss:$12 sps:$4 sm:$0xff]   ;;  %v5346_v41 = vld [vmem:[%s8681_s1 + $0x7b0] ss:$12 sps:$4 sm:$0xff]  }
  0xb8   :  { %3060 = vmatprep.subr.bf16.mxu0 %v5339_v57  ;;  %v5348_v12 = vld [vmem:[%s8681_s1 + $0x7b4] ss:$12 sps:$4 sm:$0xff]   ;;  %v5351_v57 = vld [vmem:[%s8681_s1 + $0x61c] ss:$12 sps:$4 sm:$0xff]  }
  0xb9   :  { %3220 = vmatpush1.bf16.msra.mxu1 %v5334_v13  ;;  %v116_v13 = vld [vmem:[%s8682_s0 + $0x328] sm:$0xff] }
  0xba   :  { %3221 = vmatprep.subr.bf16.mxu1 %v5342_v63  ;;  %2783 = vmatmul.mubr.bf16.gmra.mxu0 %v6534_v62  ;;  %v128_v63 = vld [vmem:[%s8682_s0 + $0x388] sm:$0xff] }
  0xbb   :  { %2944 = vmatmul.mubr.bf16.gmra.mxu1 %v6536_v24  ;;  %2792 = vmatprep.mubr.bf16.mxu0 %v6538_v31  ;;  %v6598_v31 = vpack.c.bf16 %v128_v63, %v116_v13  ;;  %v6600_v24 = vpack.c.bf16 %v130_v23, %v118_v22  ;;  %v5360_v13 = vld [vmem:[%s8681_s1 + $0x784] ss:$12 sps:$4 sm:$0xff]   ;;  %v152_v22 = vld [vmem:[%s8682_s0 + $0x448] sm:$0xff]  ;;  %v142_v23 = vld [vmem:[%s8682_s0 + $0x3f8] sm:$0xff] }
  0xbc   :  { %2953 = vmatprep.mubr.bf16.mxu1 %v6540_v30  ;;  %3061 = vmatpush1.bf16.msra.mxu0 %v5337_v56  ;;  %v5354_v30 = vld [vmem:[%s8681_s1 + $0x79c] ss:$12 sps:$4 sm:$0xff]   ;;  %v6594_v56 = vpack.c.bf16 %v103_v50, %v91_v51  ;;  %v115_v51 = vld [vmem:[%s8682_s0 + $0x320] sm:$0xff]  ;;  %v129_v63 = vld [vmem:[%s8682_s0 + $0x390] sm:$0xff] }
  0xbd   :  { %3222 = vmatpush1.bf16.msra.mxu1 %v5340_v27  ;;  %3062 = vmatprep.subr.bf16.mxu0 %v5345_v25  ;;  %v6596_v27 = vpack.c.bf16 %v105_v26, %v93_v55  ;;  %8882 = vst [vmem:[#allocation56_spill] sm:$0xff] %v6598_v31  ;;  %8883 = vst [vmem:[#allocation57_spill] sm:$0xff] %v6600_v24  ;;  %v5349_v25 = vld [vmem:[%s8681_s1 + $0x618] ss:$12 sps:$4 sm:$0xff]   ;;  %v117_v55 = vld [vmem:[%s8682_s0 + $0x330] sm:$0xff] }
  0xbe   :  { %3223 = vmatprep.subr.bf16.mxu1 %v5348_v12  ;;  %8880 = vst [vmem:[#allocation54_spill] sm:$0xff] %v6594_v56  ;;  %v5352_v12 = vld [vmem:[%s8681_s1 + $0x798] ss:$12 sps:$4 sm:$0xff]   ;;  %v5361_v62 = vld [vmem:[%s8681_s1 + $0x768] ss:$12 sps:$4 sm:$0xff]  }
  0xbf   :  { %8881 = vst [vmem:[#allocation55_spill] sm:$0xff] %v6596_v27  ;;  %v127_v50 = vld [vmem:[%s8682_s0 + $0x380] sm:$0xff] }
  0xc0   :  { %3063 = vmatpush1.bf16.msra.mxu0 %v5343_v38  ;;  %v5357_v26 = vld [vmem:[%s8681_s1 + $0x604] ss:$12 sps:$4 sm:$0xff]   ;;  %v154_v38 = vld [vmem:[%s8682_s0 + $0x458] sm:$0xff] }
  0xc1   :  { %3224 = vmatpush1.bf16.msra.mxu1 %v5346_v41  ;;  %3064 = vmatprep.subr.bf16.mxu0 %v5351_v57  ;;  %v5355_v41 = vld [vmem:[%s8681_s1 + $0x600] ss:$12 sps:$4 sm:$0xff]  }
  0xc2   :  { %3225 = vmatprep.subr.bf16.mxu1 %v5354_v30  ;;  %2793 = vmatmul.mubr.bf16.gmra.mxu0 %v6594_v56  ;;  %v140_v30 = vld [vmem:[%s8682_s0 + $0x3e8] sm:$0xff]  ;;  %v6656_v56 = vpack.c.bf16 %v129_v63, %v117_v55  ;;  %v141_v55 = vld [vmem:[%s8682_s0 + $0x3f0] sm:$0xff] }
  0xc3   :  { %2954 = vmatmul.mubr.bf16.gmra.mxu1 %v6596_v27  ;;  %2802 = vmatprep.mubr.bf16.mxu0 %v6598_v31  ;;  %v5358_v57 = vld [vmem:[%s8681_s1 + $0x780] ss:$12 sps:$4 sm:$0xff]   ;;  %v6654_v27 = vpack.c.bf16 %v127_v50, %v115_v51 }
  0xc4   :  { %2963 = vmatprep.mubr.bf16.mxu1 %v6600_v24  ;;  %3065 = vmatpush1.bf16.msra.mxu0 %v5349_v25  ;;  %v5363_v24 = vld [vmem:[%s8681_s1 + $0x76c] ss:$12 sps:$4 sm:$0xff]   ;;  %8885 = vst [vmem:[#allocation59_spill] sm:$0xff] %v6656_v56  ;;  %v6658_v25 = vpack.c.bf16 %v152_v22, %v140_v30  ;;  %v139_v51 = vld [vmem:[%s8682_s0 + $0x3e0] sm:$0xff] }
  0xc5   :  { %3226 = vmatpush1.bf16.msra.mxu1 %v5352_v12  ;;  %3066 = vmatprep.subr.bf16.mxu0 %v5357_v26  ;;  %v5366_v31 = vld [vmem:[%s8681_s1 + $0x8ec] ss:$12 sps:$4 sm:$0xff]   ;;  %8884 = vst [vmem:[#allocation58_spill] sm:$0xff] %v6654_v27  ;;  %v6660_v12 = vpack.c.bf16 %v154_v38, %v142_v23  ;;  %v5364_v26 = vld [vmem:[%s8681_s1 + $0x8e8] ss:$12 sps:$4 sm:$0xff]   ;;  %v151_v50 = vld [vmem:[%s8682_s0 + $0x440] sm:$0xff] }
  0xc6   :  { %3227 = vmatprep.subr.bf16.mxu1 %v5360_v13  ;;  %8886 = vst [vmem:[#allocation60_spill] sm:$0xff] %v6658_v25  ;;  %v153_v13 = vld [vmem:[%s8682_s0 + $0x450] sm:$0xff]  ;;  %v164_v22 = vld [vmem:[%s8682_s0 + $0x4a8] sm:$0xff]  ;;  %v178_v23 = vld [vmem:[%s8682_s0 + $0x518] sm:$0xff] }
  0xc7   :  { %8887 = vst [vmem:[#allocation61_spill] sm:$0xff] %v6660_v12  ;;  %v5369_v63 = vld [vmem:[%s8681_s1 + $0x754] ss:$12 sps:$4 sm:$0xff]   ;;  %v5367_v38 = vld [vmem:[%s8681_s1 + $0x750] ss:$12 sps:$4 sm:$0xff]  }
  0xc8   :  { %3067 = vmatpush1.bf16.msra.mxu0 %v5355_v41  ;;  %v5372_v30 = vld [vmem:[%s8681_s1 + $0x8d4] ss:$12 sps:$4 sm:$0xff]   ;;  %v5370_v41 = vld [vmem:[%s8681_s1 + $0x8d0] ss:$12 sps:$4 sm:$0xff]  }
  0xc9   :  { %3228 = vmatpush1.bf16.msra.mxu1 %v5358_v57  ;;  %3068 = vmatprep.subr.bf16.mxu0 %v5363_v24  ;;  %v166_v24 = vld [vmem:[%s8682_s0 + $0x4b8] sm:$0xff] }
  0xca   :  { %3229 = vmatprep.subr.bf16.mxu1 %v5366_v31  ;;  %2803 = vmatmul.mubr.bf16.gmra.mxu0 %v6654_v27  ;;  %v176_v31 = vld [vmem:[%s8682_s0 + $0x508] sm:$0xff] }
  0xcb   :  { %2964 = vmatmul.mubr.bf16.gmra.mxu1 %v6656_v56  ;;  %2812 = vmatprep.mubr.bf16.mxu0 %v6658_v25  ;;  %v5375_v57 = vld [vmem:[%s8681_s1 + $0x73c] ss:$12 sps:$4 sm:$0xff]   ;;  %v6714_v25 = vpack.c.bf16 %v151_v50, %v139_v51  ;;  %v6716_v56 = vpack.c.bf16 %v153_v13, %v141_v55  ;;  %v5381_v51 = vld [vmem:[%s8681_s1 + $0x724] ss:$12 sps:$4 sm:$0xff]  }
  0xcc   :  { %2973 = vmatprep.mubr.bf16.mxu1 %v6660_v12  ;;  %3069 = vmatpush2.bf16.msra.mxu0 %v5361_v62  ;;  %v5378_v12 = vld [vmem:[%s8681_s1 + $0x8bc] ss:$12 sps:$4 sm:$0xff]   ;;  %v6718_v62 = vpack.c.bf16 %v176_v31, %v164_v22  ;;  %v163_v50 = vld [vmem:[%s8682_s0 + $0x4a0] sm:$0xff]  ;;  %v165_v13 = vld [vmem:[%s8682_s0 + $0x4b0] sm:$0xff] }
  0xcd   :  { %3230 = vmatpush2.bf16.msra.mxu1 %v5364_v26  ;;  %3070 = vmatprep.subr.bf16.mxu0 %v5369_v63  ;;  %8888 = vst [vmem:[#allocation62_spill] sm:$0xff] %v6714_v25  ;;  %8889 = vst [vmem:[#allocation63_spill] sm:$0xff] %v6716_v56  ;;  %v6720_v26 = vpack.c.bf16 %v178_v23, %v166_v24  ;;  %v5373_v63 = vld [vmem:[%s8681_s1 + $0x738] ss:$12 sps:$4 sm:$0xff]   ;;  %v177_v31 = vld [vmem:[%s8682_s0 + $0x510] sm:$0xff] }
  0xce   :  { %3231 = vmatprep.subr.bf16.mxu1 %v5372_v30  ;;  %8890 = vst [vmem:[#allocation64_spill] sm:$0xff] %v6718_v62  ;;  %v5376_v30 = vld [vmem:[%s8681_s1 + $0x8b8] ss:$12 sps:$4 sm:$0xff]   ;;  %v188_v24 = vld [vmem:[%s8682_s0 + $0x568] sm:$0xff] }
  0xcf   :  { %8891 = vst [vmem:[#allocation65_spill] sm:$0xff] %v6720_v26  ;;  %v175_v55 = vld [vmem:[%s8682_s0 + $0x500] sm:$0xff]  ;;  %v190_v23 = vld [vmem:[%s8682_s0 + $0x578] sm:$0xff]  ;;  %v5385_v27 = vld [vmem:[%s8681_s1 + $0x708] ss:$12 sps:$4 sm:$0xff]  }
  0xd0   :  { %3071 = vmatpush2.bf16.msra.mxu0 %v5367_v38  ;;  %v5384_v22 = vld [vmem:[%s8681_s1 + $0x8a4] ss:$12 sps:$4 sm:$0xff]   ;;  %v202_v38 = vld [vmem:[%s8682_s0 + $0x5d8] sm:$0xff] }
  0xd1   :  { %3232 = vmatpush2.bf16.msra.mxu1 %v5370_v41  ;;  %3072 = vmatprep.subr.bf16.mxu0 %v5375_v57  ;;  %v5379_v41 = vld [vmem:[%s8681_s1 + $0x720] ss:$12 sps:$4 sm:$0xff]  }
  0xd2   :  { %3233 = vmatprep.subr.bf16.mxu1 %v5378_v12  ;;  %2813 = vmatmul.mubr.bf16.gmra.mxu0 %v6714_v25  ;;  %v200_v12 = vld [vmem:[%s8682_s0 + $0x5c8] sm:$0xff]  ;;  %v6776_v25 = vpack.c.bf16 %v177_v31, %v165_v13  ;;  %v5393_v13 = vld [vmem:[%s8681_s1 + $0x6f4] ss:$12 sps:$4 sm:$0xff]  }
  0xd3   :  { %2974 = vmatmul.mubr.bf16.gmra.mxu1 %v6716_v56  ;;  %2822 = vmatprep.mubr.bf16.mxu0 %v6718_v62  ;;  %v5382_v57 = vld [vmem:[%s8681_s1 + $0x8a0] ss:$12 sps:$4 sm:$0xff]   ;;  %v6774_v56 = vpack.c.bf16 %v175_v55, %v163_v50  ;;  %v189_v31 = vld [vmem:[%s8682_s0 + $0x570] sm:$0xff] }
  0xd4   :  { %2983 = vmatprep.mubr.bf16.mxu1 %v6720_v26  ;;  %3073 = vmatpush2.bf16.msra.mxu0 %v5373_v63  ;;  %v5387_v26 = vld [vmem:[%s8681_s1 + $0x70c] ss:$12 sps:$4 sm:$0xff]   ;;  %8893 = vst [vmem:[#allocation67_spill] sm:$0xff] %v6776_v25  ;;  %v6778_v63 = vpack.c.bf16 %v200_v12, %v188_v24  ;;  %v187_v50 = vld [vmem:[%s8682_s0 + $0x560] sm:$0xff] }
  0xd5   :  { %3234 = vmatpush2.bf16.msra.mxu1 %v5376_v30  ;;  %3074 = vmatprep.subr.bf16.mxu0 %v5381_v51  ;;  %v5390_v62 = vld [vmem:[%s8681_s1 + $0x88c] ss:$12 sps:$4 sm:$0xff]   ;;  %8892 = vst [vmem:[#allocation66_spill] sm:$0xff] %v6774_v56  ;;  %v6780_v30 = vpack.c.bf16 %v202_v38, %v190_v23  ;;  %v5388_v51 = vld [vmem:[%s8681_s1 + $0x888] ss:$12 sps:$4 sm:$0xff]   ;;  %v199_v55 = vld [vmem:[%s8682_s0 + $0x5c0] sm:$0xff] }
  0xd6   :  { %3235 = vmatprep.subr.bf16.mxu1 %v5384_v22  ;;  %8894 = vst [vmem:[#allocation68_spill] sm:$0xff] %v6778_v63  ;;  %v5396_v22 = vld [vmem:[%s8681_s1 + $0x874] ss:$12 sps:$4 sm:$0xff]   ;;  %v224_v24 = vld [vmem:[%s8682_s0 + $0x688] sm:$0xff]  ;;  %v214_v12 = vld [vmem:[%s8682_s0 + $0x638] sm:$0xff] }
  0xd7   :  { %8895 = vst [vmem:[#allocation69_spill] sm:$0xff] %v6780_v30  ;;  %v226_v23 = vld [vmem:[%s8682_s0 + $0x698] sm:$0xff] }
  0xd8   :  { %3075 = vmatpush2.bf16.msra.mxu0 %v5379_v41  ;;  %v5391_v38 = vld [vmem:[%s8681_s1 + $0x6f0] ss:$12 sps:$4 sm:$0xff]  }
  0xd9   :  { %3236 = vmatpush2.bf16.msra.mxu1 %v5382_v57  ;;  %3076 = vmatprep.subr.bf16.mxu0 %v5387_v26  ;;  %v212_v26 = vld [vmem:[%s8682_s0 + $0x628] sm:$0xff]  ;;  %v5394_v41 = vld [vmem:[%s8681_s1 + $0x870] ss:$12 sps:$4 sm:$0xff]  }
  0xda   :  { %3237 = vmatprep.subr.bf16.mxu1 %v5390_v62  ;;  %2823 = vmatmul.mubr.bf16.gmra.mxu0 %v6774_v56  ;;  %v201_v62 = vld [vmem:[%s8682_s0 + $0x5d0] sm:$0xff]  ;;  %v5399_v57 = vld [vmem:[%s8681_s1 + $0x6dc] ss:$12 sps:$4 sm:$0xff]  }
  0xdb   :  { %2984 = vmatmul.mubr.bf16.gmra.mxu1 %v6776_v25  ;;  %2832 = vmatprep.mubr.bf16.mxu0 %v6778_v63  ;;  %v5397_v63 = vld [vmem:[%s8681_s1 + $0x6d8] ss:$12 sps:$4 sm:$0xff]   ;;  %v6841_v25 = vpack.c.bf16 %v224_v24, %v212_v26  ;;  %v225_v24 = vld [vmem:[%s8682_s0 + $0x690] sm:$0xff] }
  0xdc   :  { %2993 = vmatprep.mubr.bf16.mxu1 %v6780_v30  ;;  %3077 = vmatpush2.bf16.msra.mxu0 %v5385_v27  ;;  %v5402_v30 = vld [vmem:[%s8681_s1 + $0x85c] ss:$12 sps:$4 sm:$0xff]   ;;  %v6834_v27 = vpack.c.bf16 %v199_v55, %v187_v50  ;;  %v5405_v50 = vld [vmem:[%s8681_s1 + $0x6c4] ss:$12 sps:$4 sm:$0xff]  }
  0xdd   :  { %3238 = vmatpush2.bf16.msra.mxu1 %v5388_v51  ;;  %3078 = vmatprep.subr.bf16.mxu0 %v5393_v13  ;;  %v6836_v51 = vpack.c.bf16 %v201_v62, %v189_v31  ;;  %8898 = vst [vmem:[#allocation72_spill] sm:$0xff] %v6841_v25  ;;  %v6843_v13 = vpack.c.bf16 %v226_v23, %v214_v12  ;;  %v211_v55 = vld [vmem:[%s8682_s0 + $0x620] sm:$0xff]  ;;  %v213_v62 = vld [vmem:[%s8682_s0 + $0x630] sm:$0xff]  ;;  %v236_v12 = vld [vmem:[%s8682_s0 + $0x6e8] sm:$0xff] }
  0xde   :  { %3239 = vmatprep.subr.bf16.mxu1 %v5396_v22  ;;  %8896 = vst [vmem:[#allocation70_spill] sm:$0xff] %v6834_v27  ;;  %v5400_v22 = vld [vmem:[%s8681_s1 + $0x858] ss:$12 sps:$4 sm:$0xff]  }
  0xdf   :  { %8897 = vst [vmem:[#allocation71_spill] sm:$0xff] %v6836_v51  ;;  %8899 = vst [vmem:[#allocation73_spill] sm:$0xff] %v6843_v13  ;;  %v223_v31 = vld [vmem:[%s8682_s0 + $0x680] sm:$0xff]  ;;  %v238_v23 = vld [vmem:[%s8682_s0 + $0x6f8] sm:$0xff] }
  0xe0   :  { %3079 = vmatpush2.bf16.msra.mxu0 %v5391_v38  ;;  %v5408_v26 = vld [vmem:[%s8681_s1 + $0x844] ss:$12 sps:$4 sm:$0xff]   ;;  %v250_v38 = vld [vmem:[%s8682_s0 + $0x758] sm:$0xff] }
  0xe1   :  { %3240 = vmatpush2.bf16.msra.mxu1 %v5394_v41  ;;  %3080 = vmatprep.subr.bf16.mxu0 %v5399_v57  ;;  %v5403_v41 = vld [vmem:[%s8681_s1 + $0x6c0] ss:$12 sps:$4 sm:$0xff]  }
  0xe2   :  { %3241 = vmatprep.subr.bf16.mxu1 %v5402_v30  ;;  %2833 = vmatmul.mubr.bf16.gmra.mxu0 %v6834_v27  ;;  %v248_v30 = vld [vmem:[%s8682_s0 + $0x748] sm:$0xff]  ;;  %v6896_v27 = vpack.c.bf16 %v225_v24, %v213_v62  ;;  %v274_v24 = vld [vmem:[%s8682_s0 + $0x818] sm:$0xff] }
  0xe3   :  { %2994 = vmatmul.mubr.bf16.gmra.mxu1 %v6836_v51  ;;  %2842 = vmatprep.mubr.bf16.mxu0 %v6841_v25  ;;  %v5406_v57 = vld [vmem:[%s8681_s1 + $0x840] ss:$12 sps:$4 sm:$0xff]   ;;  %v5411_v25 = vld [vmem:[%s8681_s1 + $0x2f0] ss:$12 sps:$4 sm:$0xff]   ;;  %v6894_v51 = vpack.c.bf16 %v223_v31, %v211_v55 }
  0xe4   :  { %3003 = vmatprep.mubr.bf16.mxu1 %v6843_v13  ;;  %3081 = vmatpush2.bf16.msra.mxu0 %v5397_v63  ;;  %v5409_v13 = vld [vmem:[%s8681_s1 + $0x170] ss:$12 sps:$4 sm:$0xff]   ;;  %8901 = vst [vmem:[#allocation75_spill] sm:$0xff] %v6896_v27  ;;  %v6898_v63 = vpack.c.bf16 %v248_v30, %v236_v12  ;;  %v247_v55 = vld [vmem:[%s8682_s0 + $0x740] sm:$0xff]  ;;  %v260_v31 = vld [vmem:[%s8682_s0 + $0x7a8] sm:$0xff] }
  0xe5   :  { %3242 = vmatpush2.bf16.msra.mxu1 %v5400_v22  ;;  %3082 = vmatprep.subr.bf16.mxu0 %v5405_v50  ;;  %8900 = vst [vmem:[#allocation74_spill] sm:$0xff] %v6894_v51  ;;  %v6900_v22 = vpack.c.bf16 %v250_v38, %v238_v23  ;;  %v235_v50 = vld [vmem:[%s8682_s0 + $0x6e0] sm:$0xff]  ;;  %v272_v62 = vld [vmem:[%s8682_s0 + $0x808] sm:$0xff] }
  0xe6   :  { %3243 = vmatprep.subr.bf16.mxu1 %v5408_v26  ;;  %8902 = vst [vmem:[#allocation76_spill] sm:$0xff] %v6898_v63  ;;  %v262_v26 = vld [vmem:[%s8682_s0 + $0x7b8] sm:$0xff]  ;;  %v6930_v12 = vpack.c.bf16 %v247_v55, %v235_v50  ;;  %v6934_v23 = vpack.c.bf16 %v272_v62, %v260_v31  ;;  %v261_v50 = vld [vmem:[%s8682_s0 + $0x7b0] sm:$0xff]  ;;  %v857_v31 = vlaneseq }
  0xe7   :  { %8903 = vst [vmem:[#allocation77_spill] sm:$0xff] %v6900_v22  ;;  %v6936_v38 = vpack.c.bf16 %v274_v24, %v262_v26  ;;  %v273_v55 = vld [vmem:[%s8682_s0 + $0x810] sm:$0xff]  ;;  %v286_v62 = vld [vmem:[%s8682_s0 + $0x878] sm:$0xff] }
  0xe8   :  { %3083 = vmatpush2.bf16.msra.mxu0 %v5403_v41  ;;  %8904 = vst [vmem:[#allocation78_spill] sm:$0xff] %v6930_v12  ;;  %8906 = vst [vmem:[#allocation80_spill] sm:$0xff] %v6934_v23  ;;  %v259_v41 = vld [vmem:[%s8682_s0 + $0x7a0] sm:$0xff]  ;;  %v298_v26 = vld [vmem:[%s8682_s0 + $0x8d8] sm:$0xff] }
  0xe9   :  { %3244 = vmatpush2.bf16.msra.mxu1 %v5406_v57  ;;  %4557 = vmatprep.subr.bf16.mxu0 %v5409_v13  ;;  %v249_v13 = vld [vmem:[%s8682_s0 + $0x750] sm:$0xff]  ;;  %8907 = vst [vmem:[#allocation81_spill] sm:$0xff] %v6936_v38  ;;  %v271_v57 = vld [vmem:[%s8682_s0 + $0x800] sm:$0xff] }
  0xea   :  { %4651 = vmatprep.subr.bf16.mxu1 %v5411_v25  ;;  %2843 = vmatmul.mubr.bf16.gmra.mxu0 %v6894_v51  ;;  %v237_v25 = vld [vmem:[%s8682_s0 + $0x6f0] sm:$0xff]  ;;  %v6966_v24 = vpack.c.bf16 %v271_v57, %v259_v41  ;;  %v295_v57 = vld [vmem:[%s8682_s0 + $0x8c0] sm:$0xff] }
  0xeb   :  { %3004 = vmatmul.mubr.bf16.gmra.mxu1 %v6896_v27  ;;  %2852 = vmatprep.mubr.bf16.mxu0 %v6898_v63  ;;  %v6932_v30 = vpack.c.bf16 %v249_v13, %v237_v25  ;;  %v284_v25 = vld [vmem:[%s8682_s0 + $0x868] sm:$0xff]  ;;  %v307_v27 = vld [vmem:[%s8682_s0 + $0x920] sm:$0xf] }
  0xec   :  { %3013 = vmatprep.mubr.bf16.mxu1 %v6900_v22  ;;  %v296_v13 = vld [vmem:[%s8682_s0 + $0x8c8] sm:$0xff]  ;;  %8908 = vst [vmem:[#allocation82_spill] sm:$0xff] %v6966_v24  ;;  %v283_v22 = vld [vmem:[%s8682_s0 + $0x860] sm:$0xff] }
  0xed   :  { %8905 = vst [vmem:[#allocation79_spill] sm:$0xff] %v6932_v30 }
  0xf2   :  { %2853 = vmatmul.mubr.bf16.gmra.mxu0 %v6930_v12  ;;  %v6974_v12 = vshrl.u32 %v857_v31, 7  ;;  %v310_v31 = vld [vmem:[%s8682_s0 + $0x938] sm:$0xf] }
  0xf3   :  { %3014 = vmatmul.mubr.bf16.gmra.mxu1 %v6932_v30  ;;  %2862 = vmatprep.mubr.bf16.mxu0 %v6934_v23  ;;  %v6970_v23 = vpack.c.bf16 %v296_v13, %v284_v25  ;;  %v6972_v30 = vpack.c.bf16 %v298_v26, %v286_v62  ;;  %v855_v25 = vld [vmem:[%s8683_s2] sm:$0x7]  ;;  %v308_v13 = vld [vmem:[%s8682_s0 + $0x928] sm:$0xf]  ;;  %v7003_v26 = vpack.c.bf16 %v295_v57, %v283_v22  ;;  %v309_v22 = vld [vmem:[%s8682_s0 + $0x930] sm:$0xf] }
  0xf4   :  { %3023 = vmatprep.mubr.bf16.mxu1 %v6936_v38  ;;  %v6968_v38 = vpack.c.bf16 %v273_v55, %v261_v50  ;;  %8912 = vst [vmem:[#allocation86_spill] sm:$0xff] %v6974_v12  ;;  %v859_v41 = vsub.s32 0, %v6974_v12  ;;  %v285_v50 = vld [vmem:[%s8682_s0 + $0x870] sm:$0xff]  ;;  %v863_v62 = vsub.s32 1, %v6974_v12  ;;  %v36_v57 = vld [vmem:[%s8682_s0 + $0xa8] sm:$0xff]  ;;  %v7041_v12 = vpack.c.bf16 %v307_v27, %v307_v27  ;;  %v23_v27 = vld [vmem:[%s8682_s0 + $0x40] sm:$0xff] }
  0xf5   :  { %8910 = vst [vmem:[#allocation84_spill] sm:$0xff] %v6970_v23  ;;  %8911 = vst [vmem:[#allocation85_spill] sm:$0xff] %v6972_v30  ;;  %v297_v55 = vld [vmem:[%s8682_s0 + $0x8d0] sm:$0xff] }
  0xf6   :  { %8909 = vst [vmem:[#allocation83_spill] sm:$0xff] %v6968_v38  ;;  %8913 = vst [vmem:[#allocation87_spill] sm:$0xff] %v7003_v26  ;;  %v7013_v63 = vrot.slane %v855_v25, %v863_v62 }
  0xf7   :  { %8917 = vst [vmem:[#allocation91_spill] sm:$0xff] %v7041_v12 }
  0xfa   :  { %2863 = vmatmul.mubr.bf16.gmra.mxu0 %v6966_v24  ;;  %v7011_v24 = vpack.c.bf16 %v310_v31, %v310_v31  ;;  %v38_v31 = vld [vmem:[%s8682_s0 + $0xb8] sm:$0xff] }
  0xfb   :  { %3024 = vmatmul.mubr.bf16.gmra.mxu1 %v6968_v38  ;;  %2872 = vmatprep.mubr.bf16.mxu0 %v6970_v23  ;;  %v7007_v23 = vrot.slane %v855_v25, %v859_v41  ;;  %v7009_v38 = vpack.c.bf16 %v308_v13, %v308_v13  ;;  %v24_v41 = vld [vmem:[%s8682_s0 + $0x48] sm:$0xff] }
  0xfc   :  { %3033 = vmatprep.mubr.bf16.mxu1 %v6972_v30  ;;  %v7005_v30 = vpack.c.bf16 %v297_v55, %v285_v50  ;;  %8916 = vst [vmem:[#allocation90_spill] sm:$0xff] %v7011_v24  ;;  %v26_v55 = vld [vmem:[%s8682_s0 + $0x58] sm:$0xff]  ;;  %v7048_v29 = vpack.c.bf16 %v36_v57, %v24_v41 }
  0xfd   :  { %8915 = vst [vmem:[#allocation89_spill] sm:$0xff] %v7009_v38  ;;  %v7050_v28 = vpack.c.bf16 %v38_v31, %v26_v55  ;;  %v48_v55 = vld [vmem:[%s8682_s0 + $0x108] sm:$0xff] }
  0xfe   :  { %8914 = vst [vmem:[#allocation88_spill] sm:$0xff] %v7005_v30  ;;  %8919 = vst [vmem:[#allocation93_spill] sm:$0xff] %v7048_v29 }
  0xff   :  { %8920 = vst [vmem:[#allocation94_spill] sm:$0xff] %v7050_v28 }
 0x102   :  { %v2442_v51 = vpop.f32.mrf.mxu0  ;;  %2873 = vmatmul.mubr.bf16.gmra.mxu0 %v7003_v26 }
 0x103   :  { %v2603_v56 = vpop.f32.mrf.mxu1  ;;  %3034 = vmatmul.mubr.bf16.gmra.mxu1 %v7005_v30  ;;  %v2443_v50 = vadd.f32 %v2442_v51, %v7007_v23  ;;  %2882 = vmatprep.mubr.bf16.mxu0 %v7009_v38  ;;  %v7043_v38 = vpack.c.bf16 %v309_v22, %v309_v22  ;;  %v37_v22 = vld [vmem:[%s8682_s0 + $0xb0] sm:$0xff] }
 0x104   :  { %3043 = vmatprep.mubr.bf16.mxu1 %v7011_v24  ;;  %v2444_v25 = vpop.f32.mrf.mxu0 }
 0x105   :  { %v2605_v13 = vpop.f32.mrf.mxu1  ;;  %v7038_v62 = vadd.f32 %v2603_v56, %v2443_v50  ;;  %v2445_v30 = vadd.f32 %v2444_v25, %v7013_v63  ;;  %8918 = vst [vmem:[#allocation92_spill] sm:$0xff] %v7043_v38  ;;  %v60_v25 = vld [vmem:[%s8682_s0 + $0x168] sm:$0xff] }
 0x106   :  { %v2446_v26 = vpop.f32.mrf.mxu0  ;;  %v7108_v46 = vpack.c.bf16 %v60_v25, %v48_v55  ;;  %v84_v55 = vld [vmem:[%s8682_s0 + $0x228] sm:$0xff]  ;;  %v5416_v25 = vld [vmem:[%s8681_s1 + $0x218] ss:$12 sps:$4 sm:$0xff]  }
 0x107   :  { %v2607_v51 = vpop.f32.mrf.mxu1  ;;  %v7045_v24 = vadd.f32 %v2605_v13, %v2445_v30  ;;  %v2447_v52 = vadd.f32 %v2446_v26, %v7007_v23  ;;  %v35_v30 = vld [vmem:[%s8682_s0 + $0xa0] sm:$0xff]  ;;  %v25_v26 = vld [vmem:[%s8682_s0 + $0x50] sm:$0xff]  ;;  %v50_v13 = vld [vmem:[%s8682_s0 + $0x118] sm:$0xff] }
 0x108   :  { %v2448_v11 = vpop.f32.mrf.mxu0  ;;  %v7095_v1 = vpack.c.bf16 %v35_v30, %v23_v27  ;;  %8923 = vst [vmem:[#allocation97_spill] sm:$0xff] %v7108_v46 }
 0x109   :  { %v2609_v10 = vpop.f32.mrf.mxu1  ;;  %v7052_v56 = vadd.f32 %v2607_v51, %v2447_v52  ;;  %v2449_v50 = vadd.f32 %v2448_v11, %v7013_v63 }
 0x10a   :  { %v2452_v52 = vpop.f32.mrf.mxu0  ;;  %2883 = vmatmul.mubr.bf16.gmra.mxu0 %v7041_v12  ;;  %8921 = vst [vmem:[#allocation95_spill] sm:$0xff] %v7095_v1 }
 0x10b   :  { %v2613_v41 = vpop.f32.mrf.mxu1  ;;  %3044 = vmatmul.mubr.bf16.gmra.mxu1 %v7043_v38  ;;  %v7069_v11 = vadd.f32 %v2609_v10, %v2449_v50  ;;  %v2453_v57 = vadd.f32 %v2452_v52, %v7007_v23  ;;  %3084 = vmatprep.mubr.bf16.mxu0 %v7048_v29  ;;  %v5410_v52 = vld [vmem:[%s8681_s1 + $0xb0] ss:$12 sps:$4 sm:$0xff]  }
 0x10c   :  { %3245 = vmatprep.mubr.bf16.mxu1 %v7050_v28  ;;  %v2454_v10 = vpop.f32.mrf.mxu0  ;;  %v5412_v28 = vld [vmem:[%s8681_s1 + $0x230] ss:$12 sps:$4 sm:$0xff]  }
 0x10d   :  { %v2615_v31 = vpop.f32.mrf.mxu1  ;;  %v7083_v51 = vadd.f32 %v2613_v41, %v2453_v57  ;;  %v2455_v50 = vadd.f32 %v2454_v10, %v7013_v63  ;;  %v62_v29 = vld [vmem:[%s8682_s0 + $0x178] sm:$0xff]  ;;  %v7097_v41 = vpack.c.bf16 %v37_v22, %v25_v26  ;;  %v59_v22 = vld [vmem:[%s8682_s0 + $0x160] sm:$0xff] }
 0x10e   :  { %v2456_v38 = vpop.f32.mrf.mxu0  ;;  %v7110_v27 = vpack.c.bf16 %v62_v29, %v50_v13  ;;  %v61_v29 = vld [vmem:[%s8682_s0 + $0x170] sm:$0xff] }
 0x10f   :  { %v2617_v12 = vpop.f32.mrf.mxu1  ;;  %8922 = vst [vmem:[#allocation96_spill] sm:$0xff] %v7097_v41  ;;  %v7099_v57 = vadd.f32 %v2615_v31, %v2455_v50  ;;  %v2457_v10 = vadd.f32 %v2456_v38, %v7007_v23  ;;  %v47_v38 = vld [vmem:[%s8682_s0 + $0x100] sm:$0xff]  ;;  %v49_v31 = vld [vmem:[%s8682_s0 + $0x110] sm:$0xff] }
 0x110   :  { %v2458_v48 = vpop.f32.mrf.mxu0  ;;  %8924 = vst [vmem:[#allocation98_spill] sm:$0xff] %v7110_v27 }
 0x111   :  { %v2619_v47 = vpop.f32.mrf.mxu1  ;;  %v7112_v30 = vadd.f32 %v2617_v12, %v2457_v10  ;;  %v2459_v26 = vadd.f32 %v2458_v48, %v7013_v63  ;;  %v5414_v48 = vld [vmem:[%s8681_s1 + $0x98] ss:$12 sps:$4 sm:$0xff]   ;;  %v72_v12 = vld [vmem:[%s8682_s0 + $0x1c8] sm:$0xff] }
 0x112   :  { %v2462_v13 = vpop.f32.mrf.mxu0  ;;  %3085 = vmatmul.mubr.bf16.vlgmr.msra.gmra.mxu0 %v7095_v1  ;;  %v74_v10 = vld [vmem:[%s8682_s0 + $0x1d8] sm:$0xff] }
 0x113   :  { %v2623_v50 = vpop.f32.mrf.mxu1  ;;  %3246 = vmatmul.mubr.bf16.vlgmr.msra.gmra.mxu1 %v7097_v41  ;;  %v7153_v2 = vadd.f32 %v2619_v47, %v2459_v26  ;;  %v2463_v41 = vadd.f32 %v2462_v13, %v7007_v23  ;;  %4558 = vmatpush3.bf16.msra.mxu0 %v5410_v52  ;;  %v7161_v47 = vpack.c.bf16 %v59_v22, %v47_v38  ;;  %v73_v38 = vld [vmem:[%s8682_s0 + $0x1d0] sm:$0xff] }
 0x114   :  { %4652 = vmatpush3.bf16.msra.mxu1 %v5412_v28  ;;  %v2464_v1 = vpop.f32.mrf.mxu0  ;;  %3094 = vmatprep.mubr.bf16.mxu0 %v7108_v46  ;;  %v7163_v26 = vpack.c.bf16 %v61_v29, %v49_v31  ;;  %v7165_v52 = vpack.c.bf16 %v84_v55, %v72_v12  ;;  %v96_v29 = vld [vmem:[%s8682_s0 + $0x288] sm:$0xff]  ;;  %v98_v12 = vld [vmem:[%s8682_s0 + $0x298] sm:$0xff] }
 0x115   :  { %v2625_v35 = vpop.f32.mrf.mxu1  ;;  %3255 = vmatprep.mubr.bf16.mxu1 %v7110_v27  ;;  %v7158_v34 = vadd.f32 %v2623_v50, %v2463_v41  ;;  %v2465_v33 = vadd.f32 %v2464_v1, %v7013_v63  ;;  %4559 = vmatprep.subr.bf16.mxu0 %v5413_v0  ;;  %8925 = vst [vmem:[#allocation99_spill] sm:$0xff] %v7161_v47  ;;  %v5420_v0 = vld [vmem:[%s8681_s1 + $0x200] ss:$12 sps:$4 sm:$0xff]   ;;  %v110_v55 = vld [vmem:[%s8682_s0 + $0x2f8] sm:$0xff]  ;;  %v5424_v50 = vld [vmem:[%s8681_s1 + $0x1e8] ss:$12 sps:$4 sm:$0xff]  }
 0x116   :  { %4653 = vmatprep.subr.bf16.mxu1 %v5415_v49  ;;  %v2466_v32 = vpop.f32.mrf.mxu0  ;;  %8926 = vst [vmem:[#allocation100_spill] sm:$0xff] %v7163_v26  ;;  %8927 = vst [vmem:[#allocation101_spill] sm:$0xff] %v7165_v52  ;;  %v7170_v27 = vpack.c.bf16 %v86_v9, %v74_v10  ;;  %v5418_v49 = vld [vmem:[%s8681_s1 + $0x80] ss:$12 sps:$4 sm:$0xff]  }
 0x117   :  { %v2627_v7 = vpop.f32.mrf.mxu1  ;;  %v7167_v28 = vadd.f32 %v2625_v35, %v2465_v33  ;;  %v2467_v13 = vadd.f32 %v2466_v32, %v7007_v23  ;;  %4560 = vmatpush3.bf16.msra.mxu0 %v5414_v48  ;;  %v71_v35 = vld [vmem:[%s8682_s0 + $0x1c0] sm:$0xff]  ;;  %v108_v48 = vld [vmem:[%s8682_s0 + $0x2e8] sm:$0xff] }
 0x118   :  { %8928 = vst [vmem:[#allocation102_spill] sm:$0xff] %v7170_v27  ;;  %4654 = vmatpush3.bf16.msra.mxu1 %v5416_v25  ;;  %v2468_v1 = vpop.f32.mrf.mxu0  ;;  %4561 = vmatprep.subr.bf16.mxu0 %v5417_v8  ;;  %v83_v9 = vld [vmem:[%s8682_s0 + $0x220] sm:$0xff]  ;;  %v5423_v8 = vld [vmem:[%s8681_s1 + $0x2a8] ss:$12 sps:$4 sm:$0xff]  }
 0x119   :  { %v2629_v41 = vpop.f32.mrf.mxu1  ;;  %4655 = vmatprep.subr.bf16.mxu1 %v5419_v3  ;;  %v7178_v33 = vadd.f32 %v2627_v7, %v2467_v13  ;;  %v2469_v32 = vadd.f32 %v2468_v1, %v7013_v63  ;;  %v85_v3 = vld [vmem:[%s8682_s0 + $0x230] sm:$0xff] }
 0x11a   :  { %v5421_v7 = vld [vmem:[%s8681_s1 + $0x128] ss:$12 sps:$4 sm:$0xff]   ;;  %v2472_v22 = vpop.f32.mrf.mxu0  ;;  %3095 = vmatmul.mubr.bf16.gmra.mxu0 %v7161_v47  ;;  %v5425_v1 = vld [vmem:[%s8681_s1 + $0x110] ss:$12 sps:$4 sm:$0xff]   ;;  %v7235_v6 = vpack.c.bf16 %v85_v3, %v73_v38 }
 0x11b   :  { %v2633_v31 = vpop.f32.mrf.mxu1  ;;  %3256 = vmatmul.mubr.bf16.gmra.mxu1 %v7163_v26  ;;  %v5422_v25 = vld [vmem:[%s8681_s1 + $0x68] ss:$12 sps:$4 sm:$0xff]   ;;  %v7219_v10 = vadd.f32 %v2629_v41, %v2469_v32  ;;  %v2473_v13 = vadd.f32 %v2472_v22, %v7007_v23  ;;  %3104 = vmatprep.mubr.bf16.mxu0 %v7165_v52  ;;  %v5427_v26 = vld [vmem:[%s8681_s1 + $0x290] ss:$12 sps:$4 sm:$0xff]   ;;  %v7233_v52 = vpack.c.bf16 %v83_v9, %v71_v35  ;;  %v5429_v35 = vld [vmem:[%s8681_s1 + $0xf8] ss:$12 sps:$4 sm:$0xff]  }
 0x11c   :  { %3265 = vmatprep.mubr.bf16.mxu1 %v7170_v27  ;;  %v2474_v47 = vpop.f32.mrf.mxu0  ;;  %4562 = vmatpush3.bf16.msra.mxu0 %v5418_v49  ;;  %8930 = vst [vmem:[#allocation104_spill] sm:$0xff] %v7235_v6  ;;  %v5428_v49 = vld [vmem:[%s8681_s1 + $0x1d0] ss:$12 sps:$4 sm:$0xff]   ;;  %v5431_v9 = vld [vmem:[%s8681_s1 + $0x278] ss:$12 sps:$4 sm:$0xff]  }
 0x11d   :  { %v2635_v46 = vpop.f32.mrf.mxu1  ;;  %4656 = vmatpush3.bf16.msra.mxu1 %v5420_v0  ;;  %v7230_v41 = vadd.f32 %v2633_v31, %v2473_v13  ;;  %v2475_v32 = vadd.f32 %v2474_v47, %v7013_v63  ;;  %4563 = vmatprep.subr.bf16.mxu0 %v5421_v7  ;;  %8929 = vst [vmem:[#allocation103_spill] sm:$0xff] %v7233_v52  ;;  %v132_v13 = vld [vmem:[%s8682_s0 + $0x3a8] sm:$0xff] }
 0x11e   :  { %4657 = vmatprep.subr.bf16.mxu1 %v5423_v8  ;;  %v2476_v22 = vpop.f32.mrf.mxu0  ;;  %v7246_v7 = vpack.c.bf16 %v108_v48, %v96_v29  ;;  %v7248_v8 = vpack.c.bf16 %v110_v55, %v98_v12  ;;  %v95_v29 = vld [vmem:[%s8682_s0 + $0x280] sm:$0xff]  ;;  %v97_v12 = vld [vmem:[%s8682_s0 + $0x290] sm:$0xff] }
 0x11f   :  { %v2637_v27 = vpop.f32.mrf.mxu1  ;;  %v7243_v0 = vadd.f32 %v2635_v46, %v2475_v32  ;;  %v2477_v47 = vadd.f32 %v2476_v22, %v7007_v23  ;;  %v107_v48 = vld [vmem:[%s8682_s0 + $0x2e0] sm:$0xff]  ;;  %v109_v55 = vld [vmem:[%s8682_s0 + $0x2f0] sm:$0xff]  ;;  %v122_v32 = vld [vmem:[%s8682_s0 + $0x358] sm:$0xff] }
 0x120   :  { %8931 = vst [vmem:[#allocation105_spill] sm:$0xff] %v7246_v7  ;;  %8932 = vst [vmem:[#allocation106_spill] sm:$0xff] %v7248_v8  ;;  %v2478_v38 = vpop.f32.mrf.mxu0  ;;  %4564 = vmatpush3.bf16.msra.mxu0 %v5422_v25 }
 0x121   :  { %v2639_v3 = vpop.f32.mrf.mxu1  ;;  %4658 = vmatpush3.bf16.msra.mxu1 %v5424_v50  ;;  %v7256_v46 = vadd.f32 %v2637_v27, %v2477_v47  ;;  %v2479_v31 = vadd.f32 %v2478_v38, %v7013_v63  ;;  %4565 = vmatprep.subr.bf16.mxu0 %v5425_v1  ;;  %v120_v50 = vld [vmem:[%s8682_s0 + $0x348] sm:$0xff]  ;;  %v5430_v1 = vld [vmem:[%s8681_s1 + $0x38] ss:$12 sps:$4 sm:$0xff]  }
 0x122   :  { %4659 = vmatprep.subr.bf16.mxu1 %v5427_v26  ;;  %v2482_v27 = vpop.f32.mrf.mxu0  ;;  %3105 = vmatmul.mubr.bf16.gmra.mxu0 %v7233_v52  ;;  %v134_v26 = vld [vmem:[%s8682_s0 + $0x3b8] sm:$0xff] }
 0x123   :  { %v2643_v25 = vpop.f32.mrf.mxu1  ;;  %3266 = vmatmul.mubr.bf16.gmra.mxu1 %v7235_v6  ;;  %v7288_v22 = vadd.f32 %v2639_v3, %v2479_v31  ;;  %v2483_v47 = vadd.f32 %v2482_v27, %v7007_v23  ;;  %3114 = vmatprep.mubr.bf16.mxu0 %v7246_v7  ;;  %v5432_v38 = vld [vmem:[%s8681_s1 + $0x1b8] ss:$12 sps:$4 sm:$0xff]   ;;  %v5433_v3 = vld [vmem:[%s8681_s1 + $0xe0] ss:$12 sps:$4 sm:$0xff]   ;;  %v7305_v7 = vpack.c.bf16 %v107_v48, %v95_v29  ;;  %v5437_v29 = vld [vmem:[%s8681_s1 + $0xc8] ss:$12 sps:$4 sm:$0xff]  }
 0x124   :  { %3275 = vmatprep.mubr.bf16.mxu1 %v7248_v8  ;;  %v2484_v6 = vpop.f32.mrf.mxu0  ;;  %4566 = vmatpush3.bf16.msra.mxu0 %v5426_v5  ;;  %v5435_v31 = vld [vmem:[%s8681_s1 + $0x260] ss:$12 sps:$4 sm:$0xff]   ;;  %v7307_v5 = vpack.c.bf16 %v109_v55, %v97_v12  ;;  %v5439_v48 = vld [vmem:[%s8681_s1 + $0x248] ss:$12 sps:$4 sm:$0xff]  }
 0x125   :  { %v2645_v52 = vpop.f32.mrf.mxu1  ;;  %4660 = vmatpush3.bf16.msra.mxu1 %v5428_v49  ;;  %v7296_v4 = vadd.f32 %v2643_v25, %v2483_v47  ;;  %v2485_v45 = vadd.f32 %v2484_v6, %v7013_v63  ;;  %4567 = vmatprep.subr.bf16.mxu0 %v5429_v35  ;;  %8933 = vst [vmem:[#allocation107_spill] sm:$0xff] %v7305_v7  ;;  %v5434_v6 = vld [vmem:[%s8681_s1 + $0x20] ss:$12 sps:$4 sm:$0xff]  }
 0x126   :  { %4661 = vmatprep.subr.bf16.mxu1 %v5431_v9  ;;  %v2486_v27 = vpop.f32.mrf.mxu0  ;;  %8934 = vst [vmem:[#allocation108_spill] sm:$0xff] %v7307_v5  ;;  %v5436_v49 = vld [vmem:[%s8681_s1 + $0x1a0] ss:$12 sps:$4 sm:$0xff]   ;;  %v7318_v25 = vpack.c.bf16 %v132_v13, %v120_v50  ;;  %v7320_v47 = vpack.c.bf16 %v134_v26, %v122_v32  ;;  %v121_v32 = vld [vmem:[%s8682_s0 + $0x350] sm:$0xff] }
 0x127   :  { %v2647_v8 = vpop.f32.mrf.mxu1  ;;  %v7315_v35 = vadd.f32 %v2645_v52, %v2485_v45  ;;  %v2487_v9 = vadd.f32 %v2486_v27, %v7007_v23  ;;  %v119_v50 = vld [vmem:[%s8682_s0 + $0x340] sm:$0xff]  ;;  %v133_v26 = vld [vmem:[%s8682_s0 + $0x3b0] sm:$0xff]  ;;  %v156_v27 = vld [vmem:[%s8682_s0 + $0x468] sm:$0xff] }
 0x128   :  { %8935 = vst [vmem:[#allocation109_spill] sm:$0xff] %v7318_v25  ;;  %8936 = vst [vmem:[#allocation110_spill] sm:$0xff] %v7320_v47  ;;  %v2488_v12 = vpop.f32.mrf.mxu0  ;;  %4568 = vmatpush3.bf16.msra.mxu0 %v5430_v1  ;;  %v131_v13 = vld [vmem:[%s8682_s0 + $0x3a0] sm:$0xff]  ;;  %v7379_v18 = vpack.c.bf16 %v133_v26, %v121_v32  ;;  %v168_v32 = vld [vmem:[%s8682_s0 + $0x4c8] sm:$0xff] }
 0x129   :  { %v2649_v55 = vpop.f32.mrf.mxu1  ;;  %4662 = vmatpush3.bf16.msra.mxu1 %v5432_v38  ;;  %v7328_v45 = vadd.f32 %v2647_v8, %v2487_v9  ;;  %v2489_v52 = vadd.f32 %v2488_v12, %v7013_v63  ;;  %4569 = vmatprep.subr.bf16.mxu0 %v5433_v3  ;;  %v144_v38 = vld [vmem:[%s8682_s0 + $0x408] sm:$0xff]  ;;  %v146_v9 = vld [vmem:[%s8682_s0 + $0x418] sm:$0xff] }
 0x12a   :  { %4663 = vmatprep.subr.bf16.mxu1 %v5435_v31  ;;  %v2492_v8 = vpop.f32.mrf.mxu0  ;;  %3115 = vmatmul.mubr.bf16.gmra.mxu0 %v7305_v7  ;;  %v158_v3 = vld [vmem:[%s8682_s0 + $0x478] sm:$0xff]  ;;  %v5438_v31 = vld [vmem:[%s8681_s1 + $0x8] ss:$12 sps:$4 sm:$0xff]   ;;  %8939 = vst [vmem:[#allocation113_spill] sm:$0xff] %v7379_v18 }
 0x12b   :  { %v2653_v1 = vpop.f32.mrf.mxu1  ;;  %3276 = vmatmul.mubr.bf16.gmra.mxu1 %v7307_v5  ;;  %v5440_v12 = vld [vmem:[%s8681_s1 + $0x188] ss:$12 sps:$4 sm:$0xff]   ;;  %v7363_v5 = vadd.f32 %v2649_v55, %v2489_v52  ;;  %v2493_v7 = vadd.f32 %v2492_v8, %v7007_v23  ;;  %3124 = vmatprep.mubr.bf16.mxu0 %v7318_v25  ;;  %v7377_v25 = vpack.c.bf16 %v131_v13, %v119_v50 }
 0x12c   :  { %3285 = vmatprep.mubr.bf16.mxu1 %v7320_v47  ;;  %v2494_v42 = vpop.f32.mrf.mxu0  ;;  %4570 = vmatpush3.bf16.msra.mxu0 %v5434_v6  ;;  %v7386_v6 = vpack.c.bf16 %v158_v3, %v146_v9  ;;  %v145_v50 = vld [vmem:[%s8682_s0 + $0x410] sm:$0xff]  ;;  %v182_v9 = vld [vmem:[%s8682_s0 + $0x538] sm:$0xff] }
 0x12d   :  { %8937 = vst [vmem:[#allocation111_spill] sm:$0xff] %v7363_v5  ;;  %v2655_v19 = vpop.f32.mrf.mxu1  ;;  %4664 = vmatpush3.bf16.msra.mxu1 %v5436_v49  ;;  %v7374_v55 = vadd.f32 %v2653_v1, %v2493_v7  ;;  %v2495_v52 = vadd.f32 %v2494_v42, %v7013_v63  ;;  %4571 = vmatprep.subr.bf16.mxu0 %v5437_v29  ;;  %8938 = vst [vmem:[#allocation112_spill] sm:$0xff] %v7377_v25  ;;  %v157_v13 = vld [vmem:[%s8682_s0 + $0x470] sm:$0xff] }
 0x12e   :  { %4665 = vmatprep.subr.bf16.mxu1 %v5439_v48  ;;  %v2496_v8 = vpop.f32.mrf.mxu0  ;;  %v7384_v5 = vpack.c.bf16 %v156_v27, %v144_v38  ;;  %8941 = vst [vmem:[#allocation115_spill] sm:$0xff] %v7386_v6  ;;  %v143_v48 = vld [vmem:[%s8682_s0 + $0x400] sm:$0xff] }
 0x12f   :  { %v2657_v47 = vpop.f32.mrf.mxu1  ;;  %v7381_v15 = vadd.f32 %v2655_v19, %v2495_v52  ;;  %v2497_v14 = vadd.f32 %v2496_v8, %v7007_v23  ;;  %v155_v19 = vld [vmem:[%s8682_s0 + $0x460] sm:$0xff] }
 0x130   :  { %8940 = vst [vmem:[#allocation114_spill] sm:$0xff] %v7384_v5  ;;  %v2498_v7 = vpop.f32.mrf.mxu0  ;;  %4572 = vmatpush3.bf16.msra.mxu0 %v5438_v31  ;;  %v7425_v8 = vpack.c.bf16 %v155_v19, %v143_v48  ;;  %v167_v48 = vld [vmem:[%s8682_s0 + $0x4c0] sm:$0xff] }
 0x131   :  { %v2659_v49 = vpop.f32.mrf.mxu1  ;;  %4666 = vmatpush3.bf16.msra.mxu1 %v5440_v12  ;;  %v7388_v42 = vadd.f32 %v2657_v47, %v2497_v14  ;;  %v2499_v29 = vadd.f32 %v2498_v7, %v7013_v63  ;;  %4745 = vmatprep.subr.bf16.mxu0 %v5441_v44  ;;  %v170_v44 = vld [vmem:[%s8682_s0 + $0x4d8] sm:$0xff]  ;;  %v7427_v7 = vpack.c.bf16 %v157_v13, %v145_v50  ;;  %v179_v19 = vld [vmem:[%s8682_s0 + $0x520] sm:$0xff] }
 0x132   :  { %4839 = vmatprep.subr.bf16.mxu1 %v5443_v43  ;;  %v2502_v14 = vpop.f32.mrf.mxu0  ;;  %3125 = vmatmul.mubr.bf16.gmra.mxu0 %v7377_v25  ;;  %v180_v43 = vld [vmem:[%s8682_s0 + $0x528] sm:$0xff]  ;;  %8942 = vst [vmem:[#allocation116_spill] sm:$0xff] %v7425_v8 }
 0x133   :  { %v2663_v47 = vpop.f32.mrf.mxu1  ;;  %3286 = vmatmul.mubr.bf16.gmra.mxu1 %v7379_v18  ;;  %v7408_v26 = vadd.f32 %v2659_v49, %v2499_v29  ;;  %v2503_v1 = vadd.f32 %v2502_v14, %v7007_v23  ;;  %3134 = vmatprep.mubr.bf16.mxu0 %v7384_v5  ;;  %8943 = vst [vmem:[#allocation117_spill] sm:$0xff] %v7427_v7 }
 0x134   :  { %3295 = vmatprep.mubr.bf16.mxu1 %v7386_v6  ;;  %v2504_v38 = vpop.f32.mrf.mxu0  ;;  %v7432_v14 = vpack.c.bf16 %v180_v43, %v168_v32  ;;  %v7434_v6 = vpack.c.bf16 %v182_v9, %v170_v44  ;;  %v181_v32 = vld [vmem:[%s8682_s0 + $0x530] sm:$0xff]  ;;  %v192_v43 = vld [vmem:[%s8682_s0 + $0x588] sm:$0xff]  ;;  %v194_v9 = vld [vmem:[%s8682_s0 + $0x598] sm:$0xff] }
 0x135   :  { %v2665_v27 = vpop.f32.mrf.mxu1  ;;  %v7422_v3 = vadd.f32 %v2663_v47, %v2503_v1  ;;  %v2505_v31 = vadd.f32 %v2504_v38, %v7013_v63 }
 0x136   :  { %v2506_v12 = vpop.f32.mrf.mxu0  ;;  %8945 = vst [vmem:[#allocation119_spill] sm:$0xff] %v7432_v14  ;;  %8946 = vst [vmem:[#allocation120_spill] sm:$0xff] %v7434_v6 }
 0x137   :  { %v2667_v52 = vpop.f32.mrf.mxu1  ;;  %v7429_v49 = vadd.f32 %v2665_v27, %v2505_v31  ;;  %v2507_v29 = vadd.f32 %v2506_v12, %v7007_v23  ;;  %v204_v27 = vld [vmem:[%s8682_s0 + $0x5e8] sm:$0xff]  ;;  %v206_v31 = vld [vmem:[%s8682_s0 + $0x5f8] sm:$0xff] }
 0x138   :  { %v2508_v5 = vpop.f32.mrf.mxu0 }
 0x139   :  { %8944 = vst [vmem:[#allocation118_spill] sm:$0xff] %v7429_v49  ;;  %v2669_v18 = vpop.f32.mrf.mxu1  ;;  %v7436_v47 = vadd.f32 %v2667_v52, %v2507_v29  ;;  %v2509_v1 = vadd.f32 %v2508_v5, %v7013_v63  ;;  %v169_v5 = vld [vmem:[%s8682_s0 + $0x4d0] sm:$0xff] }
 0x13a   :  { %v2512_v38 = vpop.f32.mrf.mxu0  ;;  %3135 = vmatmul.mubr.bf16.gmra.mxu0 %v7425_v8  ;;  %v7480_v8 = vpack.c.bf16 %v204_v27, %v192_v43  ;;  %v216_v43 = vld [vmem:[%s8682_s0 + $0x648] sm:$0xff] }
 0x13b   :  { %8947 = vst [vmem:[#allocation121_spill] sm:$0xff] %v7436_v47  ;;  %v2673_v25 = vpop.f32.mrf.mxu1  ;;  %3296 = vmatmul.mubr.bf16.gmra.mxu1 %v7427_v7  ;;  %v7447_v50 = vadd.f32 %v2669_v18, %v2509_v1  ;;  %v2513_v13 = vadd.f32 %v2512_v38, %v7007_v23  ;;  %3144 = vmatprep.mubr.bf16.mxu0 %v7432_v14  ;;  %v228_v27 = vld [vmem:[%s8682_s0 + $0x6a8] sm:$0xff] }
 0x13c   :  { %3305 = vmatprep.mubr.bf16.mxu1 %v7434_v6  ;;  %v2514_v18 = vpop.f32.mrf.mxu0  ;;  %v7473_v38 = vpack.c.bf16 %v179_v19, %v167_v48  ;;  %v7475_v6 = vpack.c.bf16 %v181_v32, %v169_v5  ;;  %8953 = vst [vmem:[#allocation127_spill] sm:$0xff] %v7480_v8  ;;  %v191_v48 = vld [vmem:[%s8682_s0 + $0x580] sm:$0xff]  ;;  %v205_v32 = vld [vmem:[%s8682_s0 + $0x5f0] sm:$0xff] }
 0x13d   :  { %8948 = vst [vmem:[#allocation122_spill] sm:$0xff] %v7447_v50  ;;  %v2675_v44 = vpop.f32.mrf.mxu1  ;;  %v7470_v12 = vadd.f32 %v2673_v25, %v2513_v13  ;;  %v2515_v52 = vadd.f32 %v2514_v18, %v7013_v63  ;;  %v7482_v50 = vpack.c.bf16 %v206_v31, %v194_v9  ;;  %v203_v19 = vld [vmem:[%s8682_s0 + $0x5e0] sm:$0xff]  ;;  %v218_v9 = vld [vmem:[%s8682_s0 + $0x658] sm:$0xff] }
 0x13e   :  { %v2516_v29 = vpop.f32.mrf.mxu0  ;;  %8950 = vst [vmem:[#allocation124_spill] sm:$0xff] %v7473_v38  ;;  %8951 = vst [vmem:[#allocation125_spill] sm:$0xff] %v7475_v6  ;;  %v230_v31 = vld [vmem:[%s8682_s0 + $0x6b8] sm:$0xff] }
 0x13f   :  { %8949 = vst [vmem:[#allocation123_spill] sm:$0xff] %v7470_v12  ;;  %v2677_v1 = vpop.f32.mrf.mxu1  ;;  %v7477_v14 = vadd.f32 %v2675_v44, %v2515_v52  ;;  %v2517_v7 = vadd.f32 %v2516_v29, %v7007_v23  ;;  %8954 = vst [vmem:[#allocation128_spill] sm:$0xff] %v7482_v50 }
 0x140   :  { %v2518_v47 = vpop.f32.mrf.mxu0 }
 0x141   :  { %8952 = vst [vmem:[#allocation126_spill] sm:$0xff] %v7477_v14  ;;  %v2679_v49 = vpop.f32.mrf.mxu1  ;;  %v7484_v25 = vadd.f32 %v2677_v1, %v2517_v7  ;;  %v2519_v13 = vadd.f32 %v2518_v47, %v7013_v63  ;;  %v193_v47 = vld [vmem:[%s8682_s0 + $0x590] sm:$0xff] }
 0x142   :  { %v2522_v18 = vpop.f32.mrf.mxu0  ;;  %3145 = vmatmul.mubr.bf16.gmra.mxu0 %v7473_v38  ;;  %v7528_v38 = vpack.c.bf16 %v228_v27, %v216_v43  ;;  %v240_v43 = vld [vmem:[%s8682_s0 + $0x708] sm:$0xff] }
 0x143   :  { %8955 = vst [vmem:[#allocation129_spill] sm:$0xff] %v7484_v25  ;;  %v2683_v12 = vpop.f32.mrf.mxu1  ;;  %3306 = vmatmul.mubr.bf16.gmra.mxu1 %v7475_v6  ;;  %v7495_v5 = vadd.f32 %v2679_v49, %v2519_v13  ;;  %v2523_v7 = vadd.f32 %v2522_v18, %v7007_v23  ;;  %3154 = vmatprep.mubr.bf16.mxu0 %v7480_v8  ;;  %v252_v27 = vld [vmem:[%s8682_s0 + $0x768] sm:$0xff] }
 0x144   :  { %3315 = vmatprep.mubr.bf16.mxu1 %v7482_v50  ;;  %v2524_v49 = vpop.f32.mrf.mxu0  ;;  %v7521_v18 = vpack.c.bf16 %v203_v19, %v191_v48  ;;  %v7523_v50 = vpack.c.bf16 %v205_v32, %v193_v47  ;;  %8961 = vst [vmem:[#allocation135_spill] sm:$0xff] %v7528_v38  ;;  %v215_v48 = vld [vmem:[%s8682_s0 + $0x640] sm:$0xff]  ;;  %v229_v32 = vld [vmem:[%s8682_s0 + $0x6b0] sm:$0xff] }
 0x145   :  { %8956 = vst [vmem:[#allocation130_spill] sm:$0xff] %v7495_v5  ;;  %v2685_v44 = vpop.f32.mrf.mxu1  ;;  %v7518_v52 = vadd.f32 %v2683_v12, %v2523_v7  ;;  %v2525_v29 = vadd.f32 %v2524_v49, %v7013_v63  ;;  %v7530_v5 = vpack.c.bf16 %v230_v31, %v218_v9  ;;  %v227_v19 = vld [vmem:[%s8682_s0 + $0x6a0] sm:$0xff]  ;;  %v242_v9 = vld [vmem:[%s8682_s0 + $0x718] sm:$0xff] }
 0x146   :  { %v2526_v1 = vpop.f32.mrf.mxu0  ;;  %8958 = vst [vmem:[#allocation132_spill] sm:$0xff] %v7521_v18  ;;  %8959 = vst [vmem:[#allocation133_spill] sm:$0xff] %v7523_v50  ;;  %v254_v31 = vld [vmem:[%s8682_s0 + $0x778] sm:$0xff] }
 0x147   :  { %8957 = vst [vmem:[#allocation131_spill] sm:$0xff] %v7518_v52  ;;  %v2687_v13 = vpop.f32.mrf.mxu1  ;;  %v7525_v8 = vadd.f32 %v2685_v44, %v2525_v29  ;;  %v2527_v6 = vadd.f32 %v2526_v1, %v7007_v23  ;;  %8962 = vst [vmem:[#allocation136_spill] sm:$0xff] %v7530_v5 }
 0x148   :  { %v2528_v25 = vpop.f32.mrf.mxu0 }
 0x149   :  { %8960 = vst [vmem:[#allocation134_spill] sm:$0xff] %v7525_v8  ;;  %v2689_v14 = vpop.f32.mrf.mxu1  ;;  %v7532_v12 = vadd.f32 %v2687_v13, %v2527_v6  ;;  %v2529_v7 = vadd.f32 %v2528_v25, %v7013_v63  ;;  %v217_v25 = vld [vmem:[%s8682_s0 + $0x650] sm:$0xff] }
 0x14a   :  { %v2532_v49 = vpop.f32.mrf.mxu0  ;;  %3155 = vmatmul.mubr.bf16.gmra.mxu0 %v7521_v18  ;;  %v7576_v18 = vpack.c.bf16 %v252_v27, %v240_v43  ;;  %v264_v43 = vld [vmem:[%s8682_s0 + $0x7c8] sm:$0xff] }
 0x14b   :  { %8963 = vst [vmem:[#allocation137_spill] sm:$0xff] %v7532_v12  ;;  %v2693_v52 = vpop.f32.mrf.mxu1  ;;  %3316 = vmatmul.mubr.bf16.gmra.mxu1 %v7523_v50  ;;  %v7543_v47 = vadd.f32 %v2689_v14, %v2529_v7  ;;  %v2533_v6 = vadd.f32 %v2532_v49, %v7007_v23  ;;  %3164 = vmatprep.mubr.bf16.mxu0 %v7528_v38  ;;  %v276_v27 = vld [vmem:[%s8682_s0 + $0x828] sm:$0xff] }
 0x14c   :  { %3325 = vmatprep.mubr.bf16.mxu1 %v7530_v5  ;;  %v2534_v14 = vpop.f32.mrf.mxu0  ;;  %v7569_v49 = vpack.c.bf16 %v227_v19, %v215_v48  ;;  %v7571_v5 = vpack.c.bf16 %v229_v32, %v217_v25  ;;  %8969 = vst [vmem:[#allocation143_spill] sm:$0xff] %v7576_v18  ;;  %v239_v48 = vld [vmem:[%s8682_s0 + $0x700] sm:$0xff]  ;;  %v253_v32 = vld [vmem:[%s8682_s0 + $0x770] sm:$0xff] }
 0x14d   :  { %8964 = vst [vmem:[#allocation138_spill] sm:$0xff] %v7543_v47  ;;  %v2695_v44 = vpop.f32.mrf.mxu1  ;;  %v7566_v29 = vadd.f32 %v2693_v52, %v2533_v6  ;;  %v2535_v1 = vadd.f32 %v2534_v14, %v7013_v63  ;;  %v7578_v47 = vpack.c.bf16 %v254_v31, %v242_v9  ;;  %v251_v19 = vld [vmem:[%s8682_s0 + $0x760] sm:$0xff]  ;;  %v266_v9 = vld [vmem:[%s8682_s0 + $0x7d8] sm:$0xff] }
 0x14e   :  { %v2536_v13 = vpop.f32.mrf.mxu0  ;;  %8966 = vst [vmem:[#allocation140_spill] sm:$0xff] %v7569_v49  ;;  %8967 = vst [vmem:[#allocation141_spill] sm:$0xff] %v7571_v5  ;;  %v278_v31 = vld [vmem:[%s8682_s0 + $0x838] sm:$0xff] }
 0x14f   :  { %8965 = vst [vmem:[#allocation139_spill] sm:$0xff] %v7566_v29  ;;  %v2697_v7 = vpop.f32.mrf.mxu1  ;;  %v7573_v38 = vadd.f32 %v2695_v44, %v2535_v1  ;;  %v2537_v50 = vadd.f32 %v2536_v13, %v7007_v23  ;;  %8970 = vst [vmem:[#allocation144_spill] sm:$0xff] %v7578_v47 }
 0x150   :  { %v2538_v12 = vpop.f32.mrf.mxu0 }
 0x151   :  { %8968 = vst [vmem:[#allocation142_spill] sm:$0xff] %v7573_v38  ;;  %v2699_v8 = vpop.f32.mrf.mxu1  ;;  %v7580_v52 = vadd.f32 %v2697_v7, %v2537_v50  ;;  %v2539_v6 = vadd.f32 %v2538_v12, %v7013_v63  ;;  %v241_v12 = vld [vmem:[%s8682_s0 + $0x710] sm:$0xff] }
 0x152   :  { %v2542_v14 = vpop.f32.mrf.mxu0  ;;  %3165 = vmatmul.mubr.bf16.gmra.mxu0 %v7569_v49  ;;  %v7624_v49 = vpack.c.bf16 %v276_v27, %v264_v43  ;;  %v288_v43 = vld [vmem:[%s8682_s0 + $0x888] sm:$0xff] }
 0x153   :  { %8971 = vst [vmem:[#allocation145_spill] sm:$0xff] %v7580_v52  ;;  %v2703_v29 = vpop.f32.mrf.mxu1  ;;  %3326 = vmatmul.mubr.bf16.gmra.mxu1 %v7571_v5  ;;  %v7591_v25 = vadd.f32 %v2699_v8, %v2539_v6  ;;  %v2543_v50 = vadd.f32 %v2542_v14, %v7007_v23  ;;  %3174 = vmatprep.mubr.bf16.mxu0 %v7576_v18  ;;  %v300_v27 = vld [vmem:[%s8682_s0 + $0x8e8] sm:$0xff] }
 0x154   :  { %3335 = vmatprep.mubr.bf16.mxu1 %v7578_v47  ;;  %v2544_v8 = vpop.f32.mrf.mxu0  ;;  %v7617_v14 = vpack.c.bf16 %v251_v19, %v239_v48  ;;  %v7619_v47 = vpack.c.bf16 %v253_v32, %v241_v12  ;;  %8977 = vst [vmem:[#allocation151_spill] sm:$0xff] %v7624_v49  ;;  %v263_v48 = vld [vmem:[%s8682_s0 + $0x7c0] sm:$0xff]  ;;  %v277_v32 = vld [vmem:[%s8682_s0 + $0x830] sm:$0xff] }
 0x155   :  { %8972 = vst [vmem:[#allocation146_spill] sm:$0xff] %v7591_v25  ;;  %v2705_v44 = vpop.f32.mrf.mxu1  ;;  %v7614_v1 = vadd.f32 %v2703_v29, %v2543_v50  ;;  %v2545_v13 = vadd.f32 %v2544_v8, %v7013_v63  ;;  %v7626_v25 = vpack.c.bf16 %v278_v31, %v266_v9  ;;  %v275_v19 = vld [vmem:[%s8682_s0 + $0x820] sm:$0xff]  ;;  %v290_v9 = vld [vmem:[%s8682_s0 + $0x898] sm:$0xff] }
 0x156   :  { %v2546_v7 = vpop.f32.mrf.mxu0  ;;  %8974 = vst [vmem:[#allocation148_spill] sm:$0xff] %v7617_v14  ;;  %8975 = vst [vmem:[#allocation149_spill] sm:$0xff] %v7619_v47  ;;  %v302_v31 = vld [vmem:[%s8682_s0 + $0x8f8] sm:$0xff] }
 0x157   :  { %8973 = vst [vmem:[#allocation147_spill] sm:$0xff] %v7614_v1  ;;  %v2707_v6 = vpop.f32.mrf.mxu1  ;;  %v7621_v18 = vadd.f32 %v2705_v44, %v2545_v13  ;;  %v2547_v5 = vadd.f32 %v2546_v7, %v7007_v23  ;;  %8978 = vst [vmem:[#allocation152_spill] sm:$0xff] %v7626_v25 }
 0x158   :  { %v2548_v52 = vpop.f32.mrf.mxu0 }
 0x159   :  { %8976 = vst [vmem:[#allocation150_spill] sm:$0xff] %v7621_v18  ;;  %v2709_v38 = vpop.f32.mrf.mxu1  ;;  %v7628_v29 = vadd.f32 %v2707_v6, %v2547_v5  ;;  %v2549_v50 = vadd.f32 %v2548_v52, %v7013_v63  ;;  %v265_v52 = vld [vmem:[%s8682_s0 + $0x7d0] sm:$0xff] }
 0x15a   :  { %v2552_v8 = vpop.f32.mrf.mxu0  ;;  %3175 = vmatmul.mubr.bf16.gmra.mxu0 %v7617_v14  ;;  %v7672_v14 = vpack.c.bf16 %v300_v27, %v288_v43 }
 0x15b   :  { %8979 = vst [vmem:[#allocation153_spill] sm:$0xff] %v7628_v29  ;;  %v2713_v1 = vpop.f32.mrf.mxu1  ;;  %3336 = vmatmul.mubr.bf16.gmra.mxu1 %v7619_v47  ;;  %v7639_v12 = vadd.f32 %v2709_v38, %v2549_v50  ;;  %v2553_v5 = vadd.f32 %v2552_v8, %v7007_v23  ;;  %3184 = vmatprep.mubr.bf16.mxu0 %v7624_v49 }
 0x15c   :  { %3345 = vmatprep.mubr.bf16.mxu1 %v7626_v25  ;;  %v2554_v38 = vpop.f32.mrf.mxu0  ;;  %v7665_v8 = vpack.c.bf16 %v275_v19, %v263_v48  ;;  %v7667_v25 = vpack.c.bf16 %v277_v32, %v265_v52  ;;  %8984 = vst [vmem:[#allocation158_spill] sm:$0xff] %v7672_v14  ;;  %v287_v48 = vld [vmem:[%s8682_s0 + $0x880] sm:$0xff]  ;;  %v301_v32 = vld [vmem:[%s8682_s0 + $0x8f0] sm:$0xff] }
 0x15d   :  { %8980 = vst [vmem:[#allocation154_spill] sm:$0xff] %v7639_v12  ;;  %v2715_v44 = vpop.f32.mrf.mxu1  ;;  %v7662_v13 = vadd.f32 %v2713_v1, %v2553_v5  ;;  %v2555_v7 = vadd.f32 %v2554_v38, %v7013_v63  ;;  %v7674_v12 = vpack.c.bf16 %v302_v31, %v290_v9 }
 0x15e   :  { %v2556_v6 = vpop.f32.mrf.mxu0  ;;  %8982 = vst [vmem:[#allocation156_spill] sm:$0xff] %v7665_v8  ;;  %8983 = vst [vmem:[#allocation157_spill] sm:$0xff] %v7667_v25 }
 0x15f   :  { %8981 = vst [vmem:[#allocation155_spill] sm:$0xff] %v7662_v13  ;;  %v2717_v50 = vpop.f32.mrf.mxu1  ;;  %v7669_v49 = vadd.f32 %v2715_v44, %v2555_v7  ;;  %v2557_v47 = vadd.f32 %v2556_v6, %v7007_v23  ;;  %8985 = vst [vmem:[#allocation159_spill] sm:$0xff] %v7674_v12  ;;  %v314_v44 = vld [vmem:[%s8682_s0 + $0x958] sm:$0xf] }
 0x160   :  { %v2558_v29 = vpop.f32.mrf.mxu0 }
 0x161   :  { %v2719_v18 = vpop.f32.mrf.mxu1  ;;  %v7676_v1 = vadd.f32 %v2717_v50, %v2557_v47  ;;  %v2559_v5 = vadd.f32 %v2558_v29, %v7013_v63  ;;  %v299_v47 = vld [vmem:[%s8682_s0 + $0x8e0] sm:$0xff]  ;;  %v289_v29 = vld [vmem:[%s8682_s0 + $0x890] sm:$0xff] }
 0x162   :  { %v2562_v38 = vpop.f32.mrf.mxu0  ;;  %3185 = vmatmul.mubr.bf16.gmra.mxu0 %v7665_v8  ;;  %v7707_v6 = vpack.c.bf16 %v299_v47, %v287_v48  ;;  %v7709_v50 = vpack.c.bf16 %v301_v32, %v289_v29 }
 0x163   :  { %v2723_v13 = vpop.f32.mrf.mxu1  ;;  %3346 = vmatmul.mubr.bf16.gmra.mxu1 %v7667_v25  ;;  %v7684_v19 = vadd.f32 %v2719_v18, %v2559_v5  ;;  %v2563_v52 = vadd.f32 %v2562_v38, %v7007_v23  ;;  %3194 = vmatprep.mubr.bf16.mxu0 %v7672_v14  ;;  %v312_v23 = vld [vmem:[%s8682_s0 + $0x948] sm:$0xf] }
 0x164   :  { %3355 = vmatprep.mubr.bf16.mxu1 %v7674_v12  ;;  %v2564_v18 = vpop.f32.mrf.mxu0  ;;  %8987 = vst [vmem:[#allocation161_spill] sm:$0xff] %v7707_v6  ;;  %8988 = vst [vmem:[#allocation162_spill] sm:$0xff] %v7709_v50  ;;  %v7713_v38 = vpack.c.bf16 %v312_v23, %v312_v23  ;;  %v7715_v12 = vpack.c.bf16 %v314_v44, %v314_v44 }
 0x165   :  { %8986 = vst [vmem:[#allocation160_spill] sm:$0xff] %v7684_v19  ;;  %v2725_v43 = vpop.f32.mrf.mxu1  ;;  %v7704_v27 = vadd.f32 %v2723_v13, %v2563_v52  ;;  %v2565_v9 = vadd.f32 %v2564_v18, %v7013_v63  ;;  %v311_v13 = vld [vmem:[%s8682_s0 + $0x940] sm:$0xf] }
 0x166   :  { %v2566_v31 = vpop.f32.mrf.mxu0  ;;  %8989 = vst [vmem:[#allocation163_spill] sm:$0xff] %v7713_v38  ;;  %8990 = vst [vmem:[#allocation164_spill] sm:$0xff] %v7715_v12 }
 0x167   :  { %v2727_v7 = vpop.f32.mrf.mxu1  ;;  %v7711_v5 = vadd.f32 %v2725_v43, %v2565_v9 }
 0x168   :  { %v2567_v14 = vpop.f32.mrf.mxu0 }
 0x169   :  { %v2728_v25 = vpop.f32.mrf.mxu1 }
 0x16a   :  { %v2764_v8 = vpop.f32.mrf.mxu0  ;;  %3195 = vmatmul.mubr.bf16.gmra.mxu0 %v7707_v6  ;;  %v313_v25 = vld [vmem:[%s8682_s0 + $0x950] sm:$0xf]  ;;  %v9038_v6 = vld [vmem:[#allocation26_spill] sm:$0xff] }
 0x16b   :  { %v2925_v19 = vpop.f32.mrf.mxu1  ;;  %3356 = vmatmul.mubr.bf16.gmra.mxu1 %v7709_v50  ;;  %v2765_v63 = vadd.f32 %v2764_v8, %v7038_v62  ;;  %3204 = vmatprep.mubr.bf16.mxu0 %v7713_v38  ;;  %v7731_v8 = vpack.c.bf16 %v311_v13, %v311_v13  ;;  %v7733_v32 = vpack.c.bf16 %v313_v25, %v313_v25 }
 0x16c   :  { %3365 = vmatprep.mubr.bf16.mxu1 %v7715_v12  ;;  %v2766_v14 = vpop.f32.mrf.mxu0 }
 0x16d   :  { %v2927_v48 = vpop.f32.mrf.mxu1  ;;  %v7728_v52 = vadd.f32 %v2925_v19, %v2765_v63  ;;  %v2767_v47 = vadd.f32 %v2766_v14, %v7045_v24  ;;  %8991 = vst [vmem:[#allocation165_spill] sm:$0xff] %v7731_v8  ;;  %8992 = vst [vmem:[#allocation166_spill] sm:$0xff] %v7733_v32 }
 0x16e   :  { %v2768_v29 = vpop.f32.mrf.mxu0 }
 0x16f   :  { %v2929_v62 = vpop.f32.mrf.mxu1  ;;  %v7735_v18 = vadd.f32 %v2927_v48, %v2767_v47  ;;  %v2769_v43 = vadd.f32 %v2768_v29, %v7052_v56 }
 0x170   :  { %v2770_v23 = vpop.f32.mrf.mxu0 }
 0x171   :  { %v2931_v44 = vpop.f32.mrf.mxu1  ;;  %v7738_v9 = vadd.f32 %v2929_v62, %v2769_v43  ;;  %v2771_v31 = vadd.f32 %v2770_v23, %v7069_v11  ;;  %v5445_v23 = vld [vmem:[%s8681_s1 + $0x458] ss:$12 sps:$4 sm:$0xff]  }
 0x172   :  { %v2774_v19 = vpop.f32.mrf.mxu0  ;;  %3205 = vmatmul.mubr.bf16.gmra.mxu0 %v7731_v8  ;;  %v9029_v8 = vld [vmem:[#allocation22_spill] sm:$0xff] }
 0x173   :  { %v2935_v7 = vpop.f32.mrf.mxu1  ;;  %3366 = vmatmul.mubr.bf16.gmra.mxu1 %v7733_v32  ;;  %v7743_v24 = vadd.f32 %v2931_v44, %v2771_v31  ;;  %v2775_v63 = vadd.f32 %v2774_v19, %v7083_v51  ;;  %3406 = vmatprep.mubr.bf16.mxu0 %v5685_v53  ;;  %v5442_v51 = vld [vmem:[%s8681_s1 + $0x3b0] ss:$12 sps:$4 sm:$0xff]  }
 0x174   :  { %3542 = vmatprep.mubr.bf16.mxu1 %v5687_v54  ;;  %v2776_v56 = vpop.f32.mrf.mxu0  ;;  %v5444_v53 = vld [vmem:[%s8681_s1 + $0x530] ss:$12 sps:$4 sm:$0xff]  }
 0x175   :  { %v2937_v13 = vpop.f32.mrf.mxu1  ;;  %v7748_v25 = vadd.f32 %v2935_v7, %v2775_v63  ;;  %v2777_v11 = vadd.f32 %v2776_v56, %v7099_v57  ;;  %v5448_v63 = vld [vmem:[%s8681_s1 + $0x518] ss:$12 sps:$4 sm:$0xff]  }
 0x176   :  { %v2778_v14 = vpop.f32.mrf.mxu0 }
 0x177   :  { %v2939_v48 = vpop.f32.mrf.mxu1  ;;  %v7751_v47 = vadd.f32 %v2937_v13, %v2777_v11  ;;  %v2779_v29 = vadd.f32 %v2778_v14, %v7112_v30  ;;  %v5447_v30 = vld [vmem:[%s8681_s1 + $0x5d8] ss:$12 sps:$4 sm:$0xff]  }
 0x178   :  { %v2780_v54 = vpop.f32.mrf.mxu0 }
 0x179   :  { %v2941_v62 = vpop.f32.mrf.mxu1  ;;  %v7760_v43 = vadd.f32 %v2939_v48, %v2779_v29  ;;  %v2781_v57 = vadd.f32 %v2780_v54, %v7153_v2  ;;  %v5446_v2 = vld [vmem:[%s8681_s1 + $0x398] ss:$12 sps:$4 sm:$0xff]  }
 0x17a   :  { %v2784_v44 = vpop.f32.mrf.mxu0  ;;  %3407 = vmatmul.mubr.bf16.vlgmr.msra.gmra.mxu0 %v5766_v16  ;;  %v5449_v16 = vld [vmem:[%s8681_s1 + $0x440] ss:$12 sps:$4 sm:$0xff]  }
 0x17b   :  { %v2945_v31 = vpop.f32.mrf.mxu1  ;;  %3543 = vmatmul.mubr.bf16.vlgmr.msra.gmra.mxu1 %v5768_v17  ;;  %v7771_v19 = vadd.f32 %v2941_v62, %v2781_v57  ;;  %v2785_v7 = vadd.f32 %v2784_v44, %v7158_v34  ;;  %4746 = vmatpush3.bf16.msra.mxu0 %v5442_v51  ;;  %v5451_v17 = vld [vmem:[%s8681_s1 + $0x5c0] ss:$12 sps:$4 sm:$0xff]   ;;  %v5455_v57 = vld [vmem:[%s8681_s1 + $0x5a8] ss:$12 sps:$4 sm:$0xff]  }
 0x17c   :  { %4840 = vmatpush3.bf16.msra.mxu1 %v5444_v53  ;;  %v2786_v56 = vpop.f32.mrf.mxu0  ;;  %3414 = vmatprep.mubr.bf16.mxu0 %v5776_v20  ;;  %v5450_v53 = vld [vmem:[%s8681_s1 + $0x380] ss:$12 sps:$4 sm:$0xff]  }
 0x17d   :  { %v2947_v13 = vpop.f32.mrf.mxu1  ;;  %3550 = vmatprep.mubr.bf16.mxu1 %v5778_v21  ;;  %v7788_v34 = vadd.f32 %v2945_v31, %v2785_v7  ;;  %v2787_v11 = vadd.f32 %v2786_v56, %v7167_v28  ;;  %4747 = vmatprep.subr.bf16.mxu0 %v5445_v23  ;;  %v5452_v28 = vld [vmem:[%s8681_s1 + $0x500] ss:$12 sps:$4 sm:$0xff]  }
 0x17e   :  { %4841 = vmatprep.subr.bf16.mxu1 %v5447_v30  ;;  %v2788_v14 = vpop.f32.mrf.mxu0 }
 0x17f   :  { %v2949_v48 = vpop.f32.mrf.mxu1  ;;  %v7791_v29 = vadd.f32 %v2947_v13, %v2787_v11  ;;  %v2789_v20 = vadd.f32 %v2788_v14, %v7178_v33  ;;  %4748 = vmatpush3.bf16.msra.mxu0 %v5446_v2  ;;  %v5453_v33 = vld [vmem:[%s8681_s1 + $0x428] ss:$12 sps:$4 sm:$0xff]   ;;  %v5460_v14 = vld [vmem:[%s8681_s1 + $0x4d0] ss:$12 sps:$4 sm:$0xff]  }
 0x180   :  { %4842 = vmatpush3.bf16.msra.mxu1 %v5448_v63  ;;  %v2790_v21 = vpop.f32.mrf.mxu0  ;;  %4749 = vmatprep.subr.bf16.mxu0 %v5449_v16  ;;  %v5454_v2 = vld [vmem:[%s8681_s1 + $0x368] ss:$12 sps:$4 sm:$0xff]  }
 0x181   :  { %v2951_v51 = vpop.f32.mrf.mxu1  ;;  %4843 = vmatprep.subr.bf16.mxu1 %v5451_v17  ;;  %v7800_v54 = vadd.f32 %v2949_v48, %v2789_v20  ;;  %v2791_v62 = vadd.f32 %v2790_v21, %v7219_v10  ;;  %v5463_v21 = vld [vmem:[%s8681_s1 + $0x578] ss:$12 sps:$4 sm:$0xff]  }
 0x182   :  { %v2794_v23 = vpop.f32.mrf.mxu0  ;;  %3415 = vmatmul.mubr.bf16.gmra.mxu0 %v5826_v36  ;;  %v5456_v36 = vld [vmem:[%s8681_s1 + $0x4e8] ss:$12 sps:$4 sm:$0xff]  }
 0x183   :  { %v2955_v30 = vpop.f32.mrf.mxu1  ;;  %3551 = vmatmul.mubr.bf16.gmra.mxu1 %v5828_v37  ;;  %v7811_v44 = vadd.f32 %v2951_v51, %v2791_v62  ;;  %v2795_v31 = vadd.f32 %v2794_v23, %v7230_v41  ;;  %3422 = vmatprep.mubr.bf16.mxu0 %v5833_v39  ;;  %v5457_v39 = vld [vmem:[%s8681_s1 + $0x410] ss:$12 sps:$4 sm:$0xff]  }
 0x184   :  { %3558 = vmatprep.mubr.bf16.mxu1 %v5835_v40  ;;  %v2796_v10 = vpop.f32.mrf.mxu0  ;;  %4750 = vmatpush3.bf16.msra.mxu0 %v5450_v53  ;;  %v5459_v40 = vld [vmem:[%s8681_s1 + $0x590] ss:$12 sps:$4 sm:$0xff]  }
 0x185   :  { %v2957_v7 = vpop.f32.mrf.mxu1  ;;  %4844 = vmatpush3.bf16.msra.mxu1 %v5452_v28  ;;  %v7822_v37 = vadd.f32 %v2955_v30, %v2795_v31  ;;  %v2797_v41 = vadd.f32 %v2796_v10, %v7243_v0  ;;  %4751 = vmatprep.subr.bf16.mxu0 %v5453_v33  ;;  %v5458_v0 = vld [vmem:[%s8681_s1 + $0x350] ss:$12 sps:$4 sm:$0xff]  }
 0x186   :  { %4845 = vmatprep.subr.bf16.mxu1 %v5455_v57  ;;  %v2798_v63 = vpop.f32.mrf.mxu0  ;;  %v5462_v57 = vld [vmem:[%s8681_s1 + $0x338] ss:$12 sps:$4 sm:$0xff]  }
 0x187   :  { %v2959_v56 = vpop.f32.mrf.mxu1  ;;  %v7831_v13 = vadd.f32 %v2957_v7, %v2797_v41  ;;  %v2799_v16 = vadd.f32 %v2798_v63, %v7256_v46  ;;  %v5461_v46 = vld [vmem:[%s8681_s1 + $0x3f8] ss:$12 sps:$4 sm:$0xff]   ;;  %v5471_v63 = vld [vmem:[%s8681_s1 + $0x548] ss:$12 sps:$4 sm:$0xff]  }
 0x188   :  { %v2800_v17 = vpop.f32.mrf.mxu0  ;;  %4752 = vmatpush3.bf16.msra.mxu0 %v5454_v2 }
 0x189   :  { %v2961_v11 = vpop.f32.mrf.mxu1  ;;  %4846 = vmatpush3.bf16.msra.mxu1 %v5456_v36  ;;  %v7840_v48 = vadd.f32 %v2959_v56, %v2799_v16  ;;  %v2801_v20 = vadd.f32 %v2800_v17, %v7288_v22  ;;  %4753 = vmatprep.subr.bf16.mxu0 %v5457_v39  ;;  %v5468_v36 = vld [vmem:[%s8681_s1 + $0x4a0] ss:$12 sps:$4 sm:$0xff]  }
 0x18a   :  { %4847 = vmatprep.subr.bf16.mxu1 %v5459_v40  ;;  %v2804_v51 = vpop.f32.mrf.mxu0  ;;  %3423 = vmatmul.mubr.bf16.gmra.mxu0 %v5886_v58  ;;  %v5464_v58 = vld [vmem:[%s8681_s1 + $0x4b8] ss:$12 sps:$4 sm:$0xff]   ;;  %v8993_v39 = vld [vmem:[#allocation111_spill] sm:$0xff] }
 0x18b   :  { %v2965_v53 = vpop.f32.mrf.mxu1  ;;  %3559 = vmatmul.mubr.bf16.gmra.mxu1 %v5888_v59  ;;  %v7851_v28 = vadd.f32 %v2961_v11, %v2801_v20  ;;  %v2805_v22 = vadd.f32 %v2804_v51, %v7296_v4  ;;  %3430 = vmatprep.mubr.bf16.mxu0 %v5890_v60  ;;  %v5465_v60 = vld [vmem:[%s8681_s1 + $0x3e0] ss:$12 sps:$4 sm:$0xff]   ;;  %v8996_v20 = vld [vmem:[#allocation4_spill] sm:$0xff] }
 0x18c   :  { %3566 = vmatprep.mubr.bf16.mxu1 %v5892_v61  ;;  %v2806_v62 = vpop.f32.mrf.mxu0  ;;  %4754 = vmatpush3.bf16.msra.mxu0 %v5458_v0  ;;  %v5467_v61 = vld [vmem:[%s8681_s1 + $0x560] ss:$12 sps:$4 sm:$0xff]  }
 0x18d   :  { %v2967_v33 = vpop.f32.mrf.mxu1  ;;  %4848 = vmatpush3.bf16.msra.mxu1 %v5460_v14  ;;  %v7862_v59 = vadd.f32 %v2965_v53, %v2805_v22  ;;  %v2807_v4 = vadd.f32 %v2806_v62, %v7315_v35  ;;  %4755 = vmatprep.subr.bf16.mxu0 %v5461_v46  ;;  %v5466_v35 = vld [vmem:[%s8681_s1 + $0x320] ss:$12 sps:$4 sm:$0xff]   ;;  %v8997_v46 = vld [vmem:[#allocation5_spill] sm:$0xff]  ;;  %v5470_v53 = vld [vmem:[%s8681_s1 + $0x308] ss:$12 sps:$4 sm:$0xff]  }
 0x18e   :  { %4849 = vmatprep.subr.bf16.mxu1 %v5463_v21  ;;  %v2808_v23 = vpop.f32.mrf.mxu0  ;;  %v8994_v17 = vld [vmem:[#allocation2_spill] sm:$0xff]  ;;  %v8995_v11 = vld [vmem:[#allocation3_spill] sm:$0xff] }
 0x18f   :  { %v2969_v30 = vpop.f32.mrf.mxu1  ;;  %v7871_v31 = vadd.f32 %v2967_v33, %v2807_v4  ;;  %v2809_v10 = vadd.f32 %v2808_v23, %v7328_v45  ;;  %v5469_v45 = vld [vmem:[%s8681_s1 + $0x3c8] ss:$12 sps:$4 sm:$0xff]   ;;  %v5473_v33 = vld [vmem:[%s8681_s1 + $0x770] ss:$12 sps:$4 sm:$0xff]  }
 0x190   :  { %v2810_v7 = vpop.f32.mrf.mxu0  ;;  %4756 = vmatpush3.bf16.msra.mxu0 %v5462_v57  ;;  %v5472_v22 = vld [vmem:[%s8681_s1 + $0x488] ss:$12 sps:$4 sm:$0xff]   ;;  %v5475_v57 = vld [vmem:[%s8681_s1 + $0x8f0] ss:$12 sps:$4 sm:$0xff]  }
 0x191   :  { %v2971_v2 = vpop.f32.mrf.mxu1  ;;  %4850 = vmatpush3.bf16.msra.mxu1 %v5464_v58  ;;  %v7880_v41 = vadd.f32 %v2969_v30, %v2809_v10  ;;  %v2811_v40 = vadd.f32 %v2810_v7, %v8993_v39  ;;  %4757 = vmatprep.subr.bf16.mxu0 %v5465_v60 }
 0x192   :  { %4851 = vmatprep.subr.bf16.mxu1 %v5467_v61  ;;  %v2814_v56 = vpop.f32.mrf.mxu0  ;;  %3431 = vmatmul.mubr.bf16.gmra.mxu0 %v8994_v17 }
 0x193   :  { %v2975_v16 = vpop.f32.mrf.mxu1  ;;  %3567 = vmatmul.mubr.bf16.gmra.mxu1 %v8995_v11  ;;  %v7891_v0 = vadd.f32 %v2971_v2, %v2811_v40  ;;  %v2815_v14 = vadd.f32 %v2814_v56, %v7374_v55  ;;  %3438 = vmatprep.mubr.bf16.mxu0 %v8996_v20  ;;  %v9000_v40 = vld [vmem:[#allocation8_spill] sm:$0xff] }
 0x194   :  { %3574 = vmatprep.mubr.bf16.mxu1 %v8997_v46  ;;  %v2816_v21 = vpop.f32.mrf.mxu0  ;;  %4758 = vmatpush3.bf16.msra.mxu0 %v5466_v35  ;;  %v8998_v35 = vld [vmem:[#allocation6_spill] sm:$0xff]  ;;  %v9003_v46 = vld [vmem:[#allocation121_spill] sm:$0xff] }
 0x195   :  { %v2977_v51 = vpop.f32.mrf.mxu1  ;;  %4852 = vmatpush3.bf16.msra.mxu1 %v5468_v36  ;;  %v7902_v62 = vadd.f32 %v2975_v16, %v2815_v14  ;;  %v2817_v55 = vadd.f32 %v2816_v21, %v7381_v15  ;;  %4759 = vmatprep.subr.bf16.mxu0 %v5469_v45  ;;  %v8999_v36 = vld [vmem:[#allocation7_spill] sm:$0xff]  ;;  %v9001_v45 = vld [vmem:[#allocation9_spill] sm:$0xff] }
 0x196   :  { %4853 = vmatprep.subr.bf16.mxu1 %v5471_v63  ;;  %v2818_v58 = vpop.f32.mrf.mxu0 }
 0x197   :  { %v2979_v4 = vpop.f32.mrf.mxu1  ;;  %v7911_v60 = vadd.f32 %v2977_v51, %v2817_v55  ;;  %v2819_v61 = vadd.f32 %v2818_v58, %v7388_v42  ;;  %v9005_v58 = vld [vmem:[#allocation10_spill] sm:$0xff] }
 0x198   :  { %v2820_v23 = vpop.f32.mrf.mxu0  ;;  %4760 = vmatpush3.bf16.msra.mxu0 %v5470_v53 }
 0x199   :  { %v2981_v30 = vpop.f32.mrf.mxu1  ;;  %4854 = vmatpush3.bf16.msra.mxu1 %v5472_v22  ;;  %v7914_v15 = vadd.f32 %v2979_v4, %v2819_v61  ;;  %v2821_v10 = vadd.f32 %v2820_v23, %v7408_v26  ;;  %4933 = vmatprep.subr.bf16.mxu0 %v5473_v33  ;;  %v9002_v26 = vld [vmem:[#allocation118_spill] sm:$0xff]  ;;  %v9006_v4 = vld [vmem:[#allocation11_spill] sm:$0xff] }
 0x19a   :  { %5027 = vmatprep.subr.bf16.mxu1 %v5475_v57  ;;  %v2824_v7 = vpop.f32.mrf.mxu0  ;;  %3439 = vmatmul.mubr.bf16.gmra.mxu0 %v8998_v35  ;;  %v9007_v23 = vld [vmem:[#allocation123_spill] sm:$0xff] }
 0x19b   :  { %v2985_v2 = vpop.f32.mrf.mxu1  ;;  %3575 = vmatmul.mubr.bf16.gmra.mxu1 %v8999_v36  ;;  %v7919_v39 = vadd.f32 %v2981_v30, %v2821_v10  ;;  %v2825_v42 = vadd.f32 %v2824_v7, %v7422_v3  ;;  %3446 = vmatprep.mubr.bf16.mxu0 %v9000_v40  ;;  %v9004_v3 = vld [vmem:[#allocation122_spill] sm:$0xff]  ;;  %v9008_v10 = vld [vmem:[#allocation12_spill] sm:$0xff]  ;;  %v9009_v7 = vld [vmem:[#allocation13_spill] sm:$0xff] }
 0x19c   :  { %3582 = vmatprep.mubr.bf16.mxu1 %v9001_v45  ;;  %v2826_v63 = vpop.f32.mrf.mxu0 }
 0x19d   :  { %v2987_v56 = vpop.f32.mrf.mxu1  ;;  %v7924_v16 = vadd.f32 %v2985_v2, %v2825_v42  ;;  %v2827_v17 = vadd.f32 %v2826_v63, %v9002_v26  ;;  %v9010_v42 = vld [vmem:[#allocation126_spill] sm:$0xff]  ;;  %v9011_v26 = vld [vmem:[#allocation129_spill] sm:$0xff] }
 0x19e   :  { %v2828_v11 = vpop.f32.mrf.mxu0 }
 0x19f   :  { %v2989_v14 = vpop.f32.mrf.mxu1  ;;  %v7927_v20 = vadd.f32 %v2987_v56, %v2827_v17  ;;  %v2829_v21 = vadd.f32 %v2828_v11, %v9003_v46 }
 0x1a0   :  { %v2830_v51 = vpop.f32.mrf.mxu0 }
 0x1a1   :  { %v2991_v53 = vpop.f32.mrf.mxu1  ;;  %v7930_v22 = vadd.f32 %v2989_v14, %v2829_v21  ;;  %v2831_v55 = vadd.f32 %v2830_v51, %v9004_v3  ;;  %v9012_v21 = vld [vmem:[#allocation130_spill] sm:$0xff] }
 0x1a2   :  { %v2834_v33 = vpop.f32.mrf.mxu0  ;;  %3447 = vmatmul.mubr.bf16.gmra.mxu0 %v9005_v58  ;;  %v9015_v58 = vld [vmem:[#allocation131_spill] sm:$0xff] }
 0x1a3   :  { %v2995_v57 = vpop.f32.mrf.mxu1  ;;  %3583 = vmatmul.mubr.bf16.gmra.mxu1 %v9006_v4  ;;  %v7935_v61 = vadd.f32 %v2991_v53, %v2831_v55  ;;  %v2835_v30 = vadd.f32 %v2834_v33, %v9007_v23  ;;  %3454 = vmatprep.mubr.bf16.mxu0 %v9008_v10  ;;  %v9013_v55 = vld [vmem:[#allocation14_spill] sm:$0xff]  ;;  %v9014_v33 = vld [vmem:[#allocation15_spill] sm:$0xff]  ;;  %v9016_v23 = vld [vmem:[#allocation16_spill] sm:$0xff] }
 0x1a4   :  { %3590 = vmatprep.mubr.bf16.mxu1 %v9009_v7  ;;  %v2836_v2 = vpop.f32.mrf.mxu0 }
 0x1a5   :  { %v2997_v35 = vpop.f32.mrf.mxu1  ;;  %v7940_v36 = vadd.f32 %v2995_v57, %v2835_v30  ;;  %v2837_v40 = vadd.f32 %v2836_v2, %v9010_v42  ;;  %v9017_v30 = vld [vmem:[#allocation17_spill] sm:$0xff] }
 0x1a6   :  { %v2838_v45 = vpop.f32.mrf.mxu0 }
 0x1a7   :  { %v2999_v63 = vpop.f32.mrf.mxu1  ;;  %v7943_v56 = vadd.f32 %v2997_v35, %v2837_v40  ;;  %v2839_v17 = vadd.f32 %v2838_v45, %v9011_v26  ;;  %v9018_v35 = vld [vmem:[#allocation134_spill] sm:$0xff]  ;;  %v9019_v26 = vld [vmem:[#allocation137_spill] sm:$0xff] }
 0x1a8   :  { %v2840_v11 = vpop.f32.mrf.mxu0 }
 0x1a9   :  { %v3001_v14 = vpop.f32.mrf.mxu1  ;;  %v7946_v46 = vadd.f32 %v2999_v63, %v2839_v17  ;;  %v2841_v51 = vadd.f32 %v2840_v11, %v9012_v21 }
 0x1aa   :  { %v2844_v53 = vpop.f32.mrf.mxu0  ;;  %3455 = vmatmul.mubr.bf16.gmra.mxu0 %v9013_v55 }
 0x1ab   :  { %v3005_v3 = vpop.f32.mrf.mxu1  ;;  %3591 = vmatmul.mubr.bf16.gmra.mxu1 %v9014_v33  ;;  %v7951_v57 = vadd.f32 %v3001_v14, %v2841_v51  ;;  %v2845_v4 = vadd.f32 %v2844_v53, %v9015_v58  ;;  %3462 = vmatprep.mubr.bf16.mxu0 %v9016_v23  ;;  %v9020_v51 = vld [vmem:[#allocation138_spill] sm:$0xff]  ;;  %v9023_v23 = vld [vmem:[#allocation139_spill] sm:$0xff] }
 0x1ac   :  { %3598 = vmatprep.mubr.bf16.mxu1 %v9017_v30  ;;  %v2846_v10 = vpop.f32.mrf.mxu0  ;;  %v9021_v58 = vld [vmem:[#allocation18_spill] sm:$0xff] }
 0x1ad   :  { %v3007_v7 = vpop.f32.mrf.mxu1  ;;  %v7956_v2 = vadd.f32 %v3005_v3, %v2845_v4  ;;  %v2847_v42 = vadd.f32 %v2846_v10, %v9018_v35  ;;  %v9022_v3 = vld [vmem:[#allocation19_spill] sm:$0xff]  ;;  %v9024_v10 = vld [vmem:[#allocation20_spill] sm:$0xff] }
 0x1ae   :  { %v2848_v40 = vpop.f32.mrf.mxu0 }
 0x1af   :  { %v3009_v45 = vpop.f32.mrf.mxu1  ;;  %v7959_v63 = vadd.f32 %v3007_v7, %v2847_v42  ;;  %v2849_v17 = vadd.f32 %v2848_v40, %v9019_v26  ;;  %v9025_v7 = vld [vmem:[#allocation21_spill] sm:$0xff] }
 0x1b0   :  { %v2850_v11 = vpop.f32.mrf.mxu0 }
 0x1b1   :  { %v3011_v14 = vpop.f32.mrf.mxu1  ;;  %v7962_v21 = vadd.f32 %v3009_v45, %v2849_v17  ;;  %v2851_v53 = vadd.f32 %v2850_v11, %v9020_v51  ;;  %v9026_v45 = vld [vmem:[#allocation142_spill] sm:$0xff] }
 0x1b2   :  { %v2854_v55 = vpop.f32.mrf.mxu0  ;;  %3463 = vmatmul.mubr.bf16.gmra.mxu0 %v9021_v58  ;;  %v9027_v58 = vld [vmem:[#allocation145_spill] sm:$0xff] }
 0x1b3   :  { %v3015_v33 = vpop.f32.mrf.mxu1  ;;  %3599 = vmatmul.mubr.bf16.gmra.mxu1 %v9022_v3  ;;  %v7967_v4 = vadd.f32 %v3011_v14, %v2851_v53  ;;  %v2855_v30 = vadd.f32 %v2854_v55, %v9023_v23  ;;  %3470 = vmatprep.mubr.bf16.mxu0 %v9024_v10  ;;  %v9028_v55 = vld [vmem:[#allocation146_spill] sm:$0xff] }
 0x1b4   :  { %3606 = vmatprep.mubr.bf16.mxu1 %v9025_v7  ;;  %v2856_v35 = vpop.f32.mrf.mxu0 }
 0x1b5   :  { %v3017_v42 = vpop.f32.mrf.mxu1  ;;  %v7972_v40 = vadd.f32 %v3015_v33, %v2855_v30  ;;  %v2857_v26 = vadd.f32 %v2856_v35, %v9026_v45  ;;  %v9030_v33 = vld [vmem:[#allocation23_spill] sm:$0xff] }
 0x1b6   :  { %v2858_v17 = vpop.f32.mrf.mxu0  ;;  %v9031_v35 = vld [vmem:[#allocation147_spill] sm:$0xff] }
 0x1b7   :  { %v3019_v11 = vpop.f32.mrf.mxu1  ;;  %v7975_v51 = vadd.f32 %v3017_v42, %v2857_v26  ;;  %v2859_v3 = vadd.f32 %v2858_v17, %v9027_v58  ;;  %v9032_v42 = vld [vmem:[#allocation24_spill] sm:$0xff]  ;;  %v9033_v26 = vld [vmem:[#allocation25_spill] sm:$0xff] }
 0x1b8   :  { %v2860_v14 = vpop.f32.mrf.mxu0 }
 0x1b9   :  { %v3021_v53 = vpop.f32.mrf.mxu1  ;;  %v7978_v32 = vadd.f32 %v3019_v11, %v2859_v3  ;;  %v2861_v23 = vadd.f32 %v2860_v14, %v9028_v55  ;;  %v9034_v3 = vld [vmem:[#allocation150_spill] sm:$0xff] }
 0x1ba   :  { %v2864_v10 = vpop.f32.mrf.mxu0  ;;  %3471 = vmatmul.mubr.bf16.gmra.mxu0 %v9029_v8  ;;  %v9035_v8 = vld [vmem:[#allocation153_spill] sm:$0xff] }
 0x1bb   :  { %v3025_v7 = vpop.f32.mrf.mxu1  ;;  %3607 = vmatmul.mubr.bf16.gmra.mxu1 %v9030_v33  ;;  %v7983_v30 = vadd.f32 %v3021_v53, %v2861_v23  ;;  %v2865_v45 = vadd.f32 %v2864_v10, %v9031_v35  ;;  %3478 = vmatprep.mubr.bf16.mxu0 %v9032_v42  ;;  %v9037_v10 = vld [vmem:[#allocation154_spill] sm:$0xff] }
 0x1bc   :  { %3614 = vmatprep.mubr.bf16.mxu1 %v9033_v26  ;;  %v2866_v17 = vpop.f32.mrf.mxu0 }
 0x1bd   :  { %v3027_v58 = vpop.f32.mrf.mxu1  ;;  %v7988_v11 = vadd.f32 %v3025_v7, %v2865_v45  ;;  %v2867_v14 = vadd.f32 %v2866_v17, %v9034_v3  ;;  %v9039_v7 = vld [vmem:[#allocation27_spill] sm:$0xff] }
 0x1be   :  { %v2868_v55 = vpop.f32.mrf.mxu0  ;;  %v9041_v17 = vld [vmem:[#allocation155_spill] sm:$0xff] }
 0x1bf   :  { %v3029_v12 = vpop.f32.mrf.mxu1  ;;  %v7991_v38 = vadd.f32 %v3027_v58, %v2867_v14  ;;  %v2869_v33 = vadd.f32 %v2868_v55, %v9035_v8  ;;  %v9042_v58 = vld [vmem:[#allocation28_spill] sm:$0xff]  ;;  %v9043_v14 = vld [vmem:[#allocation29_spill] sm:$0xff] }
 0x1c0   :  { %v2870_v53 = vpop.f32.mrf.mxu0 }
 0x1c1   :  { %v3031_v23 = vpop.f32.mrf.mxu1  ;;  %v7994_v50 = vadd.f32 %v3029_v12, %v2869_v33  ;;  %v2871_v35 = vadd.f32 %v2870_v53, %v9037_v10 }
 0x1c2   :  { %v2874_v42 = vpop.f32.mrf.mxu0  ;;  %3479 = vmatmul.mubr.bf16.gmra.mxu0 %v9038_v6 }
 0x1c3   :  { %9036 = vst [vmem:[#allocation111_spill] sm:$0xff] %v7994_v50  ;;  %v3035_v26 = vpop.f32.mrf.mxu1  ;;  %3615 = vmatmul.mubr.bf16.gmra.mxu1 %v9039_v7  ;;  %v7999_v45 = vadd.f32 %v3031_v23, %v2871_v35  ;;  %v2875_v3 = vadd.f32 %v2874_v42, %v9041_v17  ;;  %3486 = vmatprep.mubr.bf16.mxu0 %v9042_v58  ;;  %v9044_v42 = vld [vmem:[#allocation160_spill] sm:$0xff] }
 0x1c4   :  { %3622 = vmatprep.mubr.bf16.mxu1 %v9043_v14  ;;  %v2876_v55 = vpop.f32.mrf.mxu0 }
 0x1c5   :  { %9040 = vst [vmem:[#allocation2_spill] sm:$0xff] %v7999_v45  ;;  %v3037_v8 = vpop.f32.mrf.mxu1  ;;  %v8004_v12 = vadd.f32 %v3035_v26, %v2875_v3  ;;  %v2877_v33 = vadd.f32 %v2876_v55, %v7669_v49  ;;  %v9045_v45 = vld [vmem:[#allocation30_spill] sm:$0xff]  ;;  %v9046_v26 = vld [vmem:[#allocation31_spill] sm:$0xff]  ;;  %v9048_v55 = vld [vmem:[#allocation32_spill] sm:$0xff] }
 0x1c6   :  { %v2878_v53 = vpop.f32.mrf.mxu0 }
 0x1c7   :  { %v3039_v10 = vpop.f32.mrf.mxu1  ;;  %v8007_v50 = vadd.f32 %v3037_v8, %v2877_v33  ;;  %v2879_v6 = vadd.f32 %v2878_v53, %v7676_v1  ;;  %v9049_v8 = vld [vmem:[#allocation33_spill] sm:$0xff] }
 0x1c8   :  { %v2880_v23 = vpop.f32.mrf.mxu0 }
 0x1c9   :  { %v3041_v35 = vpop.f32.mrf.mxu1  ;;  %v8010_v7 = vadd.f32 %v3039_v10, %v2879_v6  ;;  %v2881_v17 = vadd.f32 %v2880_v23, %v9044_v42 }
 0x1ca   :  { %v2884_v58 = vpop.f32.mrf.mxu0  ;;  %3487 = vmatmul.mubr.bf16.gmra.mxu0 %v9045_v45 }
 0x1cb   :  { %v3045_v14 = vpop.f32.mrf.mxu1  ;;  %3623 = vmatmul.mubr.bf16.gmra.mxu1 %v9046_v26  ;;  %v8015_v3 = vadd.f32 %v3041_v35, %v2881_v17  ;;  %v2885_v49 = vadd.f32 %v2884_v58, %v7704_v27  ;;  %3494 = vmatprep.mubr.bf16.mxu0 %v9048_v55  ;;  %v9051_v27 = vld [vmem:[#allocation35_spill] sm:$0xff]  ;;  %v9052_v55 = vld [vmem:[#allocation36_spill] sm:$0xff] }
 0x1cc   :  { %3630 = vmatprep.mubr.bf16.mxu1 %v9049_v8  ;;  %v2886_v1 = vpop.f32.mrf.mxu0 }
 0x1cd   :  { %9047 = vst [vmem:[#allocation3_spill] sm:$0xff] %v8015_v3  ;;  %v3047_v33 = vpop.f32.mrf.mxu1  ;;  %v8020_v53 = vadd.f32 %v3045_v14, %v2885_v49  ;;  %v2887_v10 = vadd.f32 %v2886_v1, %v7711_v5  ;;  %v9050_v3 = vld [vmem:[#allocation34_spill] sm:$0xff]  ;;  %v9053_v14 = vld [vmem:[#allocation37_spill] sm:$0xff] }
 0x1ce   :  { %v2888_v6 = vpop.f32.mrf.mxu0 }
 0x1cf   :  { %v3049_v23 = vpop.f32.mrf.mxu1  ;;  %v8023_v42 = vadd.f32 %v3047_v33, %v2887_v10 }
 0x1d0   :  { %v2889_v45 = vpop.f32.mrf.mxu0 }
 0x1d1   :  { %v3050_v26 = vpop.f32.mrf.mxu1 }
 0x1d2   :  { %v3086_v35 = vpop.f32.mrf.mxu0  ;;  %3495 = vmatmul.mubr.bf16.gmra.mxu0 %v9050_v3 }
 0x1d3   :  { %v3247_v17 = vpop.f32.mrf.mxu1  ;;  %3631 = vmatmul.mubr.bf16.gmra.mxu1 %v9051_v27  ;;  %v3087_v58 = vadd.f32 %v3086_v35, %v7728_v52  ;;  %3502 = vmatprep.mubr.bf16.mxu0 %v9052_v55  ;;  %v9055_v27 = vld [vmem:[#allocation39_spill] sm:$0xff]  ;;  %v9056_v55 = vld [vmem:[#allocation40_spill] sm:$0xff] }
 0x1d4   :  { %3638 = vmatprep.mubr.bf16.mxu1 %v9053_v14  ;;  %v3088_v49 = vpop.f32.mrf.mxu0  ;;  %v9057_v14 = vld [vmem:[#allocation41_spill] sm:$0xff] }
 0x1d5   :  { %v3249_v5 = vpop.f32.mrf.mxu1  ;;  %v3248_v8 = vadd.f32 %v3247_v17, %v3087_v58  ;;  %v3089_v1 = vadd.f32 %v3088_v49, %v7735_v18  ;;  %v9054_v17 = vld [vmem:[#allocation38_spill] sm:$0xff] }
 0x1d6   :  { %v3090_v33 = vpop.f32.mrf.mxu0 }
 0x1d7   :  { %v3251_v10 = vpop.f32.mrf.mxu1  ;;  %4190 = vst [vmem:[%s8684_s3] sm:$0xff] %v3248_v8  ;;  %v3250_v3 = vadd.f32 %v3249_v5, %v3089_v1  ;;  %v3091_v6 = vadd.f32 %v3090_v33, %v7738_v9 }
 0x1d8   :  { %v3092_v23 = vpop.f32.mrf.mxu0 }
 0x1d9   :  { %v3253_v52 = vpop.f32.mrf.mxu1  ;;  %4191 = vst [vmem:[%s8684_s3 + $0x8] sm:$0xff] %v3250_v3  ;;  %v3252_v45 = vadd.f32 %v3251_v10, %v3091_v6  ;;  %v3093_v26 = vadd.f32 %v3092_v23, %v7743_v24  ;;  %v5474_v3 = vld [vmem:[%s8681_s1 + $0x6b0] ss:$12 sps:$4 sm:$0xff]  }
 0x1da   :  { %v3096_v35 = vpop.f32.mrf.mxu0  ;;  %3503 = vmatmul.mubr.bf16.gmra.mxu0 %v9054_v17  ;;  %v5476_v6 = vld [vmem:[%s8681_s1 + $0x830] ss:$12 sps:$4 sm:$0xff]   ;;  %v9058_v17 = vld [vmem:[#allocation42_spill] sm:$0xff] }
 0x1db   :  { %v3257_v18 = vpop.f32.mrf.mxu1  ;;  %3639 = vmatmul.mubr.bf16.gmra.mxu1 %v9055_v27  ;;  %4193 = vst [vmem:[%s8684_s3 + $0x18] sm:$0xff] %v3252_v45  ;;  %v3254_v9 = vadd.f32 %v3253_v52, %v3093_v26  ;;  %v3097_v58 = vadd.f32 %v3096_v35, %v7748_v25  ;;  %3678 = vmatprep.mubr.bf16.mxu0 %v9056_v55  ;;  %v5479_v26 = vld [vmem:[%s8681_s1 + $0x8d8] ss:$12 sps:$4 sm:$0xff]   ;;  %v9059_v27 = vld [vmem:[#allocation43_spill] sm:$0xff] }
 0x1dc   :  { %3814 = vmatprep.mubr.bf16.mxu1 %v9057_v14  ;;  %v3098_v49 = vpop.f32.mrf.mxu0  ;;  %v5480_v55 = vld [vmem:[%s8681_s1 + $0x818] ss:$12 sps:$4 sm:$0xff]  }
 0x1dd   :  { %v3259_v5 = vpop.f32.mrf.mxu1  ;;  %4194 = vst [vmem:[%s8684_s3 + $0x20] sm:$0xff] %v3254_v9  ;;  %v3258_v24 = vadd.f32 %v3257_v18, %v3097_v58  ;;  %v3099_v8 = vadd.f32 %v3098_v49, %v7751_v47  ;;  %v5478_v58 = vld [vmem:[%s8681_s1 + $0x698] ss:$12 sps:$4 sm:$0xff]  }
 0x1de   :  { %v3100_v1 = vpop.f32.mrf.mxu0 }
 0x1df   :  { %v3261_v33 = vpop.f32.mrf.mxu1  ;;  %4196 = vst [vmem:[%s8684_s3 + $0x30] sm:$0xff] %v3258_v24  ;;  %v3260_v25 = vadd.f32 %v3259_v5, %v3099_v8  ;;  %v3101_v10 = vadd.f32 %v3100_v1, %v7760_v43  ;;  %v5477_v43 = vld [vmem:[%s8681_s1 + $0x758] ss:$12 sps:$4 sm:$0xff]   ;;  %v9060_v5 = vld [vmem:[#allocation44_spill] sm:$0xff]  ;;  %v5483_v8 = vld [vmem:[%s8681_s1 + $0x8c0] ss:$12 sps:$4 sm:$0xff]  }
 0x1e0   :  { %v3102_v23 = vpop.f32.mrf.mxu0  ;;  %v9061_v24 = vld [vmem:[#allocation45_spill] sm:$0xff] }
 0x1e1   :  { %v3263_v52 = vpop.f32.mrf.mxu1  ;;  %4197 = vst [vmem:[%s8684_s3 + $0x38] sm:$0xff] %v3260_v25  ;;  %v3262_v47 = vadd.f32 %v3261_v33, %v3101_v10  ;;  %v3103_v45 = vadd.f32 %v3102_v23, %v7771_v19 }
 0x1e2   :  { %v3106_v35 = vpop.f32.mrf.mxu0  ;;  %3679 = vmatmul.mubr.bf16.vlgmr.msra.gmra.mxu0 %v9058_v17  ;;  %v9062_v17 = vld [vmem:[#allocation46_spill] sm:$0xff] }
 0x1e3   :  { %v3267_v18 = vpop.f32.mrf.mxu1  ;;  %3815 = vmatmul.mubr.bf16.vlgmr.msra.gmra.mxu1 %v9059_v27  ;;  %4199 = vst [vmem:[%s8684_s3 + $0x48] sm:$0xff] %v3262_v47  ;;  %v3264_v9 = vadd.f32 %v3263_v52, %v3103_v45  ;;  %v3107_v19 = vadd.f32 %v3106_v35, %v7788_v34  ;;  %4934 = vmatpush3.bf16.msra.mxu0 %v5474_v3  ;;  %v5481_v34 = vld [vmem:[%s8681_s1 + $0x740] ss:$12 sps:$4 sm:$0xff]  }
 0x1e4   :  { %5028 = vmatpush3.bf16.msra.mxu1 %v5476_v6  ;;  %v3108_v14 = vpop.f32.mrf.mxu0  ;;  %3686 = vmatprep.mubr.bf16.mxu0 %v9060_v5  ;;  %v5484_v47 = vld [vmem:[%s8681_s1 + $0x800] ss:$12 sps:$4 sm:$0xff]   ;;  %v5488_v5 = vld [vmem:[%s8681_s1 + $0x7e8] ss:$12 sps:$4 sm:$0xff]  }
 0x1e5   :  { %v3269_v49 = vpop.f32.mrf.mxu1  ;;  %3822 = vmatprep.mubr.bf16.mxu1 %v9061_v24  ;;  %4200 = vst [vmem:[%s8684_s3 + $0x50] sm:$0xff] %v3264_v9  ;;  %v3268_v1 = vadd.f32 %v3267_v18, %v3107_v19  ;;  %v3109_v33 = vadd.f32 %v3108_v14, %v7791_v29  ;;  %4935 = vmatprep.subr.bf16.mxu0 %v5477_v43  ;;  %v5482_v29 = vld [vmem:[%s8681_s1 + $0x680] ss:$12 sps:$4 sm:$0xff]   ;;  %v5485_v43 = vld [vmem:[%s8681_s1 + $0x728] ss:$12 sps:$4 sm:$0xff]  }
 0x1e6   :  { %5029 = vmatprep.subr.bf16.mxu1 %v5479_v26  ;;  %v3110_v25 = vpop.f32.mrf.mxu0  ;;  %v5487_v26 = vld [vmem:[%s8681_s1 + $0x8a8] ss:$12 sps:$4 sm:$0xff]  }
 0x1e7   :  { %v3271_v10 = vpop.f32.mrf.mxu1  ;;  %4202 = vst [vmem:[%s8684_s3 + $0x60] sm:$0xff] %v3268_v1  ;;  %v3270_v3 = vadd.f32 %v3269_v49, %v3109_v33  ;;  %v3111_v6 = vadd.f32 %v3110_v25, %v7800_v54  ;;  %4936 = vmatpush3.bf16.msra.mxu0 %v5478_v58  ;;  %v9063_v27 = vld [vmem:[#allocation47_spill] sm:$0xff]  ;;  %v9064_v19 = vld [vmem:[#allocation48_spill] sm:$0xff]  ;;  %v9065_v58 = vld [vmem:[#allocation49_spill] sm:$0xff] }
 0x1e8   :  { %5030 = vmatpush3.bf16.msra.mxu1 %v5480_v55  ;;  %v3112_v23 = vpop.f32.mrf.mxu0  ;;  %4937 = vmatprep.subr.bf16.mxu0 %v5481_v34  ;;  %v5486_v49 = vld [vmem:[%s8681_s1 + $0x668] ss:$12 sps:$4 sm:$0xff]   ;;  %v5489_v34 = vld [vmem:[%s8681_s1 + $0x710] ss:$12 sps:$4 sm:$0xff]  }
 0x1e9   :  { %v3273_v52 = vpop.f32.mrf.mxu1  ;;  %5031 = vmatprep.subr.bf16.mxu1 %v5483_v8  ;;  %4203 = vst [vmem:[%s8684_s3 + $0x68] sm:$0xff] %v3270_v3  ;;  %v3272_v45 = vadd.f32 %v3271_v10, %v3111_v6  ;;  %v3113_v54 = vadd.f32 %v3112_v23, %v7811_v44  ;;  %v5491_v8 = vld [vmem:[%s8681_s1 + $0x890] ss:$12 sps:$4 sm:$0xff]  }
 0x1ea   :  { %v3116_v35 = vpop.f32.mrf.mxu0  ;;  %3687 = vmatmul.mubr.bf16.gmra.mxu0 %v9062_v17  ;;  %v5490_v6 = vld [vmem:[%s8681_s1 + $0x650] ss:$12 sps:$4 sm:$0xff]  }
 0x1eb   :  { %v3277_v18 = vpop.f32.mrf.mxu1  ;;  %3823 = vmatmul.mubr.bf16.gmra.mxu1 %v9063_v27  ;;  %4205 = vst [vmem:[%s8684_s3 + $0x78] sm:$0xff] %v3272_v45  ;;  %v3274_v9 = vadd.f32 %v3273_v52, %v3113_v54  ;;  %v3117_v44 = vadd.f32 %v3116_v35, %v7822_v37  ;;  %3694 = vmatprep.mubr.bf16.mxu0 %v9064_v19  ;;  %v5492_v23 = vld [vmem:[%s8681_s1 + $0x7d0] ss:$12 sps:$4 sm:$0xff]   ;;  %v5496_v19 = vld [vmem:[%s8681_s1 + $0x7b8] ss:$12 sps:$4 sm:$0xff]  }
 0x1ec   :  { %3830 = vmatprep.mubr.bf16.mxu1 %v9065_v58  ;;  %v3118_v55 = vpop.f32.mrf.mxu0  ;;  %4938 = vmatpush3.bf16.msra.mxu0 %v5482_v29  ;;  %v9069_v17 = vld [vmem:[#allocation53_spill] sm:$0xff] }
 0x1ed   :  { %v3279_v14 = vpop.f32.mrf.mxu1  ;;  %5032 = vmatpush3.bf16.msra.mxu1 %v5484_v47  ;;  %4206 = vst [vmem:[%s8684_s3 + $0x80] sm:$0xff] %v3274_v9  ;;  %v3278_v37 = vadd.f32 %v3277_v18, %v3117_v44  ;;  %v3119_v24 = vadd.f32 %v3118_v55, %v7831_v13  ;;  %4939 = vmatprep.subr.bf16.mxu0 %v5485_v43  ;;  %v5495_v47 = vld [vmem:[%s8681_s1 + $0x878] ss:$12 sps:$4 sm:$0xff]   ;;  %v9068_v18 = vld [vmem:[#allocation52_spill] sm:$0xff]  ;;  %v5497_v55 = vld [vmem:[%s8681_s1 + $0x6e0] ss:$12 sps:$4 sm:$0xff]  }
 0x1ee   :  { %5033 = vmatprep.subr.bf16.mxu1 %v5487_v26  ;;  %v3120_v1 = vpop.f32.mrf.mxu0  ;;  %v9066_v43 = vld [vmem:[#allocation50_spill] sm:$0xff]  ;;  %v9067_v26 = vld [vmem:[#allocation51_spill] sm:$0xff] }
 0x1ef   :  { %v3281_v33 = vpop.f32.mrf.mxu1  ;;  %4208 = vst [vmem:[%s8684_s3 + $0x90] sm:$0xff] %v3278_v37  ;;  %v3280_v25 = vadd.f32 %v3279_v14, %v3119_v24  ;;  %v3121_v10 = vadd.f32 %v3120_v1, %v7840_v48  ;;  %v5493_v48 = vld [vmem:[%s8681_s1 + $0x6f8] ss:$12 sps:$4 sm:$0xff]   ;;  %v5499_v14 = vld [vmem:[%s8681_s1 + $0x860] ss:$12 sps:$4 sm:$0xff]  }
 0x1f0   :  { %v3122_v13 = vpop.f32.mrf.mxu0  ;;  %4940 = vmatpush3.bf16.msra.mxu0 %v5486_v49  ;;  %v5494_v44 = vld [vmem:[%s8681_s1 + $0x638] ss:$12 sps:$4 sm:$0xff]   ;;  %v5500_v1 = vld [vmem:[%s8681_s1 + $0x7a0] ss:$12 sps:$4 sm:$0xff]  }
 0x1f1   :  { %v3283_v3 = vpop.f32.mrf.mxu1  ;;  %5034 = vmatpush3.bf16.msra.mxu1 %v5488_v5  ;;  %4209 = vst [vmem:[%s8684_s3 + $0x98] sm:$0xff] %v3280_v25  ;;  %v3282_v52 = vadd.f32 %v3281_v33, %v3121_v10  ;;  %v3123_v29 = vadd.f32 %v3122_v13, %v7851_v28  ;;  %4941 = vmatprep.subr.bf16.mxu0 %v5489_v34  ;;  %v5503_v10 = vld [vmem:[%s8681_s1 + $0x848] ss:$12 sps:$4 sm:$0xff]  }
 0x1f2   :  { %5035 = vmatprep.subr.bf16.mxu1 %v5491_v8  ;;  %v3126_v45 = vpop.f32.mrf.mxu0  ;;  %3695 = vmatmul.mubr.bf16.gmra.mxu0 %v9066_v43  ;;  %v5498_v8 = vld [vmem:[%s8681_s1 + $0x620] ss:$12 sps:$4 sm:$0xff]   ;;  %v5504_v43 = vld [vmem:[%s8681_s1 + $0x788] ss:$12 sps:$4 sm:$0xff]  }
 0x1f3   :  { %v3287_v54 = vpop.f32.mrf.mxu1  ;;  %3831 = vmatmul.mubr.bf16.gmra.mxu1 %v9067_v26  ;;  %4211 = vst [vmem:[%s8684_s3 + $0xa8] sm:$0xff] %v3282_v52  ;;  %v3284_v28 = vadd.f32 %v3283_v3, %v3123_v29  ;;  %v3127_v35 = vadd.f32 %v3126_v45, %v7862_v59  ;;  %3702 = vmatprep.mubr.bf16.mxu0 %v9068_v18  ;;  %v9072_v29 = vld [vmem:[#allocation56_spill] sm:$0xff] }
 0x1f4   :  { %3838 = vmatprep.mubr.bf16.mxu1 %v9069_v17  ;;  %v3128_v27 = vpop.f32.mrf.mxu0  ;;  %4942 = vmatpush3.bf16.msra.mxu0 %v5490_v6  ;;  %v9070_v6 = vld [vmem:[#allocation54_spill] sm:$0xff] }
 0x1f5   :  { %v3289_v9 = vpop.f32.mrf.mxu1  ;;  %5036 = vmatpush3.bf16.msra.mxu1 %v5492_v23  ;;  %4212 = vst [vmem:[%s8684_s3 + $0xb0] sm:$0xff] %v3284_v28  ;;  %v3288_v59 = vadd.f32 %v3287_v54, %v3127_v35  ;;  %v3129_v58 = vadd.f32 %v3128_v27, %v7871_v31  ;;  %4943 = vmatprep.subr.bf16.mxu0 %v5493_v48  ;;  %v9071_v23 = vld [vmem:[#allocation55_spill] sm:$0xff]  ;;  %v9073_v48 = vld [vmem:[#allocation57_spill] sm:$0xff] }
 0x1f6   :  { %5037 = vmatprep.subr.bf16.mxu1 %v5495_v47  ;;  %v3130_v49 = vpop.f32.mrf.mxu0  ;;  %v5502_v54 = vld [vmem:[%s8681_s1 + $0x608] ss:$12 sps:$4 sm:$0xff]  }
 0x1f7   :  { %v3291_v5 = vpop.f32.mrf.mxu1  ;;  %4214 = vst [vmem:[%s8684_s3 + $0xc0] sm:$0xff] %v3288_v59  ;;  %v3290_v37 = vadd.f32 %v3289_v9, %v3129_v58  ;;  %v3131_v24 = vadd.f32 %v3130_v49, %v7880_v41  ;;  %v5501_v41 = vld [vmem:[%s8681_s1 + $0x6c8] ss:$12 sps:$4 sm:$0xff]   ;;  %v9074_v58 = vld [vmem:[#allocation58_spill] sm:$0xff] }
 0x1f8   :  { %v3132_v31 = vpop.f32.mrf.mxu0  ;;  %4944 = vmatpush3.bf16.msra.mxu0 %v5494_v44  ;;  %v9076_v49 = vld [vmem:[#allocation60_spill] sm:$0xff] }
 0x1f9   :  { %v3293_v34 = vpop.f32.mrf.mxu1  ;;  %5038 = vmatpush3.bf16.msra.mxu1 %v5496_v19  ;;  %4215 = vst [vmem:[%s8684_s3 + $0xc8] sm:$0xff] %v3290_v37  ;;  %v3292_v33 = vadd.f32 %v3291_v5, %v3131_v24  ;;  %v3133_v25 = vadd.f32 %v3132_v31, %v7891_v0  ;;  %4945 = vmatprep.subr.bf16.mxu0 %v5497_v55  ;;  %v9075_v55 = vld [vmem:[#allocation59_spill] sm:$0xff]  ;;  %v9077_v5 = vld [vmem:[#allocation61_spill] sm:$0xff] }
 0x1fa   :  { %5039 = vmatprep.subr.bf16.mxu1 %v5499_v14  ;;  %v3136_v13 = vpop.f32.mrf.mxu0  ;;  %3703 = vmatmul.mubr.bf16.gmra.mxu0 %v9070_v6  ;;  %v9079_v6 = vld [vmem:[#allocation63_spill] sm:$0xff] }
 0x1fb   :  { %v3297_v3 = vpop.f32.mrf.mxu1  ;;  %3839 = vmatmul.mubr.bf16.gmra.mxu1 %v9071_v23  ;;  %4217 = vst [vmem:[%s8684_s3 + $0xd8] sm:$0xff] %v3292_v33  ;;  %v3294_v0 = vadd.f32 %v3293_v34, %v3133_v25  ;;  %v3137_v52 = vadd.f32 %v3136_v13, %v7902_v62  ;;  %3710 = vmatprep.mubr.bf16.mxu0 %v9072_v29 }
 0x1fc   :  { %3846 = vmatprep.mubr.bf16.mxu1 %v9073_v48  ;;  %v3138_v47 = vpop.f32.mrf.mxu0  ;;  %4946 = vmatpush3.bf16.msra.mxu0 %v5498_v8 }
 0x1fd   :  { %v3299_v45 = vpop.f32.mrf.mxu1  ;;  %5040 = vmatpush3.bf16.msra.mxu1 %v5500_v1  ;;  %4218 = vst [vmem:[%s8684_s3 + $0xe0] sm:$0xff] %v3294_v0  ;;  %v3298_v62 = vadd.f32 %v3297_v3, %v3137_v52  ;;  %v3139_v26 = vadd.f32 %v3138_v47, %v7911_v60  ;;  %4947 = vmatprep.subr.bf16.mxu0 %v5501_v41  ;;  %v9078_v3 = vld [vmem:[#allocation62_spill] sm:$0xff]  ;;  %v9080_v0 = vld [vmem:[#allocation64_spill] sm:$0xff]  ;;  %v9081_v52 = vld [vmem:[#allocation65_spill] sm:$0xff] }
 0x1fe   :  { %5041 = vmatprep.subr.bf16.mxu1 %v5503_v10  ;;  %v3140_v28 = vpop.f32.mrf.mxu0 }
 0x1ff   :  { %v3301_v35 = vpop.f32.mrf.mxu1  ;;  %4220 = vst [vmem:[%s8684_s3 + $0xf0] sm:$0xff] %v3298_v62  ;;  %v3300_v18 = vadd.f32 %v3299_v45, %v3139_v26  ;;  %v3141_v17 = vadd.f32 %v3140_v28, %v7914_v15 }
 0x200   :  { %v3142_v27 = vpop.f32.mrf.mxu0  ;;  %4948 = vmatpush3.bf16.msra.mxu0 %v5502_v54 }
 0x201   :  { %v3303_v9 = vpop.f32.mrf.mxu1  ;;  %5042 = vmatpush3.bf16.msra.mxu1 %v5504_v43  ;;  %4221 = vst [vmem:[%s8684_s3 + $0xf8] sm:$0xff] %v3300_v18  ;;  %v3302_v60 = vadd.f32 %v3301_v35, %v3141_v17  ;;  %v3143_v44 = vadd.f32 %v3142_v27, %v7919_v39  ;;  %v9082_v17 = vld [vmem:[#allocation66_spill] sm:$0xff]  ;;  %v9083_v27 = vld [vmem:[#allocation67_spill] sm:$0xff] }
 0x202   :  { %v3146_v19 = vpop.f32.mrf.mxu0  ;;  %3711 = vmatmul.mubr.bf16.gmra.mxu0 %v9074_v58 }
 0x203   :  { %v3307_v59 = vpop.f32.mrf.mxu1  ;;  %3847 = vmatmul.mubr.bf16.gmra.mxu1 %v9075_v55  ;;  %4223 = vst [vmem:[%s8684_s3 + $0x108] sm:$0xff] %v3302_v60  ;;  %v3304_v15 = vadd.f32 %v3303_v9, %v3143_v44  ;;  %v3147_v14 = vadd.f32 %v3146_v19, %v7924_v16  ;;  %3718 = vmatprep.mubr.bf16.mxu0 %v9076_v49  ;;  %v9084_v60 = vld [vmem:[#allocation68_spill] sm:$0xff]  ;;  %v9085_v44 = vld [vmem:[#allocation69_spill] sm:$0xff] }
 0x204   :  { %3854 = vmatprep.mubr.bf16.mxu1 %v9077_v5  ;;  %v3148_v37 = vpop.f32.mrf.mxu0 }
 0x205   :  { %v3309_v24 = vpop.f32.mrf.mxu1  ;;  %4224 = vst [vmem:[%s8684_s3 + $0x110] sm:$0xff] %v3304_v15  ;;  %v3308_v39 = vadd.f32 %v3307_v59, %v3147_v14  ;;  %v3149_v31 = vadd.f32 %v3148_v37, %v7927_v20 }
 0x206   :  { %v3150_v34 = vpop.f32.mrf.mxu0 }
 0x207   :  { %v3311_v8 = vpop.f32.mrf.mxu1  ;;  %4226 = vst [vmem:[%s8684_s3 + $0x120] sm:$0xff] %v3308_v39  ;;  %v3310_v16 = vadd.f32 %v3309_v24, %v3149_v31  ;;  %v3151_v1 = vadd.f32 %v3150_v34, %v7930_v22  ;;  %v9086_v31 = vld [vmem:[#allocation70_spill] sm:$0xff]  ;;  %v9087_v34 = vld [vmem:[#allocation71_spill] sm:$0xff] }
 0x208   :  { %v3152_v33 = vpop.f32.mrf.mxu0 }
 0x209   :  { %v3313_v25 = vpop.f32.mrf.mxu1  ;;  %4227 = vst [vmem:[%s8684_s3 + $0x128] sm:$0xff] %v3310_v16  ;;  %v3312_v41 = vadd.f32 %v3311_v8, %v3151_v1  ;;  %v3153_v10 = vadd.f32 %v3152_v33, %v7935_v61  ;;  %v9088_v16 = vld [vmem:[#allocation72_spill] sm:$0xff]  ;;  %v9089_v1 = vld [vmem:[#allocation73_spill] sm:$0xff] }
 0x20a   :  { %v3156_v13 = vpop.f32.mrf.mxu0  ;;  %3719 = vmatmul.mubr.bf16.gmra.mxu0 %v9078_v3 }
 0x20b   :  { %v3317_v20 = vpop.f32.mrf.mxu1  ;;  %3855 = vmatmul.mubr.bf16.gmra.mxu1 %v9079_v6  ;;  %4229 = vst [vmem:[%s8684_s3 + $0x138] sm:$0xff] %v3312_v41  ;;  %v3314_v22 = vadd.f32 %v3313_v25, %v3153_v10  ;;  %v3157_v23 = vadd.f32 %v3156_v13, %v7940_v36  ;;  %3726 = vmatprep.mubr.bf16.mxu0 %v9080_v0 }
 0x20c   :  { %3862 = vmatprep.mubr.bf16.mxu1 %v9081_v52  ;;  %v3158_v29 = vpop.f32.mrf.mxu0  ;;  %v9090_v52 = vld [vmem:[#allocation74_spill] sm:$0xff] }
 0x20d   :  { %v3319_v48 = vpop.f32.mrf.mxu1  ;;  %4230 = vst [vmem:[%s8684_s3 + $0x140] sm:$0xff] %v3314_v22  ;;  %v3318_v61 = vadd.f32 %v3317_v20, %v3157_v23  ;;  %v3159_v47 = vadd.f32 %v3158_v29, %v7943_v56  ;;  %v9091_v29 = vld [vmem:[#allocation75_spill] sm:$0xff] }
 0x20e   :  { %v3160_v45 = vpop.f32.mrf.mxu0 }
 0x20f   :  { %v3321_v54 = vpop.f32.mrf.mxu1  ;;  %4232 = vst [vmem:[%s8684_s3 + $0x150] sm:$0xff] %v3318_v61  ;;  %v3320_v36 = vadd.f32 %v3319_v48, %v3159_v47  ;;  %v3161_v43 = vadd.f32 %v3160_v45, %v7946_v46  ;;  %v9092_v61 = vld [vmem:[#allocation76_spill] sm:$0xff]  ;;  %v9093_v47 = vld [vmem:[#allocation77_spill] sm:$0xff] }
 0x210   :  { %v3162_v62 = vpop.f32.mrf.mxu0 }
 0x211   :  { %v3323_v26 = vpop.f32.mrf.mxu1  ;;  %4233 = vst [vmem:[%s8684_s3 + $0x158] sm:$0xff] %v3320_v36  ;;  %v3322_v28 = vadd.f32 %v3321_v54, %v3161_v43  ;;  %v3163_v35 = vadd.f32 %v3162_v62, %v7951_v57 }
 0x212   :  { %v3166_v18 = vpop.f32.mrf.mxu0  ;;  %3727 = vmatmul.mubr.bf16.gmra.mxu0 %v9082_v17  ;;  %v9095_v17 = vld [vmem:[#allocation2_spill] sm:$0xff] }
 0x213   :  { %v3327_v56 = vpop.f32.mrf.mxu1  ;;  %3863 = vmatmul.mubr.bf16.gmra.mxu1 %v9083_v27  ;;  %4235 = vst [vmem:[%s8684_s3 + $0x168] sm:$0xff] %v3322_v28  ;;  %v3324_v46 = vadd.f32 %v3323_v26, %v3163_v35  ;;  %v3167_v9 = vadd.f32 %v3166_v18, %v7956_v2  ;;  %3734 = vmatprep.mubr.bf16.mxu0 %v9084_v60  ;;  %v9094_v26 = vld [vmem:[#allocation111_spill] sm:$0xff] }
 0x214   :  { %3870 = vmatprep.mubr.bf16.mxu1 %v9085_v44  ;;  %v3168_v19 = vpop.f32.mrf.mxu0  ;;  %v9097_v60 = vld [vmem:[#allocation79_spill] sm:$0xff] }
 0x215   :  { %v3329_v59 = vpop.f32.mrf.mxu1  ;;  %4236 = vst [vmem:[%s8684_s3 + $0x170] sm:$0xff] %v3324_v46  ;;  %v3328_v57 = vadd.f32 %v3327_v56, %v3167_v9  ;;  %v3169_v58 = vadd.f32 %v3168_v19, %v7959_v63  ;;  %v9096_v9 = vld [vmem:[#allocation78_spill] sm:$0xff] }
 0x216   :  { %v3170_v55 = vpop.f32.mrf.mxu0 }
 0x217   :  { %v3331_v15 = vpop.f32.mrf.mxu1  ;;  %4238 = vst [vmem:[%s8684_s3 + $0x180] sm:$0xff] %v3328_v57  ;;  %v3330_v2 = vadd.f32 %v3329_v59, %v3169_v58  ;;  %v3171_v14 = vadd.f32 %v3170_v55, %v7962_v21  ;;  %v9098_v59 = vld [vmem:[#allocation80_spill] sm:$0xff]  ;;  %v9099_v57 = vld [vmem:[#allocation81_spill] sm:$0xff] }
 0x218   :  { %v3172_v49 = vpop.f32.mrf.mxu0 }
 0x219   :  { %v3333_v5 = vpop.f32.mrf.mxu1  ;;  %4239 = vst [vmem:[%s8684_s3 + $0x188] sm:$0xff] %v3330_v2  ;;  %v3332_v37 = vadd.f32 %v3331_v15, %v3171_v14  ;;  %v3173_v24 = vadd.f32 %v3172_v49, %v7967_v4 }
 0x21a   :  { %v3176_v39 = vpop.f32.mrf.mxu0  ;;  %3735 = vmatmul.mubr.bf16.gmra.mxu0 %v9086_v31 }
 0x21b   :  { %v3337_v63 = vpop.f32.mrf.mxu1  ;;  %3871 = vmatmul.mubr.bf16.gmra.mxu1 %v9087_v34  ;;  %4241 = vst [vmem:[%s8684_s3 + $0x198] sm:$0xff] %v3332_v37  ;;  %v3334_v21 = vadd.f32 %v3333_v5, %v3173_v24  ;;  %v3177_v8 = vadd.f32 %v3176_v39, %v7972_v40  ;;  %3742 = vmatprep.mubr.bf16.mxu0 %v9088_v16 }
 0x21c   :  { %3878 = vmatprep.mubr.bf16.mxu1 %v9089_v1  ;;  %v3178_v33 = vpop.f32.mrf.mxu0  ;;  %v9103_v1 = vld [vmem:[#allocation84_spill] sm:$0xff] }
 0x21d   :  { %v3339_v25 = vpop.f32.mrf.mxu1  ;;  %4242 = vst [vmem:[%s8684_s3 + $0x1a0] sm:$0xff] %v3334_v21  ;;  %v3338_v4 = vadd.f32 %v3337_v63, %v3177_v8  ;;  %v3179_v41 = vadd.f32 %v3178_v33, %v7975_v51  ;;  %v9100_v63 = vld [vmem:[#allocation3_spill] sm:$0xff]  ;;  %v9101_v21 = vld [vmem:[#allocation82_spill] sm:$0xff]  ;;  %v9104_v33 = vld [vmem:[#allocation85_spill] sm:$0xff] }
 0x21e   :  { %v3180_v10 = vpop.f32.mrf.mxu0  ;;  %v9102_v8 = vld [vmem:[#allocation83_spill] sm:$0xff] }
 0x21f   :  { %v3341_v13 = vpop.f32.mrf.mxu1  ;;  %4244 = vst [vmem:[%s8684_s3 + $0x1b0] sm:$0xff] %v3338_v4  ;;  %v3340_v40 = vadd.f32 %v3339_v25, %v3179_v41  ;;  %v3181_v20 = vadd.f32 %v3180_v10, %v7978_v32 }
 0x220   :  { %v3182_v3 = vpop.f32.mrf.mxu0 }
 0x221   :  { %v3343_v6 = vpop.f32.mrf.mxu1  ;;  %4245 = vst [vmem:[%s8684_s3 + $0x1b8] sm:$0xff] %v3340_v40  ;;  %v3342_v22 = vadd.f32 %v3341_v13, %v3181_v20  ;;  %v3183_v23 = vadd.f32 %v3182_v3, %v7983_v30  ;;  %v9105_v20 = vld [vmem:[#allocation86_spill] sm:$0xff] }
 0x222   :  { %v3186_v0 = vpop.f32.mrf.mxu0  ;;  %3743 = vmatmul.mubr.bf16.gmra.mxu0 %v9090_v52  ;;  %v867_v3 = vsub.s32 2, %v9105_v20  ;;  %v5505_v52 = vld [vmem:[%s8683_s2] sm:$0x7] }
 0x223   :  { %v3347_v51 = vpop.f32.mrf.mxu1  ;;  %3879 = vmatmul.mubr.bf16.gmra.mxu1 %v9091_v29  ;;  %4247 = vst [vmem:[%s8684_s3 + $0x1c8] sm:$0xff] %v3342_v22  ;;  %v3344_v32 = vadd.f32 %v3343_v6, %v3183_v23  ;;  %v3187_v48 = vadd.f32 %v3186_v0, %v7988_v11  ;;  %3750 = vmatprep.mubr.bf16.mxu0 %v9092_v61 }
 0x224   :  { %3886 = vmatprep.mubr.bf16.mxu1 %v9093_v47  ;;  %v3188_v45 = vpop.f32.mrf.mxu0  ;;  %v8373_v29 = vrot.slane %v5505_v52, %v867_v3 }
 0x225   :  { %v3349_v54 = vpop.f32.mrf.mxu1  ;;  %4248 = vst [vmem:[%s8684_s3 + $0x1d0] sm:$0xff] %v3344_v32  ;;  %v3348_v30 = vadd.f32 %v3347_v51, %v3187_v48  ;;  %v3189_v36 = vadd.f32 %v3188_v45, %v7991_v38  ;;  %v9106_v51 = vld [vmem:[#allocation87_spill] sm:$0xff]  ;;  %v9108_v32 = vld [vmem:[#allocation89_spill] sm:$0xff]  ;;  %v9109_v48 = vld [vmem:[#allocation90_spill] sm:$0xff] }
 0x226   :  { %v3190_v43 = vpop.f32.mrf.mxu0 }
 0x227   :  { %v3351_v62 = vpop.f32.mrf.mxu1  ;;  %4250 = vst [vmem:[%s8684_s3 + $0x1e0] sm:$0xff] %v3348_v30  ;;  %v3350_v11 = vadd.f32 %v3349_v54, %v3189_v36  ;;  %v3191_v28 = vadd.f32 %v3190_v43, %v9094_v26 }
 0x228   :  { %v3192_v35 = vpop.f32.mrf.mxu0 }
 0x229   :  { %v3353_v18 = vpop.f32.mrf.mxu1  ;;  %4251 = vst [vmem:[%s8684_s3 + $0x1e8] sm:$0xff] %v3350_v11  ;;  %v3352_v56 = vadd.f32 %v3351_v62, %v3191_v28  ;;  %v3193_v27 = vadd.f32 %v3192_v35, %v9095_v17  ;;  %v9110_v17 = vld [vmem:[#allocation91_spill] sm:$0xff] }
 0x22a   :  { %v3196_v46 = vpop.f32.mrf.mxu0  ;;  %3751 = vmatmul.mubr.bf16.gmra.mxu0 %v9096_v9  ;;  %v9113_v9 = vld [vmem:[#allocation94_spill] sm:$0xff] }
 0x22b   :  { %v3357_v38 = vpop.f32.mrf.mxu1  ;;  %3887 = vmatmul.mubr.bf16.gmra.mxu1 %v9097_v60  ;;  %4253 = vst [vmem:[%s8684_s3 + $0x1f8] sm:$0xff] %v3352_v56  ;;  %v3354_v44 = vadd.f32 %v3353_v18, %v3193_v27  ;;  %v3197_v19 = vadd.f32 %v3196_v46, %v8004_v12  ;;  %3758 = vmatprep.mubr.bf16.mxu0 %v9098_v59  ;;  %v9111_v27 = vld [vmem:[#allocation92_spill] sm:$0xff] }
 0x22c   :  { %3894 = vmatprep.mubr.bf16.mxu1 %v9099_v57  ;;  %v3198_v58 = vpop.f32.mrf.mxu0 }
 0x22d   :  { %v3359_v55 = vpop.f32.mrf.mxu1  ;;  %4254 = vst [vmem:[%s8684_s3 + $0x200] sm:$0xff] %v3354_v44  ;;  %v3358_v15 = vadd.f32 %v3357_v38, %v3197_v19  ;;  %v3199_v2 = vadd.f32 %v3198_v58, %v8007_v50  ;;  %v9112_v38 = vld [vmem:[#allocation93_spill] sm:$0xff] }
 0x22e   :  { %v3200_v14 = vpop.f32.mrf.mxu0 }
 0x22f   :  { %v3361_v49 = vpop.f32.mrf.mxu1  ;;  %4256 = vst [vmem:[%s8684_s3 + $0x210] sm:$0xff] %v3358_v15  ;;  %v3360_v12 = vadd.f32 %v3359_v55, %v3199_v2  ;;  %v3201_v5 = vadd.f32 %v3200_v14, %v8010_v7 }
 0x230   :  { %v3202_v37 = vpop.f32.mrf.mxu0 }
 0x231   :  { %v3363_v24 = vpop.f32.mrf.mxu1  ;;  %4257 = vst [vmem:[%s8684_s3 + $0x218] sm:$0xff] %v3360_v12  ;;  %v3362_v39 = vadd.f32 %v3361_v49, %v3201_v5  ;;  %v3203_v31 = vadd.f32 %v3202_v37, %v9100_v63  ;;  %v9115_v63 = vld [vmem:[#allocation96_spill] sm:$0xff] }
 0x232   :  { %v3206_v34 = vpop.f32.mrf.mxu0  ;;  %3759 = vmatmul.mubr.bf16.gmra.mxu0 %v9101_v21 }
 0x233   :  { %v3367_v50 = vpop.f32.mrf.mxu1  ;;  %3895 = vmatmul.mubr.bf16.gmra.mxu1 %v9102_v8  ;;  %4259 = vst [vmem:[%s8684_s3 + $0x228] sm:$0xff] %v3362_v39  ;;  %v3364_v7 = vadd.f32 %v3363_v24, %v3203_v31  ;;  %v3207_v16 = vadd.f32 %v3206_v34, %v8020_v53  ;;  %3766 = vmatprep.mubr.bf16.mxu0 %v9103_v1  ;;  %v9114_v39 = vld [vmem:[#allocation95_spill] sm:$0xff]  ;;  %v9116_v34 = vld [vmem:[#allocation97_spill] sm:$0xff] }
 0x234   :  { %3902 = vmatprep.mubr.bf16.mxu1 %v9104_v33  ;;  %v3208_v25 = vpop.f32.mrf.mxu0 }
 0x235   :  { %v3369_v4 = vpop.f32.mrf.mxu1  ;;  %4260 = vst [vmem:[%s8684_s3 + $0x230] sm:$0xff] %v3364_v7  ;;  %v3368_v41 = vadd.f32 %v3367_v50, %v3207_v16  ;;  %v3209_v10 = vadd.f32 %v3208_v25, %v8023_v42  ;;  %v9107_v42 = vld [vmem:[#allocation88_spill] sm:$0xff]  ;;  %v9117_v50 = vld [vmem:[#allocation98_spill] sm:$0xff] }
 0x236   :  { %v3210_v13 = vpop.f32.mrf.mxu0 }
 0x237   :  { %v3371_v40 = vpop.f32.mrf.mxu1  ;;  %4262 = vst [vmem:[%s8684_s3 + $0x240] sm:$0xf] %v3368_v41  ;;  %v3370_v53 = vadd.f32 %v3369_v4, %v3209_v10 }
 0x238   :  { %v3211_v6 = vpop.f32.mrf.mxu0 }
 0x239   :  { %v3372_v22 = vpop.f32.mrf.mxu1  ;;  %4263 = vst [vmem:[%s8684_s3 + $0x248] sm:$0xf] %v3370_v53  ;;  %v9118_v6 = vld [vmem:[#allocation99_spill] sm:$0xff] }
 0x23a   :  { %v4573_v23 = vpop.f32.mrf.mxu0  ;;  %3767 = vmatmul.mubr.bf16.gmra.mxu0 %v9106_v51  ;;  %v9119_v22 = vld [vmem:[#allocation100_spill] sm:$0xff]  ;;  %v9121_v51 = vld [vmem:[#allocation102_spill] sm:$0xff] }
 0x23b   :  { %v4667_v0 = vpop.f32.mrf.mxu1  ;;  %3903 = vmatmul.mubr.bf16.gmra.mxu1 %v9107_v42  ;;  %3774 = vmatprep.mubr.bf16.mxu0 %v9108_v32 }
 0x23c   :  { %3910 = vmatprep.mubr.bf16.mxu1 %v9109_v48  ;;  %v4574_v61 = vpop.f32.mrf.mxu0 }
 0x23d   :  { %v4668_v47 = vpop.f32.mrf.mxu1  ;;  %v4575_v45 = vadd.f32 %v4574_v61, %v4573_v23 }
 0x23e   :  { %v4669_v54 = vadd.f32 %v4668_v47, %v4667_v0  ;;  %v4576_v30 = vpop.f32.mrf.mxu0  ;;  %v9120_v0 = vld [vmem:[#allocation101_spill] sm:$0xff] }
 0x23f   :  { %v4670_v36 = vpop.f32.mrf.mxu1  ;;  %v3409_v43 = vadd.f32 %v4575_v45, %v8373_v29 }
 0x240   :  { %v4577_v62 = vpop.f32.mrf.mxu0 }
 0x241   :  { %v4671_v11 = vpop.f32.mrf.mxu1  ;;  %v8378_v26 = vadd.f32 %v4669_v54, %v3409_v43  ;;  %v4578_v28 = vadd.f32 %v4577_v62, %v4576_v30 }
 0x242   :  { %v4672_v35 = vadd.f32 %v4671_v11, %v4670_v36  ;;  %v4579_v18 = vpop.f32.mrf.mxu0  ;;  %3775 = vmatmul.mubr.bf16.gmra.mxu0 %v9110_v17 }
 0x243   :  { %v4673_v56 = vpop.f32.mrf.mxu1  ;;  %3911 = vmatmul.mubr.bf16.gmra.mxu1 %v9111_v27  ;;  %v3412_v46 = vadd.f32 %v4578_v28, %v8373_v29  ;;  %3950 = vmatprep.mubr.bf16.mxu0 %v9112_v38  ;;  %v9124_v27 = vld [vmem:[#allocation105_spill] sm:$0xff] }
 0x244   :  { %4086 = vmatprep.mubr.bf16.mxu1 %v9113_v9  ;;  %v4580_v60 = vpop.f32.mrf.mxu0 }
 0x245   :  { %v4674_v44 = vpop.f32.mrf.mxu1  ;;  %v8385_v19 = vadd.f32 %v4672_v35, %v3412_v46  ;;  %v4581_v59 = vadd.f32 %v4580_v60, %v4579_v18  ;;  %v9122_v18 = vld [vmem:[#allocation103_spill] sm:$0xff]  ;;  %v9125_v46 = vld [vmem:[#allocation106_spill] sm:$0xff] }
 0x246   :  { %v4675_v57 = vadd.f32 %v4674_v44, %v4673_v56  ;;  %v4582_v58 = vpop.f32.mrf.mxu0  ;;  %v9123_v56 = vld [vmem:[#allocation104_spill] sm:$0xff] }
 0x247   :  { %v4676_v55 = vpop.f32.mrf.mxu1  ;;  %v3417_v15 = vadd.f32 %v4581_v59, %v8373_v29 }
 0x248   :  { %v4583_v2 = vpop.f32.mrf.mxu0 }
 0x249   :  { %v4677_v14 = vpop.f32.mrf.mxu1  ;;  %v8388_v49 = vadd.f32 %v4675_v57, %v3417_v15  ;;  %v4584_v12 = vadd.f32 %v4583_v2, %v4582_v58 }
 0x24a   :  { %v4678_v5 = vadd.f32 %v4677_v14, %v4676_v55  ;;  %v4585_v37 = vpop.f32.mrf.mxu0  ;;  %3951 = vmatmul.mubr.bf16.vlgmr.msra.gmra.mxu0 %v9114_v39  ;;  %v9126_v39 = vld [vmem:[#allocation107_spill] sm:$0xff] }
 0x24b   :  { %v4679_v24 = vpop.f32.mrf.mxu1  ;;  %4087 = vmatmul.mubr.bf16.vlgmr.msra.gmra.mxu1 %v9115_v63  ;;  %v3420_v31 = vadd.f32 %v4584_v12, %v8373_v29  ;;  %3958 = vmatprep.mubr.bf16.mxu0 %v9116_v34  ;;  %v9127_v63 = vld [vmem:[#allocation108_spill] sm:$0xff]  ;;  %v9128_v34 = vld [vmem:[#allocation109_spill] sm:$0xff] }
 0x24c   :  { %4094 = vmatprep.mubr.bf16.mxu1 %v9117_v50  ;;  %v4586_v21 = vpop.f32.mrf.mxu0  ;;  %v9129_v50 = vld [vmem:[#allocation110_spill] sm:$0xff] }
 0x24d   :  { %v4680_v8 = vpop.f32.mrf.mxu1  ;;  %v8395_v7 = vadd.f32 %v4678_v5, %v3420_v31  ;;  %v4587_v16 = vadd.f32 %v4586_v21, %v4585_v37 }
 0x24e   :  { %v4681_v1 = vadd.f32 %v4680_v8, %v4679_v24  ;;  %v4588_v33 = vpop.f32.mrf.mxu0 }
 0x24f   :  { %v4682_v25 = vpop.f32.mrf.mxu1  ;;  %v3425_v4 = vadd.f32 %v4587_v16, %v8373_v29 }
 0x250   :  { %v4589_v41 = vpop.f32.mrf.mxu0 }
 0x251   :  { %v4683_v10 = vpop.f32.mrf.mxu1  ;;  %v8398_v13 = vadd.f32 %v4681_v1, %v3425_v4  ;;  %v4590_v40 = vadd.f32 %v4589_v41, %v4588_v33 }
 0x252   :  { %v4684_v53 = vadd.f32 %v4683_v10, %v4682_v25  ;;  %v4591_v20 = vpop.f32.mrf.mxu0  ;;  %3959 = vmatmul.mubr.bf16.gmra.mxu0 %v9118_v6 }
 0x253   :  { %v4685_v3 = vpop.f32.mrf.mxu1  ;;  %4095 = vmatmul.mubr.bf16.gmra.mxu1 %v9119_v22  ;;  %v3428_v23 = vadd.f32 %v4590_v40, %v8373_v29  ;;  %3966 = vmatprep.mubr.bf16.mxu0 %v9120_v0  ;;  %v9131_v0 = vld [vmem:[#allocation113_spill] sm:$0xff] }
 0x254   :  { %4102 = vmatprep.mubr.bf16.mxu1 %v9121_v51  ;;  %v4592_v42 = vpop.f32.mrf.mxu0 }
 0x255   :  { %v4686_v52 = vpop.f32.mrf.mxu1  ;;  %v8405_v32 = vadd.f32 %v4684_v53, %v3428_v23  ;;  %v4593_v48 = vadd.f32 %v4592_v42, %v4591_v20  ;;  %v9130_v23 = vld [vmem:[#allocation112_spill] sm:$0xff]  ;;  %v9132_v42 = vld [vmem:[#allocation114_spill] sm:$0xff] }
 0x256   :  { %v4687_v61 = vadd.f32 %v4686_v52, %v4685_v3  ;;  %v4594_v47 = vpop.f32.mrf.mxu0  ;;  %v9133_v52 = vld [vmem:[#allocation115_spill] sm:$0xff] }
 0x257   :  { %v4688_v45 = vpop.f32.mrf.mxu1  ;;  %v3433_v54 = vadd.f32 %v4593_v48, %v8373_v29 }
 0x258   :  { %v4595_v30 = vpop.f32.mrf.mxu0 }
 0x259   :  { %v4689_v36 = vpop.f32.mrf.mxu1  ;;  %v8408_v43 = vadd.f32 %v4687_v61, %v3433_v54  ;;  %v4596_v62 = vadd.f32 %v4595_v30, %v4594_v47 }
 0x25a   :  { %v4690_v11 = vadd.f32 %v4689_v36, %v4688_v45  ;;  %v4597_v28 = vpop.f32.mrf.mxu0  ;;  %3967 = vmatmul.mubr.bf16.gmra.mxu0 %v9122_v18 }
 0x25b   :  { %v4691_v35 = vpop.f32.mrf.mxu1  ;;  %4103 = vmatmul.mubr.bf16.gmra.mxu1 %v9123_v56  ;;  %v3436_v17 = vadd.f32 %v4596_v62, %v8373_v29  ;;  %3974 = vmatprep.mubr.bf16.mxu0 %v9124_v27 }
 0x25c   :  { %4110 = vmatprep.mubr.bf16.mxu1 %v9125_v46  ;;  %v4598_v38 = vpop.f32.mrf.mxu0  ;;  %v9134_v46 = vld [vmem:[#allocation116_spill] sm:$0xff] }
 0x25d   :  { %v4692_v9 = vpop.f32.mrf.mxu1  ;;  %v8415_v60 = vadd.f32 %v4690_v11, %v3436_v17  ;;  %v4599_v44 = vadd.f32 %v4598_v38, %v4597_v28  ;;  %v9135_v38 = vld [vmem:[#allocation117_spill] sm:$0xff] }
 0x25e   :  { %v4693_v59 = vadd.f32 %v4692_v9, %v4691_v35  ;;  %v4600_v57 = vpop.f32.mrf.mxu0 }
 0x25f   :  { %v4694_v58 = vpop.f32.mrf.mxu1  ;;  %v3441_v55 = vadd.f32 %v4599_v44, %v8373_v29  ;;  %v9136_v44 = vld [vmem:[#allocation119_spill] sm:$0xff] }
 0x260   :  { %v4601_v15 = vpop.f32.mrf.mxu0 }
 0x261   :  { %v4695_v2 = vpop.f32.mrf.mxu1  ;;  %v8418_v14 = vadd.f32 %v4693_v59, %v3441_v55  ;;  %v4602_v12 = vadd.f32 %v4601_v15, %v4600_v57  ;;  %v9137_v59 = vld [vmem:[#allocation120_spill] sm:$0xff] }
 0x262   :  { %v4696_v5 = vadd.f32 %v4695_v2, %v4694_v58  ;;  %v4603_v37 = vpop.f32.mrf.mxu0  ;;  %3975 = vmatmul.mubr.bf16.gmra.mxu0 %v9126_v39 }
 0x263   :  { %v4697_v24 = vpop.f32.mrf.mxu1  ;;  %4111 = vmatmul.mubr.bf16.gmra.mxu1 %v9127_v63  ;;  %v3444_v31 = vadd.f32 %v4602_v12, %v8373_v29  ;;  %3982 = vmatprep.mubr.bf16.mxu0 %v9128_v34 }
 0x264   :  { %4118 = vmatprep.mubr.bf16.mxu1 %v9129_v50  ;;  %v4604_v21 = vpop.f32.mrf.mxu0 }
 0x265   :  { %v4698_v8 = vpop.f32.mrf.mxu1  ;;  %v8425_v16 = vadd.f32 %v4696_v5, %v3444_v31  ;;  %v4605_v1 = vadd.f32 %v4604_v21, %v4603_v37 }
 0x266   :  { %v4699_v33 = vadd.f32 %v4698_v8, %v4697_v24  ;;  %v4606_v25 = vpop.f32.mrf.mxu0  ;;  %v9138_v8 = vld [vmem:[#allocation124_spill] sm:$0xff] }
 0x267   :  { %v4700_v4 = vpop.f32.mrf.mxu1  ;;  %v3449_v41 = vadd.f32 %v4605_v1, %v8373_v29  ;;  %v9139_v1 = vld [vmem:[#allocation125_spill] sm:$0xff] }
 0x268   :  { %v4607_v10 = vpop.f32.mrf.mxu0 }
 0x269   :  { %v4701_v40 = vpop.f32.mrf.mxu1  ;;  %v8428_v53 = vadd.f32 %v4699_v33, %v3449_v41  ;;  %v4608_v20 = vadd.f32 %v4607_v10, %v4606_v25  ;;  %v9140_v25 = vld [vmem:[#allocation127_spill] sm:$0xff] }
 0x26a   :  { %v4702_v3 = vadd.f32 %v4701_v40, %v4700_v4  ;;  %v4609_v6 = vpop.f32.mrf.mxu0  ;;  %3983 = vmatmul.mubr.bf16.gmra.mxu0 %v9130_v23  ;;  %v9141_v4 = vld [vmem:[#allocation128_spill] sm:$0xff] }
 0x26b   :  { %v4703_v22 = vpop.f32.mrf.mxu1  ;;  %4119 = vmatmul.mubr.bf16.gmra.mxu1 %v9131_v0  ;;  %v3452_v51 = vadd.f32 %v4608_v20, %v8373_v29  ;;  %3990 = vmatprep.mubr.bf16.mxu0 %v9132_v42 }
 0x26c   :  { %4126 = vmatprep.mubr.bf16.mxu1 %v9133_v52  ;;  %v4610_v48 = vpop.f32.mrf.mxu0 }
 0x26d   :  { %v4704_v61 = vpop.f32.mrf.mxu1  ;;  %v8435_v47 = vadd.f32 %v4702_v3, %v3452_v51  ;;  %v4611_v45 = vadd.f32 %v4610_v48, %v4609_v6 }
 0x26e   :  { %v4705_v54 = vadd.f32 %v4704_v61, %v4703_v22  ;;  %v4612_v30 = vpop.f32.mrf.mxu0 }
 0x26f   :  { %v4706_v36 = vpop.f32.mrf.mxu1  ;;  %v3457_v62 = vadd.f32 %v4611_v45, %v8373_v29 }
 0x270   :  { %v4613_v11 = vpop.f32.mrf.mxu0 }
 0x271   :  { %v4707_v28 = vpop.f32.mrf.mxu1  ;;  %v8438_v35 = vadd.f32 %v4705_v54, %v3457_v62  ;;  %v4614_v18 = vadd.f32 %v4613_v11, %v4612_v30  ;;  %v9142_v54 = vld [vmem:[#allocation132_spill] sm:$0xff]  ;;  %v9143_v30 = vld [vmem:[#allocation133_spill] sm:$0xff]  ;;  %v9144_v62 = vld [vmem:[#allocation135_spill] sm:$0xff] }
 0x272   :  { %v4708_v56 = vadd.f32 %v4707_v28, %v4706_v36  ;;  %v4615_v17 = vpop.f32.mrf.mxu0  ;;  %3991 = vmatmul.mubr.bf16.gmra.mxu0 %v9134_v46  ;;  %v9145_v11 = vld [vmem:[#allocation136_spill] sm:$0xff] }
 0x273   :  { %v4709_v27 = vpop.f32.mrf.mxu1  ;;  %4127 = vmatmul.mubr.bf16.gmra.mxu1 %v9135_v38  ;;  %v3460_v9 = vadd.f32 %v4614_v18, %v8373_v29  ;;  %3998 = vmatprep.mubr.bf16.mxu0 %v9136_v44 }
 0x274   :  { %4134 = vmatprep.mubr.bf16.mxu1 %v9137_v59  ;;  %v4616_v57 = vpop.f32.mrf.mxu0 }
 0x275   :  { %v4710_v58 = vpop.f32.mrf.mxu1  ;;  %v8445_v55 = vadd.f32 %v4708_v56, %v3460_v9  ;;  %v4617_v15 = vadd.f32 %v4616_v57, %v4615_v17 }
 0x276   :  { %v4711_v2 = vadd.f32 %v4710_v58, %v4709_v27  ;;  %v4618_v12 = vpop.f32.mrf.mxu0 }
 0x277   :  { %v4712_v5 = vpop.f32.mrf.mxu1  ;;  %v3465_v37 = vadd.f32 %v4617_v15, %v8373_v29 }
 0x278   :  { %v4619_v24 = vpop.f32.mrf.mxu0 }
 0x279   :  { %v4713_v39 = vpop.f32.mrf.mxu1  ;;  %v8448_v63 = vadd.f32 %v4711_v2, %v3465_v37  ;;  %v4620_v31 = vadd.f32 %v4619_v24, %v4618_v12  ;;  %v9147_v37 = vld [vmem:[#allocation141_spill] sm:$0xff] }
 0x27a   :  { %v4714_v34 = vadd.f32 %v4713_v39, %v4712_v5  ;;  %v4621_v50 = vpop.f32.mrf.mxu0  ;;  %3999 = vmatmul.mubr.bf16.gmra.mxu0 %v9138_v8  ;;  %v9146_v5 = vld [vmem:[#allocation140_spill] sm:$0xff]  ;;  %v9148_v39 = vld [vmem:[#allocation143_spill] sm:$0xff] }
 0x27b   :  { %v4715_v21 = vpop.f32.mrf.mxu1  ;;  %4135 = vmatmul.mubr.bf16.gmra.mxu1 %v9139_v1  ;;  %v3468_v33 = vadd.f32 %v4620_v31, %v8373_v29  ;;  %4006 = vmatprep.mubr.bf16.mxu0 %v9140_v25  ;;  %v9149_v31 = vld [vmem:[#allocation144_spill] sm:$0xff] }
 0x27c   :  { %4142 = vmatprep.mubr.bf16.mxu1 %v9141_v4  ;;  %v4622_v41 = vpop.f32.mrf.mxu0 }
 0x27d   :  { %v4716_v10 = vpop.f32.mrf.mxu1  ;;  %v8455_v40 = vadd.f32 %v4714_v34, %v3468_v33  ;;  %v4623_v20 = vadd.f32 %v4622_v41, %v4621_v50 }
 0x27e   :  { %v4717_v3 = vadd.f32 %v4716_v10, %v4715_v21  ;;  %v4624_v6 = vpop.f32.mrf.mxu0 }
 0x27f   :  { %v4718_v22 = vpop.f32.mrf.mxu1  ;;  %v3473_v23 = vadd.f32 %v4623_v20, %v8373_v29 }
 0x280   :  { %v4625_v0 = vpop.f32.mrf.mxu0 }
 0x281   :  { %v4719_v51 = vpop.f32.mrf.mxu1  ;;  %v8458_v42 = vadd.f32 %v4717_v3, %v3473_v23  ;;  %v4626_v52 = vadd.f32 %v4625_v0, %v4624_v6  ;;  %v9150_v0 = vld [vmem:[#allocation148_spill] sm:$0xff] }
 0x282   :  { %v4720_v48 = vadd.f32 %v4719_v51, %v4718_v22  ;;  %v4627_v61 = vpop.f32.mrf.mxu0  ;;  %4007 = vmatmul.mubr.bf16.gmra.mxu0 %v9142_v54  ;;  %v9151_v51 = vld [vmem:[#allocation149_spill] sm:$0xff] }
 0x283   :  { %v4721_v45 = vpop.f32.mrf.mxu1  ;;  %4143 = vmatmul.mubr.bf16.gmra.mxu1 %v9143_v30  ;;  %v3476_v36 = vadd.f32 %v4626_v52, %v8373_v29  ;;  %4014 = vmatprep.mubr.bf16.mxu0 %v9144_v62 }
 0x284   :  { %4150 = vmatprep.mubr.bf16.mxu1 %v9145_v11  ;;  %v4628_v28 = vpop.f32.mrf.mxu0 }
 0x285   :  { %v4722_v18 = vpop.f32.mrf.mxu1  ;;  %v8465_v56 = vadd.f32 %v4720_v48, %v3476_v36  ;;  %v4629_v17 = vadd.f32 %v4628_v28, %v4627_v61  ;;  %v9152_v48 = vld [vmem:[#allocation151_spill] sm:$0xff]  ;;  %v9153_v61 = vld [vmem:[#allocation152_spill] sm:$0xff] }
 0x286   :  { %v4723_v27 = vadd.f32 %v4722_v18, %v4721_v45  ;;  %v4630_v46 = vpop.f32.mrf.mxu0 }
 0x287   :  { %v4724_v38 = vpop.f32.mrf.mxu1  ;;  %v3481_v9 = vadd.f32 %v4629_v17, %v8373_v29 }
 0x288   :  { %v4631_v44 = vpop.f32.mrf.mxu0 }
 0x289   :  { %v4725_v59 = vpop.f32.mrf.mxu1  ;;  %v8468_v57 = vadd.f32 %v4723_v27, %v3481_v9  ;;  %v4632_v58 = vadd.f32 %v4631_v44, %v4630_v46 }
 0x28a   :  { %v4726_v15 = vadd.f32 %v4725_v59, %v4724_v38  ;;  %v4633_v2 = vpop.f32.mrf.mxu0  ;;  %4015 = vmatmul.mubr.bf16.gmra.mxu0 %v9146_v5  ;;  %v9157_v5 = vld [vmem:[#allocation159_spill] sm:$0xff] }
 0x28b   :  { %v4727_v12 = vpop.f32.mrf.mxu1  ;;  %4151 = vmatmul.mubr.bf16.gmra.mxu1 %v9147_v37  ;;  %v3484_v24 = vadd.f32 %v4632_v58, %v8373_v29  ;;  %4022 = vmatprep.mubr.bf16.mxu0 %v9148_v39  ;;  %v9154_v58 = vld [vmem:[#allocation156_spill] sm:$0xff] }
 0x28c   :  { %4158 = vmatprep.mubr.bf16.mxu1 %v9149_v31  ;;  %v4634_v34 = vpop.f32.mrf.mxu0 }
 0x28d   :  { %v4728_v50 = vpop.f32.mrf.mxu1  ;;  %v8475_v21 = vadd.f32 %v4726_v15, %v3484_v24  ;;  %v4635_v8 = vadd.f32 %v4634_v34, %v4633_v2  ;;  %v9155_v15 = vld [vmem:[#allocation157_spill] sm:$0xff] }
 0x28e   :  { %v4729_v1 = vadd.f32 %v4728_v50, %v4727_v12  ;;  %v4636_v33 = vpop.f32.mrf.mxu0  ;;  %v9156_v12 = vld [vmem:[#allocation158_spill] sm:$0xff] }
 0x28f   :  { %v4730_v25 = vpop.f32.mrf.mxu1  ;;  %v3489_v4 = vadd.f32 %v4635_v8, %v8373_v29 }
 0x290   :  { %v4637_v41 = vpop.f32.mrf.mxu0 }
 0x291   :  { %v4731_v10 = vpop.f32.mrf.mxu1  ;;  %v8478_v20 = vadd.f32 %v4729_v1, %v3489_v4  ;;  %v4638_v3 = vadd.f32 %v4637_v41, %v4636_v33 }
 0x292   :  { %v4732_v6 = vadd.f32 %v4731_v10, %v4730_v25  ;;  %v4639_v22 = vpop.f32.mrf.mxu0  ;;  %4023 = vmatmul.mubr.bf16.gmra.mxu0 %v9150_v0 }
 0x293   :  { %v4733_v23 = vpop.f32.mrf.mxu1  ;;  %4159 = vmatmul.mubr.bf16.gmra.mxu1 %v9151_v51  ;;  %v3492_v52 = vadd.f32 %v4638_v3, %v8373_v29  ;;  %4030 = vmatprep.mubr.bf16.mxu0 %v9152_v48  ;;  %v9158_v3 = vld [vmem:[#allocation161_spill] sm:$0xff] }
 0x294   :  { %4166 = vmatprep.mubr.bf16.mxu1 %v9153_v61  ;;  %v4640_v45 = vpop.f32.mrf.mxu0 }
 0x295   :  { %v4734_v54 = vpop.f32.mrf.mxu1  ;;  %v8485_v30 = vadd.f32 %v4732_v6, %v3492_v52  ;;  %v4641_v36 = vadd.f32 %v4640_v45, %v4639_v22  ;;  %v9159_v6 = vld [vmem:[#allocation162_spill] sm:$0xff]  ;;  %v9160_v22 = vld [vmem:[#allocation163_spill] sm:$0xff] }
 0x296   :  { %v4735_v62 = vadd.f32 %v4734_v54, %v4733_v23  ;;  %v4642_v11 = vpop.f32.mrf.mxu0  ;;  %v9161_v23 = vld [vmem:[#allocation164_spill] sm:$0xff] }
 0x297   :  { %v4736_v28 = vpop.f32.mrf.mxu1  ;;  %v3497_v18 = vadd.f32 %v4641_v36, %v8373_v29 }
 0x298   :  { %v4643_v17 = vpop.f32.mrf.mxu0 }
 0x299   :  { %v4737_v27 = vpop.f32.mrf.mxu1  ;;  %v8488_v46 = vadd.f32 %v4735_v62, %v3497_v18  ;;  %v4644_v38 = vadd.f32 %v4643_v17, %v4642_v11 }
 0x29a   :  { %v4738_v9 = vadd.f32 %v4737_v27, %v4736_v28  ;;  %v4645_v44 = vpop.f32.mrf.mxu0  ;;  %4031 = vmatmul.mubr.bf16.gmra.mxu0 %v9154_v58  ;;  %v9162_v27 = vld [vmem:[#allocation165_spill] sm:$0xff] }
 0x29b   :  { %v4739_v59 = vpop.f32.mrf.mxu1  ;;  %4167 = vmatmul.mubr.bf16.gmra.mxu1 %v9155_v15  ;;  %v3500_v2 = vadd.f32 %v4644_v38, %v8373_v29  ;;  %4038 = vmatprep.mubr.bf16.mxu0 %v9156_v12  ;;  %v9163_v38 = vld [vmem:[#allocation166_spill] sm:$0xff] }
 0x29c   :  { %4174 = vmatprep.mubr.bf16.mxu1 %v9157_v5  ;;  %v4646_v37 = vpop.f32.mrf.mxu0 }
 0x29d   :  { %v4740_v24 = vpop.f32.mrf.mxu1  ;;  %v8495_v39 = vadd.f32 %v4738_v9, %v3500_v2  ;;  %v4647_v31 = vadd.f32 %v4646_v37, %v4645_v44 }
 0x29e   :  { %v4741_v34 = vadd.f32 %v4740_v24, %v4739_v59  ;;  %v4648_v50 = vpop.f32.mrf.mxu0 }
 0x29f   :  { %v4742_v8 = vpop.f32.mrf.mxu1  ;;  %v3505_v1 = vadd.f32 %v4647_v31, %v8373_v29 }
 0x2a0   :  { %v4649_v33 = vpop.f32.mrf.mxu0 }
 0x2a1   :  { %v4743_v25 = vpop.f32.mrf.mxu1  ;;  %v8498_v4 = vadd.f32 %v4741_v34, %v3505_v1 }
 0x2a2   :  { %v4761_v41 = vpop.f32.mrf.mxu0  ;;  %4039 = vmatmul.mubr.bf16.gmra.mxu0 %v9158_v3 }
 0x2a3   :  { %v4855_v10 = vpop.f32.mrf.mxu1  ;;  %4175 = vmatmul.mubr.bf16.gmra.mxu1 %v9159_v6  ;;  %4046 = vmatprep.mubr.bf16.mxu0 %v9160_v22 }
 0x2a4   :  { %4182 = vmatprep.mubr.bf16.mxu1 %v9161_v23  ;;  %v4762_v0 = vpop.f32.mrf.mxu0 }
 0x2a5   :  { %v4856_v51 = vpop.f32.mrf.mxu1  ;;  %v4763_v52 = vadd.f32 %v4762_v0, %v4761_v41 }
 0x2a6   :  { %v4857_v48 = vadd.f32 %v4856_v51, %v4855_v10  ;;  %v4764_v61 = vpop.f32.mrf.mxu0 }
 0x2a7   :  { %v4858_v29 = vpop.f32.mrf.mxu1  ;;  %v3681_v45 = vadd.f32 %v4763_v52, %v8378_v26 }
 0x2a8   :  { %v4765_v54 = vpop.f32.mrf.mxu0 }
 0x2a9   :  { %v4859_v36 = vpop.f32.mrf.mxu1  ;;  %v8505_v62 = vadd.f32 %v4857_v48, %v3681_v45  ;;  %v4766_v11 = vadd.f32 %v4765_v54, %v4764_v61 }
 0x2aa   :  { %v4860_v28 = vadd.f32 %v4859_v36, %v4858_v29  ;;  %v4767_v18 = vpop.f32.mrf.mxu0  ;;  %4047 = vmatmul.mubr.bf16.gmra.mxu0 %v9162_v27 }
 0x2ab   :  { %v4861_v17 = vpop.f32.mrf.mxu1  ;;  %4183 = vmatmul.mubr.bf16.gmra.mxu1 %v9163_v38  ;;  %v3684_v9 = vadd.f32 %v4766_v11, %v8385_v19 }
 0x2ac   :  { %v4768_v44 = vpop.f32.mrf.mxu0 }
 0x2ad   :  { %v4862_v59 = vpop.f32.mrf.mxu1  ;;  %v8510_v58 = vadd.f32 %v4860_v28, %v3684_v9  ;;  %v4769_v15 = vadd.f32 %v4768_v44, %v4767_v18 }
 0x2ae   :  { %v4863_v26 = vadd.f32 %v4862_v59, %v4861_v17  ;;  %v4770_v2 = vpop.f32.mrf.mxu0 }
 0x2af   :  { %v4864_v12 = vpop.f32.mrf.mxu1  ;;  %v3689_v5 = vadd.f32 %v4769_v15, %v8388_v49 }
 0x2b0   :  { %v4771_v37 = vpop.f32.mrf.mxu0 }
 0x2b1   :  { %v4865_v24 = vpop.f32.mrf.mxu1  ;;  %v8513_v31 = vadd.f32 %v4863_v26, %v3689_v5  ;;  %v4772_v34 = vadd.f32 %v4771_v37, %v4770_v2 }
 0x2b2   :  { %v4866_v50 = vadd.f32 %v4865_v24, %v4864_v12  ;;  %v4773_v8 = vpop.f32.mrf.mxu0 }
 0x2b3   :  { %v4867_v1 = vpop.f32.mrf.mxu1  ;;  %v3692_v19 = vadd.f32 %v4772_v34, %v8395_v7 }
 0x2b4   :  { %v4774_v33 = vpop.f32.mrf.mxu0 }
 0x2b5   :  { %v4868_v25 = vpop.f32.mrf.mxu1  ;;  %v8516_v41 = vadd.f32 %v4866_v50, %v3692_v19  ;;  %v4775_v10 = vadd.f32 %v4774_v33, %v4773_v8 }
 0x2b6   :  { %v4869_v3 = vadd.f32 %v4868_v25, %v4867_v1  ;;  %v4776_v6 = vpop.f32.mrf.mxu0 }
 0x2b7   :  { %v4870_v22 = vpop.f32.mrf.mxu1  ;;  %v3697_v49 = vadd.f32 %v4775_v10, %v8398_v13 }
 0x2b8   :  { %v4777_v23 = vpop.f32.mrf.mxu0 }
 0x2b9   :  { %v4871_v0 = vpop.f32.mrf.mxu1  ;;  %v8519_v51 = vadd.f32 %v4869_v3, %v3697_v49  ;;  %v4778_v52 = vadd.f32 %v4777_v23, %v4776_v6 }
 0x2ba   :  { %v4872_v48 = vadd.f32 %v4871_v0, %v4870_v22  ;;  %v4779_v61 = vpop.f32.mrf.mxu0 }
 0x2bb   :  { %v4873_v29 = vpop.f32.mrf.mxu1  ;;  %v3700_v7 = vadd.f32 %v4778_v52, %v8405_v32 }
 0x2bc   :  { %v4780_v45 = vpop.f32.mrf.mxu0 }
 0x2bd   :  { %v4874_v54 = vpop.f32.mrf.mxu1  ;;  %v8522_v36 = vadd.f32 %v4872_v48, %v3700_v7  ;;  %v4781_v11 = vadd.f32 %v4780_v45, %v4779_v61 }
 0x2be   :  { %v4875_v28 = vadd.f32 %v4874_v54, %v4873_v29  ;;  %v4782_v18 = vpop.f32.mrf.mxu0 }
 0x2bf   :  { %v4876_v17 = vpop.f32.mrf.mxu1  ;;  %v3705_v13 = vadd.f32 %v4781_v11, %v8408_v43 }
 0x2c0   :  { %v4783_v27 = vpop.f32.mrf.mxu0 }
 0x2c1   :  { %v4877_v38 = vpop.f32.mrf.mxu1  ;;  %v8525_v9 = vadd.f32 %v4875_v28, %v3705_v13  ;;  %v4784_v44 = vadd.f32 %v4783_v27, %v4782_v18 }
 0x2c2   :  { %v4878_v59 = vadd.f32 %v4877_v38, %v4876_v17  ;;  %v4785_v15 = vpop.f32.mrf.mxu0 }
 0x2c3   :  { %v4879_v26 = vpop.f32.mrf.mxu1  ;;  %v3708_v32 = vadd.f32 %v4784_v44, %v8415_v60 }
 0x2c4   :  { %v4786_v2 = vpop.f32.mrf.mxu0 }
 0x2c5   :  { %v4880_v12 = vpop.f32.mrf.mxu1  ;;  %v8528_v5 = vadd.f32 %v4878_v59, %v3708_v32  ;;  %v4787_v37 = vadd.f32 %v4786_v2, %v4785_v15 }
 0x2c6   :  { %v4881_v24 = vadd.f32 %v4880_v12, %v4879_v26  ;;  %v4788_v34 = vpop.f32.mrf.mxu0 }
 0x2c7   :  { %v4882_v50 = vpop.f32.mrf.mxu1  ;;  %v3713_v43 = vadd.f32 %v4787_v37, %v8418_v14 }
 0x2c8   :  { %v4789_v8 = vpop.f32.mrf.mxu0 }
 0x2c9   :  { %v4883_v1 = vpop.f32.mrf.mxu1  ;;  %v8531_v19 = vadd.f32 %v4881_v24, %v3713_v43  ;;  %v4790_v33 = vadd.f32 %v4789_v8, %v4788_v34 }
 0x2ca   :  { %v4884_v25 = vadd.f32 %v4883_v1, %v4882_v50  ;;  %v4791_v10 = vpop.f32.mrf.mxu0 }
 0x2cb   :  { %v4885_v3 = vpop.f32.mrf.mxu1  ;;  %v3716_v60 = vadd.f32 %v4790_v33, %v8425_v16 }
 0x2cc   :  { %v4792_v6 = vpop.f32.mrf.mxu0 }
 0x2cd   :  { %v4886_v22 = vpop.f32.mrf.mxu1  ;;  %v8534_v49 = vadd.f32 %v4884_v25, %v3716_v60  ;;  %v4793_v23 = vadd.f32 %v4792_v6, %v4791_v10 }
 0x2ce   :  { %v4887_v0 = vadd.f32 %v4886_v22, %v4885_v3  ;;  %v4794_v52 = vpop.f32.mrf.mxu0 }
 0x2cf   :  { %v4888_v48 = vpop.f32.mrf.mxu1  ;;  %v3721_v14 = vadd.f32 %v4793_v23, %v8428_v53 }
 0x2d0   :  { %v4795_v61 = vpop.f32.mrf.mxu0 }
 0x2d1   :  { %v4889_v29 = vpop.f32.mrf.mxu1  ;;  %v8537_v7 = vadd.f32 %v4887_v0, %v3721_v14  ;;  %v4796_v45 = vadd.f32 %v4795_v61, %v4794_v52 }
 0x2d2   :  { %v4890_v54 = vadd.f32 %v4889_v29, %v4888_v48  ;;  %v4797_v11 = vpop.f32.mrf.mxu0 }
 0x2d3   :  { %v4891_v28 = vpop.f32.mrf.mxu1  ;;  %v3724_v16 = vadd.f32 %v4796_v45, %v8435_v47 }
 0x2d4   :  { %v4798_v18 = vpop.f32.mrf.mxu0 }
 0x2d5   :  { %v4892_v17 = vpop.f32.mrf.mxu1  ;;  %v8540_v13 = vadd.f32 %v4890_v54, %v3724_v16  ;;  %v4799_v27 = vadd.f32 %v4798_v18, %v4797_v11 }
 0x2d6   :  { %v4893_v38 = vadd.f32 %v4892_v17, %v4891_v28  ;;  %v4800_v44 = vpop.f32.mrf.mxu0 }
 0x2d7   :  { %v4894_v59 = vpop.f32.mrf.mxu1  ;;  %v3729_v53 = vadd.f32 %v4799_v27, %v8438_v35 }
 0x2d8   :  { %v4801_v15 = vpop.f32.mrf.mxu0 }
 0x2d9   :  { %v4895_v26 = vpop.f32.mrf.mxu1  ;;  %v8543_v32 = vadd.f32 %v4893_v38, %v3729_v53  ;;  %v4802_v2 = vadd.f32 %v4801_v15, %v4800_v44 }
 0x2da   :  { %v4896_v12 = vadd.f32 %v4895_v26, %v4894_v59  ;;  %v4803_v37 = vpop.f32.mrf.mxu0 }
 0x2db   :  { %v4897_v24 = vpop.f32.mrf.mxu1  ;;  %v3732_v47 = vadd.f32 %v4802_v2, %v8445_v55 }
 0x2dc   :  { %v4804_v34 = vpop.f32.mrf.mxu0 }
 0x2dd   :  { %v4898_v50 = vpop.f32.mrf.mxu1  ;;  %v8546_v43 = vadd.f32 %v4896_v12, %v3732_v47  ;;  %v4805_v8 = vadd.f32 %v4804_v34, %v4803_v37 }
 0x2de   :  { %v4899_v1 = vadd.f32 %v4898_v50, %v4897_v24  ;;  %v4806_v33 = vpop.f32.mrf.mxu0 }
 0x2df   :  { %v4900_v25 = vpop.f32.mrf.mxu1  ;;  %v3737_v35 = vadd.f32 %v4805_v8, %v8448_v63 }
 0x2e0   :  { %v4807_v10 = vpop.f32.mrf.mxu0 }
 0x2e1   :  { %v4901_v3 = vpop.f32.mrf.mxu1  ;;  %v8549_v60 = vadd.f32 %v4899_v1, %v3737_v35  ;;  %v4808_v6 = vadd.f32 %v4807_v10, %v4806_v33 }
 0x2e2   :  { %v4902_v22 = vadd.f32 %v4901_v3, %v4900_v25  ;;  %v4809_v23 = vpop.f32.mrf.mxu0 }
 0x2e3   :  { %v4903_v0 = vpop.f32.mrf.mxu1  ;;  %v3740_v55 = vadd.f32 %v4808_v6, %v8455_v40 }
 0x2e4   :  { %v4810_v52 = vpop.f32.mrf.mxu0 }
 0x2e5   :  { %v4904_v48 = vpop.f32.mrf.mxu1  ;;  %v8552_v14 = vadd.f32 %v4902_v22, %v3740_v55  ;;  %v4811_v61 = vadd.f32 %v4810_v52, %v4809_v23 }
 0x2e6   :  { %v4905_v29 = vadd.f32 %v4904_v48, %v4903_v0  ;;  %v4812_v45 = vpop.f32.mrf.mxu0 }
 0x2e7   :  { %v4906_v54 = vpop.f32.mrf.mxu1  ;;  %v3745_v63 = vadd.f32 %v4811_v61, %v8458_v42 }
 0x2e8   :  { %v4813_v11 = vpop.f32.mrf.mxu0 }
 0x2e9   :  { %v4907_v28 = vpop.f32.mrf.mxu1  ;;  %v8555_v16 = vadd.f32 %v4905_v29, %v3745_v63  ;;  %v4814_v18 = vadd.f32 %v4813_v11, %v4812_v45 }
 0x2ea   :  { %v4908_v17 = vadd.f32 %v4907_v28, %v4906_v54  ;;  %v4815_v27 = vpop.f32.mrf.mxu0 }
 0x2eb   :  { %v4909_v38 = vpop.f32.mrf.mxu1  ;;  %v3748_v40 = vadd.f32 %v4814_v18, %v8465_v56 }
 0x2ec   :  { %v4816_v44 = vpop.f32.mrf.mxu0 }
 0x2ed   :  { %v4910_v59 = vpop.f32.mrf.mxu1  ;;  %v8558_v53 = vadd.f32 %v4908_v17, %v3748_v40  ;;  %v4817_v15 = vadd.f32 %v4816_v44, %v4815_v27 }
 0x2ee   :  { %v4911_v26 = vadd.f32 %v4910_v59, %v4909_v38  ;;  %v4818_v2 = vpop.f32.mrf.mxu0 }
 0x2ef   :  { %v4912_v12 = vpop.f32.mrf.mxu1  ;;  %v3753_v42 = vadd.f32 %v4817_v15, %v8468_v57 }
 0x2f0   :  { %v4819_v37 = vpop.f32.mrf.mxu0 }
 0x2f1   :  { %v4913_v24 = vpop.f32.mrf.mxu1  ;;  %v8561_v47 = vadd.f32 %v4911_v26, %v3753_v42  ;;  %v4820_v34 = vadd.f32 %v4819_v37, %v4818_v2 }
 0x2f2   :  { %v4914_v50 = vadd.f32 %v4913_v24, %v4912_v12  ;;  %v4821_v8 = vpop.f32.mrf.mxu0 }
 0x2f3   :  { %v4915_v1 = vpop.f32.mrf.mxu1  ;;  %v3756_v56 = vadd.f32 %v4820_v34, %v8475_v21 }
 0x2f4   :  { %v4822_v33 = vpop.f32.mrf.mxu0 }
 0x2f5   :  { %v4916_v25 = vpop.f32.mrf.mxu1  ;;  %v8564_v35 = vadd.f32 %v4914_v50, %v3756_v56  ;;  %v4823_v10 = vadd.f32 %v4822_v33, %v4821_v8 }
 0x2f6   :  { %v4917_v3 = vadd.f32 %v4916_v25, %v4915_v1  ;;  %v4824_v6 = vpop.f32.mrf.mxu0 }
 0x2f7   :  { %v4918_v22 = vpop.f32.mrf.mxu1  ;;  %v3761_v57 = vadd.f32 %v4823_v10, %v8478_v20 }
 0x2f8   :  { %v4825_v23 = vpop.f32.mrf.mxu0 }
 0x2f9   :  { %v4919_v0 = vpop.f32.mrf.mxu1  ;;  %v8567_v55 = vadd.f32 %v4917_v3, %v3761_v57  ;;  %v4826_v52 = vadd.f32 %v4825_v23, %v4824_v6 }
 0x2fa   :  { %v4920_v48 = vadd.f32 %v4919_v0, %v4918_v22  ;;  %v4827_v61 = vpop.f32.mrf.mxu0 }
 0x2fb   :  { %v4921_v29 = vpop.f32.mrf.mxu1  ;;  %v3764_v21 = vadd.f32 %v4826_v52, %v8485_v30 }
 0x2fc   :  { %v4828_v45 = vpop.f32.mrf.mxu0 }
 0x2fd   :  { %v4922_v54 = vpop.f32.mrf.mxu1  ;;  %v8570_v63 = vadd.f32 %v4920_v48, %v3764_v21  ;;  %v4829_v11 = vadd.f32 %v4828_v45, %v4827_v61 }
 0x2fe   :  { %v4923_v28 = vadd.f32 %v4922_v54, %v4921_v29  ;;  %v4830_v18 = vpop.f32.mrf.mxu0 }
 0x2ff   :  { %v4924_v17 = vpop.f32.mrf.mxu1  ;;  %v3769_v20 = vadd.f32 %v4829_v11, %v8488_v46 }
 0x300   :  { %v4831_v27 = vpop.f32.mrf.mxu0 }
 0x301   :  { %v4925_v38 = vpop.f32.mrf.mxu1  ;;  %v8573_v40 = vadd.f32 %v4923_v28, %v3769_v20  ;;  %v4832_v44 = vadd.f32 %v4831_v27, %v4830_v18 }
 0x302   :  { %v4926_v59 = vadd.f32 %v4925_v38, %v4924_v17  ;;  %v4833_v15 = vpop.f32.mrf.mxu0 }
 0x303   :  { %v4927_v26 = vpop.f32.mrf.mxu1  ;;  %v3772_v30 = vadd.f32 %v4832_v44, %v8495_v39 }
 0x304   :  { %v4834_v2 = vpop.f32.mrf.mxu0 }
 0x305   :  { %v4928_v12 = vpop.f32.mrf.mxu1  ;;  %v8576_v42 = vadd.f32 %v4926_v59, %v3772_v30  ;;  %v4835_v37 = vadd.f32 %v4834_v2, %v4833_v15 }
 0x306   :  { %v4929_v24 = vadd.f32 %v4928_v12, %v4927_v26  ;;  %v4836_v34 = vpop.f32.mrf.mxu0 }
 0x307   :  { %v4930_v50 = vpop.f32.mrf.mxu1  ;;  %v3777_v46 = vadd.f32 %v4835_v37, %v8498_v4 }
 0x308   :  { %v4837_v8 = vpop.f32.mrf.mxu0 }
 0x309   :  { %v4931_v1 = vpop.f32.mrf.mxu1  ;;  %v8579_v56 = vadd.f32 %v4929_v24, %v3777_v46 }
 0x30a   :  { %v4949_v33 = vpop.f32.mrf.mxu0 }
 0x30b   :  { %v5043_v25 = vpop.f32.mrf.mxu1 }
 0x30c   :  { %v4950_v10 = vpop.f32.mrf.mxu0 }
 0x30d   :  { %v5044_v3 = vpop.f32.mrf.mxu1  ;;  %v4951_v6 = vadd.f32 %v4950_v10, %v4949_v33 }
 0x30e   :  { %v4952_v39 = vpop.f32.mrf.mxu0  ;;  %v5045_v23 = vadd.f32 %v5044_v3, %v5043_v25 }
 0x30f   :  { %v5046_v22 = vpop.f32.mrf.mxu1  ;;  %v3953_v57 = vadd.f32 %v4951_v6, %v8505_v62 }
 0x310   :  { %v4953_v0 = vpop.f32.mrf.mxu0 }
 0x311   :  { %v5047_v52 = vpop.f32.mrf.mxu1  ;;  %v4089_v48 = vadd.f32 %v5045_v23, %v3953_v57  ;;  %v4954_v61 = vadd.f32 %v4953_v0, %v4952_v39 }
 0x312   :  { %v4955_v29 = vpop.f32.mrf.mxu0  ;;  %v5048_v45 = vadd.f32 %v5047_v52, %v5046_v22 }
 0x313   :  { %v5049_v4 = vpop.f32.mrf.mxu1  ;;  %4192 = vst [vmem:[%s8684_s3 + $0x10] sm:$0xff] %v4089_v48  ;;  %v3956_v21 = vadd.f32 %v4954_v61, %v8510_v58 }
 0x314   :  { %v4956_v54 = vpop.f32.mrf.mxu0 }
 0x315   :  { %v5050_v11 = vpop.f32.mrf.mxu1  ;;  %v4092_v28 = vadd.f32 %v5048_v45, %v3956_v21  ;;  %v4957_v18 = vadd.f32 %v4956_v54, %v4955_v29 }
 0x316   :  { %v4958_v17 = vpop.f32.mrf.mxu0  ;;  %v5051_v27 = vadd.f32 %v5050_v11, %v5049_v4 }
 0x317   :  { %v5052_v62 = vpop.f32.mrf.mxu1  ;;  %4195 = vst [vmem:[%s8684_s3 + $0x28] sm:$0xff] %v4092_v28  ;;  %v3961_v20 = vadd.f32 %v4957_v18, %v8513_v31 }
 0x318   :  { %v4959_v38 = vpop.f32.mrf.mxu0 }
 0x319   :  { %v5053_v44 = vpop.f32.mrf.mxu1  ;;  %v4097_v59 = vadd.f32 %v5051_v27, %v3961_v20  ;;  %v4960_v15 = vadd.f32 %v4959_v38, %v4958_v17 }
 0x31a   :  { %v4961_v26 = vpop.f32.mrf.mxu0  ;;  %v5054_v2 = vadd.f32 %v5053_v44, %v5052_v62 }
 0x31b   :  { %v5055_v58 = vpop.f32.mrf.mxu1  ;;  %4198 = vst [vmem:[%s8684_s3 + $0x40] sm:$0xff] %v4097_v59  ;;  %v3964_v30 = vadd.f32 %v4960_v15, %v8516_v41 }
 0x31c   :  { %v4962_v12 = vpop.f32.mrf.mxu0 }
 0x31d   :  { %v5056_v37 = vpop.f32.mrf.mxu1  ;;  %v4100_v24 = vadd.f32 %v5054_v2, %v3964_v30  ;;  %v4963_v34 = vadd.f32 %v4962_v12, %v4961_v26 }
 0x31e   :  { %v4964_v50 = vpop.f32.mrf.mxu0  ;;  %v5057_v8 = vadd.f32 %v5056_v37, %v5055_v58 }
 0x31f   :  { %v5058_v31 = vpop.f32.mrf.mxu1  ;;  %4201 = vst [vmem:[%s8684_s3 + $0x58] sm:$0xff] %v4100_v24  ;;  %v3969_v46 = vadd.f32 %v4963_v34, %v8519_v51 }
 0x320   :  { %v4965_v1 = vpop.f32.mrf.mxu0 }
 0x321   :  { %v5059_v33 = vpop.f32.mrf.mxu1  ;;  %v4105_v25 = vadd.f32 %v5057_v8, %v3969_v46  ;;  %v4966_v10 = vadd.f32 %v4965_v1, %v4964_v50 }
 0x322   :  { %v4967_v3 = vpop.f32.mrf.mxu0  ;;  %v5060_v39 = vadd.f32 %v5059_v33, %v5058_v31 }
 0x323   :  { %v5061_v41 = vpop.f32.mrf.mxu1  ;;  %4204 = vst [vmem:[%s8684_s3 + $0x70] sm:$0xff] %v4105_v25  ;;  %v3972_v6 = vadd.f32 %v4966_v10, %v8522_v36 }
 0x324   :  { %v4968_v22 = vpop.f32.mrf.mxu0 }
 0x325   :  { %v5062_v57 = vpop.f32.mrf.mxu1  ;;  %v4108_v23 = vadd.f32 %v5060_v39, %v3972_v6  ;;  %v4969_v0 = vadd.f32 %v4968_v22, %v4967_v3 }
 0x326   :  { %v4970_v52 = vpop.f32.mrf.mxu0  ;;  %v5063_v61 = vadd.f32 %v5062_v57, %v5061_v41 }
 0x327   :  { %v5064_v51 = vpop.f32.mrf.mxu1  ;;  %4207 = vst [vmem:[%s8684_s3 + $0x88] sm:$0xff] %v4108_v23  ;;  %v3977_v48 = vadd.f32 %v4969_v0, %v8525_v9 }
 0x328   :  { %v4971_v29 = vpop.f32.mrf.mxu0 }
 0x329   :  { %v5065_v4 = vpop.f32.mrf.mxu1  ;;  %v4113_v21 = vadd.f32 %v5063_v61, %v3977_v48  ;;  %v4972_v45 = vadd.f32 %v4971_v29, %v4970_v52 }
 0x32a   :  { %v4973_v54 = vpop.f32.mrf.mxu0  ;;  %v5066_v28 = vadd.f32 %v5065_v4, %v5064_v51 }
 0x32b   :  { %v5067_v36 = vpop.f32.mrf.mxu1  ;;  %4210 = vst [vmem:[%s8684_s3 + $0xa0] sm:$0xff] %v4113_v21  ;;  %v3980_v11 = vadd.f32 %v4972_v45, %v8528_v5 }
 0x32c   :  { %v4974_v18 = vpop.f32.mrf.mxu0 }
 0x32d   :  { %v5068_v17 = vpop.f32.mrf.mxu1  ;;  %v4116_v62 = vadd.f32 %v5066_v28, %v3980_v11  ;;  %v4975_v20 = vadd.f32 %v4974_v18, %v4973_v54 }
 0x32e   :  { %v4976_v27 = vpop.f32.mrf.mxu0  ;;  %v5069_v44 = vadd.f32 %v5068_v17, %v5067_v36 }
 0x32f   :  { %v5070_v9 = vpop.f32.mrf.mxu1  ;;  %4213 = vst [vmem:[%s8684_s3 + $0xb8] sm:$0xff] %v4116_v62  ;;  %v3985_v38 = vadd.f32 %v4975_v20, %v8531_v19 }
 0x330   :  { %v4977_v59 = vpop.f32.mrf.mxu0 }
 0x331   :  { %v5071_v15 = vpop.f32.mrf.mxu1  ;;  %v4121_v26 = vadd.f32 %v5069_v44, %v3985_v38  ;;  %v4978_v58 = vadd.f32 %v4977_v59, %v4976_v27 }
 0x332   :  { %v4979_v30 = vpop.f32.mrf.mxu0  ;;  %v5072_v12 = vadd.f32 %v5071_v15, %v5070_v9 }
 0x333   :  { %v5073_v5 = vpop.f32.mrf.mxu1  ;;  %4216 = vst [vmem:[%s8684_s3 + $0xd0] sm:$0xff] %v4121_v26  ;;  %v3988_v2 = vadd.f32 %v4978_v58, %v8534_v49 }
 0x334   :  { %v4980_v37 = vpop.f32.mrf.mxu0 }
 0x335   :  { %v5074_v24 = vpop.f32.mrf.mxu1  ;;  %v4124_v34 = vadd.f32 %v5072_v12, %v3988_v2  ;;  %v4981_v50 = vadd.f32 %v4980_v37, %v4979_v30 }
 0x336   :  { %v4982_v31 = vpop.f32.mrf.mxu0  ;;  %v5075_v8 = vadd.f32 %v5074_v24, %v5073_v5 }
 0x337   :  { %v5076_v19 = vpop.f32.mrf.mxu1  ;;  %4219 = vst [vmem:[%s8684_s3 + $0xe8] sm:$0xff] %v4124_v34  ;;  %v3993_v46 = vadd.f32 %v4981_v50, %v8537_v7 }
 0x338   :  { %v4983_v1 = vpop.f32.mrf.mxu0 }
 0x339   :  { %v5077_v33 = vpop.f32.mrf.mxu1  ;;  %v4129_v25 = vadd.f32 %v5075_v8, %v3993_v46  ;;  %v4984_v10 = vadd.f32 %v4983_v1, %v4982_v31 }
 0x33a   :  { %v4985_v3 = vpop.f32.mrf.mxu0  ;;  %v5078_v6 = vadd.f32 %v5077_v33, %v5076_v19 }
 0x33b   :  { %v5079_v49 = vpop.f32.mrf.mxu1  ;;  %4222 = vst [vmem:[%s8684_s3 + $0x100] sm:$0xff] %v4129_v25  ;;  %v3996_v41 = vadd.f32 %v4984_v10, %v8540_v13 }
 0x33c   :  { %v4986_v39 = vpop.f32.mrf.mxu0 }
 0x33d   :  { %v5080_v22 = vpop.f32.mrf.mxu1  ;;  %v4132_v57 = vadd.f32 %v5078_v6, %v3996_v41  ;;  %v4987_v23 = vadd.f32 %v4986_v39, %v4985_v3 }
 0x33e   :  { %v4988_v0 = vpop.f32.mrf.mxu0  ;;  %v5081_v51 = vadd.f32 %v5080_v22, %v5079_v49 }
 0x33f   :  { %v5082_v7 = vpop.f32.mrf.mxu1  ;;  %4225 = vst [vmem:[%s8684_s3 + $0x118] sm:$0xff] %v4132_v57  ;;  %v4001_v52 = vadd.f32 %v4987_v23, %v8543_v32 }
 0x340   :  { %v4989_v48 = vpop.f32.mrf.mxu0 }
 0x341   :  { %v5083_v61 = vpop.f32.mrf.mxu1  ;;  %v4137_v29 = vadd.f32 %v5081_v51, %v4001_v52  ;;  %v4990_v4 = vadd.f32 %v4989_v48, %v4988_v0 }
 0x342   :  { %v4991_v21 = vpop.f32.mrf.mxu0  ;;  %v5084_v54 = vadd.f32 %v5083_v61, %v5082_v7 }
 0x343   :  { %v5085_v13 = vpop.f32.mrf.mxu1  ;;  %4228 = vst [vmem:[%s8684_s3 + $0x130] sm:$0xff] %v4137_v29  ;;  %v4004_v45 = vadd.f32 %v4990_v4, %v8546_v43 }
 0x344   :  { %v4992_v36 = vpop.f32.mrf.mxu0 }
 0x345   :  { %v5086_v11 = vpop.f32.mrf.mxu1  ;;  %v4140_v28 = vadd.f32 %v5084_v54, %v4004_v45  ;;  %v4993_v18 = vadd.f32 %v4992_v36, %v4991_v21 }
 0x346   :  { %v4994_v17 = vpop.f32.mrf.mxu0  ;;  %v5087_v20 = vadd.f32 %v5086_v11, %v5085_v13 }
 0x347   :  { %v5088_v32 = vpop.f32.mrf.mxu1  ;;  %4231 = vst [vmem:[%s8684_s3 + $0x148] sm:$0xff] %v4140_v28  ;;  %v4009_v62 = vadd.f32 %v4993_v18, %v8549_v60 }
 0x348   :  { %v4995_v27 = vpop.f32.mrf.mxu0 }
 0x349   :  { %v5089_v9 = vpop.f32.mrf.mxu1  ;;  %v4145_v38 = vadd.f32 %v5087_v20, %v4009_v62  ;;  %v4996_v44 = vadd.f32 %v4995_v27, %v4994_v17 }
 0x34a   :  { %v4997_v59 = vpop.f32.mrf.mxu0  ;;  %v5090_v26 = vadd.f32 %v5089_v9, %v5088_v32 }
 0x34b   :  { %v5091_v43 = vpop.f32.mrf.mxu1  ;;  %4234 = vst [vmem:[%s8684_s3 + $0x160] sm:$0xff] %v4145_v38  ;;  %v4012_v15 = vadd.f32 %v4996_v44, %v8552_v14 }
 0x34c   :  { %v4998_v58 = vpop.f32.mrf.mxu0 }
 0x34d   :  { %v5092_v30 = vpop.f32.mrf.mxu1  ;;  %v4148_v5 = vadd.f32 %v5090_v26, %v4012_v15  ;;  %v4999_v2 = vadd.f32 %v4998_v58, %v4997_v59 }
 0x34e   :  { %v5000_v12 = vpop.f32.mrf.mxu0  ;;  %v5093_v24 = vadd.f32 %v5092_v30, %v5091_v43 }
 0x34f   :  { %v5094_v60 = vpop.f32.mrf.mxu1  ;;  %4237 = vst [vmem:[%s8684_s3 + $0x178] sm:$0xff] %v4148_v5  ;;  %v4017_v37 = vadd.f32 %v4999_v2, %v8555_v16 }
 0x350   :  { %v5001_v34 = vpop.f32.mrf.mxu0 }
 0x351   :  { %v5095_v50 = vpop.f32.mrf.mxu1  ;;  %v4153_v31 = vadd.f32 %v5093_v24, %v4017_v37  ;;  %v5002_v19 = vadd.f32 %v5001_v34, %v5000_v12 }
 0x352   :  { %v5003_v46 = vpop.f32.mrf.mxu0  ;;  %v5096_v1 = vadd.f32 %v5095_v50, %v5094_v60 }
 0x353   :  { %v5097_v14 = vpop.f32.mrf.mxu1  ;;  %4240 = vst [vmem:[%s8684_s3 + $0x190] sm:$0xff] %v4153_v31  ;;  %v4020_v8 = vadd.f32 %v5002_v19, %v8558_v53 }
 0x354   :  { %v5004_v33 = vpop.f32.mrf.mxu0 }
 0x355   :  { %v5098_v25 = vpop.f32.mrf.mxu1  ;;  %v4156_v10 = vadd.f32 %v5096_v1, %v4020_v8  ;;  %v5005_v3 = vadd.f32 %v5004_v33, %v5003_v46 }
 0x356   :  { %v5006_v49 = vpop.f32.mrf.mxu0  ;;  %v5099_v6 = vadd.f32 %v5098_v25, %v5097_v14 }
 0x357   :  { %v5100_v16 = vpop.f32.mrf.mxu1  ;;  %4243 = vst [vmem:[%s8684_s3 + $0x1a8] sm:$0xff] %v4156_v10  ;;  %v4025_v41 = vadd.f32 %v5005_v3, %v8561_v47 }
 0x358   :  { %v5007_v39 = vpop.f32.mrf.mxu0 }
 0x359   :  { %v5101_v22 = vpop.f32.mrf.mxu1  ;;  %v4161_v57 = vadd.f32 %v5099_v6, %v4025_v41  ;;  %v5008_v23 = vadd.f32 %v5007_v39, %v5006_v49 }
 0x35a   :  { %v5009_v0 = vpop.f32.mrf.mxu0  ;;  %v5102_v52 = vadd.f32 %v5101_v22, %v5100_v16 }
 0x35b   :  { %v5103_v53 = vpop.f32.mrf.mxu1  ;;  %4246 = vst [vmem:[%s8684_s3 + $0x1c0] sm:$0xff] %v4161_v57  ;;  %v4028_v7 = vadd.f32 %v5008_v23, %v8564_v35 }
 0x35c   :  { %v5010_v51 = vpop.f32.mrf.mxu0 }
 0x35d   :  { %v5104_v48 = vpop.f32.mrf.mxu1  ;;  %v4164_v61 = vadd.f32 %v5102_v52, %v4028_v7  ;;  %v5011_v29 = vadd.f32 %v5010_v51, %v5009_v0 }
 0x35e   :  { %v5012_v4 = vpop.f32.mrf.mxu0  ;;  %v5105_v13 = vadd.f32 %v5104_v48, %v5103_v53 }
 0x35f   :  { %v5106_v47 = vpop.f32.mrf.mxu1  ;;  %4249 = vst [vmem:[%s8684_s3 + $0x1d8] sm:$0xff] %v4164_v61  ;;  %v4033_v21 = vadd.f32 %v5011_v29, %v8567_v55 }
 0x360   :  { %v5013_v45 = vpop.f32.mrf.mxu0 }
 0x361   :  { %v5107_v54 = vpop.f32.mrf.mxu1  ;;  %v4169_v36 = vadd.f32 %v5105_v13, %v4033_v21  ;;  %v5014_v11 = vadd.f32 %v5013_v45, %v5012_v4 }
 0x362   :  { %v5015_v28 = vpop.f32.mrf.mxu0  ;;  %v5108_v17 = vadd.f32 %v5107_v54, %v5106_v47 }
 0x363   :  { %v5109_v35 = vpop.f32.mrf.mxu1  ;;  %4252 = vst [vmem:[%s8684_s3 + $0x1f0] sm:$0xff] %v4169_v36  ;;  %v4036_v18 = vadd.f32 %v5014_v11, %v8570_v63 }
 0x364   :  { %v5016_v32 = vpop.f32.mrf.mxu0 }
 0x365   :  { %v5110_v62 = vpop.f32.mrf.mxu1  ;;  %v4172_v20 = vadd.f32 %v5108_v17, %v4036_v18  ;;  %v5017_v27 = vadd.f32 %v5016_v32, %v5015_v28 }
 0x366   :  { %v5018_v9 = vpop.f32.mrf.mxu0  ;;  %v5111_v44 = vadd.f32 %v5110_v62, %v5109_v35 }
 0x367   :  { %v5112_v55 = vpop.f32.mrf.mxu1  ;;  %4255 = vst [vmem:[%s8684_s3 + $0x208] sm:$0xff] %v4172_v20  ;;  %v4041_v38 = vadd.f32 %v5017_v27, %v8573_v40 }
 0x368   :  { %v5019_v59 = vpop.f32.mrf.mxu0 }
 0x369   :  { %v5113_v43 = vpop.f32.mrf.mxu1  ;;  %v4177_v15 = vadd.f32 %v5111_v44, %v4041_v38  ;;  %v5020_v26 = vadd.f32 %v5019_v59, %v5018_v9 }
 0x36a   :  { %v5021_v58 = vpop.f32.mrf.mxu0  ;;  %v5114_v5 = vadd.f32 %v5113_v43, %v5112_v55 }
 0x36b   :  { %v5115_v63 = vpop.f32.mrf.mxu1  ;;  %4258 = vst [vmem:[%s8684_s3 + $0x220] sm:$0xff] %v4177_v15  ;;  %v4044_v30 = vadd.f32 %v5020_v26, %v8576_v42 }
 0x36c   :  { %v5022_v2 = vpop.f32.mrf.mxu0 }
 0x36d   :  { %v5116_v12 = vpop.f32.mrf.mxu1  ;;  %v4180_v60 = vadd.f32 %v5114_v5, %v4044_v30  ;;  %v5023_v37 = vadd.f32 %v5022_v2, %v5021_v58 }
 0x36e   :  { %v5024_v24 = vpop.f32.mrf.mxu0  ;;  %v5117_v50 = vadd.f32 %v5116_v12, %v5115_v63 }
 0x36f   :  { %v5118_v40 = vpop.f32.mrf.mxu1  ;;  %4261 = vst [vmem:[%s8684_s3 + $0x238] sm:$0xff] %v4180_v60  ;;  %v4049_v34 = vadd.f32 %v5023_v37, %v8579_v56 }
 0x370   :  { %v5025_v31 = vpop.f32.mrf.mxu0 }
 0x371   :  { %v5119_v19 = vpop.f32.mrf.mxu1  ;;  %v4185_v46 = vadd.f32 %v5117_v50, %v4049_v34 }
 0x373   :  { %4264 = vst [vmem:[%s8684_s3 + $0x250] sm:$0xf] %v4185_v46 }

</bundles_post_ra>
